<compile_context>
chip_gen: v5e
topology: v5e:2x2
jax: 0.10.0
libtpu: 0.0.40
codegen_flags: <defaults>
</compile_context>

<pallas_src>
import math

import jax
import jax.numpy as jnp
from jax.experimental import pallas as pl
from jax.experimental.pallas import tpu as pltpu  # imported for TPU backend symbols

# ---------------- static config (small shapes consistent with the module) ----
IMAGE_SIZE = 16
PATCH_S = 8           # patch_size_spatial
PATCH_T = 2           # patch_size_temporal
NUM_FRAMES = 4
NUM_LAYERS = 2
NUM_HEADS = 4
HIDDEN = 32
MLP = 64
NUM_CLASSES = 1
TEMPERATURE = 100000.0
SCALE = 1.0

NUM_PATCHES_SPATIAL = (IMAGE_SIZE // PATCH_S) ** 2
NUM_PATCHES_TEMPORAL = NUM_FRAMES // PATCH_T
NUM_PATCHES = NUM_PATCHES_SPATIAL * NUM_PATCHES_TEMPORAL
SEQ = NUM_PATCHES + 1
HEAD_DIM = HIDDEN // NUM_HEADS
PATCH_DIM = PATCH_T * PATCH_S * PATCH_S
LN_EPS_ENC = 1e-5     # nn.TransformerEncoderLayer default layer_norm_eps
LN_EPS_HEAD = 1e-6    # partial(nn.LayerNorm, eps=1e-6) in the head
NEG_INF = -1e30       # additive mask value for cross-batch attention pairs


# ---------------- in-kernel math helpers ----------------
def _erf(x):
    # Abramowitz & Stegun 7.1.26, |err| < 1.5e-7; avoids relying on an erf
    # lowering in Mosaic for PyTorch's exact GELU.
    a1, a2, a3, a4, a5 = 0.254829592, -0.284496736, 1.421413741, -1.453152027, 1.061405429
    p = 0.3275911
    sign = jnp.where(x >= 0.0, 1.0, -1.0)
    ax = jnp.abs(x)
    t = 1.0 / (1.0 + p * ax)
    poly = ((((a5 * t + a4) * t + a3) * t + a2) * t + a1) * t
    return sign * (1.0 - poly * jnp.exp(-ax * ax))


def _gelu_exact(x):
    return 0.5 * x * (1.0 + _erf(x * 0.7071067811865476))


def _layernorm(x, w, b, eps):
    mu = jnp.mean(x, axis=-1, keepdims=True)
    xc = x - mu
    var = jnp.mean(xc * xc, axis=-1, keepdims=True)
    return xc * jax.lax.rsqrt(var + eps) * w + b


# ---------------- fused forward kernel ----------------
def fused_vvt_kernel(p_ref, pw_ref, add_ref, mask_ref, sel_ref,
                     wqkv_ref, bqkv_ref, wo_ref, bo_ref,
                     ln1w_ref, ln1b_ref, w1_ref, b1_ref, w2_ref, b2_ref,
                     ln2w_ref, ln2b_ref,
                     hlnw_ref, hlnb_ref, hw_ref, hb_ref, o_ref):
    # Token slab (B*SEQ, D): patch embed matmul; CLS rows are zero patch rows,
    # the additive slab carries conv bias + pos-enc (patch rows) and
    # class_token + cls_positional_encoding (CLS rows).
    x = jnp.dot(p_ref[...], pw_ref[...],
                preferred_element_type=jnp.float32) + add_ref[...]
    mask = mask_ref[...]                                   # (BS, BS) block-diag 0 / -1e30
    scale = 1.0 / math.sqrt(HEAD_DIM)

    for l in range(NUM_LAYERS):
        # ---- self-attention (batch handled via block-diagonal mask) ----
        qkv = jnp.dot(x, wqkv_ref[l],
                      preferred_element_type=jnp.float32) + bqkv_ref[l]   # (BS, 3D)
        wo = wo_ref[l]                                                    # (D, D)
        attn = jnp.zeros(x.shape, jnp.float32)
        for h in range(NUM_HEADS):
            lo = h * HEAD_DIM
            hi = (h + 1) * HEAD_DIM
            q_h = qkv[:, lo:hi]
            k_h = qkv[:, HIDDEN + lo:HIDDEN + hi]
            v_h = qkv[:, 2 * HIDDEN + lo:2 * HIDDEN + hi]
            s = jax.lax.dot_general(q_h, k_h, (((1,), (1,)), ((), ())),
                                    preferred_element_type=jnp.float32) * scale
            s = s + mask
            s = s - jnp.max(s, axis=-1, keepdims=True)
            p = jnp.exp(s)
            p = p / jnp.sum(p, axis=-1, keepdims=True)
            o_h = jnp.dot(p, v_h, preferred_element_type=jnp.float32)     # (BS, Dh)
            # accumulate head output through its slice of W_o (no concat)
            attn = attn + jnp.dot(o_h, wo[lo:hi, :],
                                  preferred_element_type=jnp.float32)     # (BS, D)
        attn = attn + bo_ref[l]

        # ---- post-norm residual + GELU MLP ----
        y = _layernorm(x + attn, ln1w_ref[l], ln1b_ref[l], LN_EPS_ENC)
        h1 = _gelu_exact(jnp.dot(y, w1_ref[l],
                                 preferred_element_type=jnp.float32) + b1_ref[l])
        ff = jnp.dot(h1, w2_ref[l], preferred_element_type=jnp.float32) + b2_ref[l]
        x = _layernorm(y + ff, ln2w_ref[l], ln2b_ref[l], LN_EPS_ENC)

    # ---- head: pick CLS rows with a constant selection matmul, LN, Linear ----
    cls_rows = jnp.dot(sel_ref[...], x, preferred_element_type=jnp.float32)   # (B, D)
    yc = _layernorm(cls_rows, hlnw_ref[...], hlnb_ref[...], LN_EPS_HEAD)
    o_ref[...] = jnp.dot(yc, hw_ref[...],
                         preferred_element_type=jnp.float32) + hb_ref[...]


# ---------------- host-side helpers / wrapper ----------------
def positional_encoding(num_pos, dim, temperature, scale):
    # TODO(synk): the PositionalEmbedding class is not provided in the reference
    # source; using a fixed additive sinusoidal encoding over the flattened
    # (t, h, w) patch index with the module's temperature / scale parameters.
    pos = jnp.arange(num_pos, dtype=jnp.float32)[:, None]
    i = jnp.arange(dim // 2, dtype=jnp.float32)[None, :]
    inv_freq = 1.0 / (temperature ** (2.0 * i / dim))
    ang = scale * pos * inv_freq
    pe = jnp.stack([jnp.sin(ang), jnp.cos(ang)], axis=-1).reshape(num_pos, dim)
    return pe.astype(jnp.float32)


def vvt_forward(x, params):
    B, T, C, H, W = x.shape
    assert C == 1 and T == NUM_FRAMES and H == IMAGE_SIZE and W == IMAGE_SIZE

    # 'b t c h w -> b c t h w', then Conv3d(stride==kernel) as patch extraction.
    xv = jnp.transpose(x, (0, 2, 1, 3, 4))[:, 0]                      # (B, T, H, W)
    nt, nh, nw = T // PATCH_T, H // PATCH_S, W // PATCH_S
    patches = xv.reshape(B, nt, PATCH_T, nh, PATCH_S, nw, PATCH_S)
    patches = jnp.transpose(patches, (0, 1, 3, 5, 2, 4, 6))
    patches = patches.reshape(B, NUM_PATCHES, PATCH_DIM).astype(jnp.float32)
    # prepend an all-zero "patch" row per batch for the CLS token slot
    patches_full = jnp.pad(patches, ((0, 0), (1, 0), (0, 0))).reshape(B * SEQ, PATCH_DIM)

    # additive slab: row 0 per batch = class_token + cls_pe,
    #                rows 1.. per batch = conv bias + positional encoding
    pe = positional_encoding(NUM_PATCHES, HIDDEN, TEMPERATURE, SCALE)
    cls_vec = (params['class_token'] + params['cls_pe']).reshape(1, HIDDEN)
    add_one = jnp.concatenate([cls_vec, pe + params['patch_b']], axis=0)   # (SEQ, D)
    add_slab = jnp.tile(add_one, (B, 1))                                   # (B*SEQ, D)

    # block-diagonal attention mask (0 within a batch element, -1e30 across)
    bid = jnp.arange(B * SEQ, dtype=jnp.int32) // SEQ
    mask = jnp.where(bid[:, None] == bid[None, :], 0.0, NEG_INF).astype(jnp.float32)

    # CLS-row selection matrix for the head: (B, B*SEQ) one-hot rows
    sel = (jnp.arange(B, dtype=jnp.int32)[:, None] * SEQ ==
           jnp.arange(B * SEQ, dtype=jnp.int32)[None, :]).astype(jnp.float32)

    def stack(name):
        return jnp.stack([lw[name] for lw in params['layers']])

    out = pl.pallas_call(
        fused_vvt_kernel,
        out_shape=jax.ShapeDtypeStruct((B, NUM_CLASSES), jnp.float32),
    )(patches_full, params['patch_w'], add_slab, mask, sel,
      stack('wqkv'), stack('bqkv'), stack('wo'), stack('bo'),
      stack('ln1w'), stack('ln1b'), stack('w1'), stack('b1'),
      stack('w2'), stack('b2'), stack('ln2w'), stack('ln2b'),
      params['head_ln_w'], params['head_ln_b'],
      params['head_w'], params['head_b'])
    return out


# ---------------- deterministic parameter init (mirrors __init__ shapes) -----
def init_params(key):
    keys = jax.random.split(key, 8 + 6 * NUM_LAYERS)
    ki = iter(keys)

    def trunc(k, shape, std=0.02):
        # trunc_normal_(std=0.02, a=-2, b=2): cutoffs are ~100 sigma -> plain normal.
        return (std * jax.random.normal(k, shape)).astype(jnp.float32)

    params = {}
    # Conv3d(1, HIDDEN, kernel=(PT, PS, PS)) weight, kaiming_normal fan_out:
    fan_out = HIDDEN * PATCH_DIM
    conv_w = jax.random.normal(next(ki), (HIDDEN, PATCH_DIM)) * math.sqrt(2.0 / fan_out)
    params['patch_w'] = conv_w.T.astype(jnp.float32)                  # (PATCH_DIM, HIDDEN)
    params['patch_b'] = jnp.zeros((1, HIDDEN), jnp.float32)

    params['class_token'] = trunc(next(ki), (1, 1, HIDDEN))
    params['cls_pe'] = trunc(next(ki), (1, 1, HIDDEN))

    layers = []
    for _ in range(NUM_LAYERS):
        layers.append({
            'wqkv': trunc(next(ki), (HIDDEN, 3 * HIDDEN)),            # in_proj (transposed)
            'bqkv': jnp.zeros((1, 3 * HIDDEN), jnp.float32),
            'wo':   trunc(next(ki), (HIDDEN, HIDDEN)),                # out_proj (transposed)
            'bo':   jnp.zeros((1, HIDDEN), jnp.float32),
            'ln1w': jnp.ones((1, HIDDEN), jnp.float32),
            'ln1b': jnp.zeros((1, HIDDEN), jnp.float32),
            'w1':   trunc(next(ki), (HIDDEN, MLP)),                   # linear1 (transposed)
            'b1':   jnp.zeros((1, MLP), jnp.float32),
            'w2':   trunc(next(ki), (MLP, HIDDEN)),                   # linear2 (transposed)
            'b2':   jnp.zeros((1, HIDDEN), jnp.float32),
            'ln2w': jnp.ones((1, HIDDEN), jnp.float32),
            'ln2b': jnp.zeros((1, HIDDEN), jnp.float32),
        })
    params['layers'] = layers

    params['head_ln_w'] = jnp.ones((1, HIDDEN), jnp.float32)
    params['head_ln_b'] = jnp.zeros((1, HIDDEN), jnp.float32)
    params['head_w'] = trunc(next(ki), (HIDDEN, NUM_CLASSES))
    params['head_b'] = jnp.zeros((1, NUM_CLASSES), jnp.float32).at[0, 0].set(55.6)
    return params


if __name__ == "__main__":
    key = jax.random.PRNGKey(0)
    pkey, xkey = jax.random.split(key)
    params = init_params(pkey)
    x = jax.random.normal(xkey, (2, NUM_FRAMES, 1, IMAGE_SIZE, IMAGE_SIZE),
                          dtype=jnp.float32)        # (b, t, c, h, w), c == 1
    fwd = jax.jit(vvt_forward)
    out = fwd(x, params)
    out = jax.block_until_ready(out)
    assert out.shape == (2, NUM_CLASSES)
    assert bool(jnp.all(jnp.isfinite(out)))
    print("KERNEL_OK")
</pallas_src>

<mosaic_0001>
module attributes {stable_mosaic.version = 11 : i64} {
  func.func @fused_vvt_kernel(%arg0: memref<18x128xf32, #tpu.memory_space<vmem>>, %arg1: memref<128x32xf32, #tpu.memory_space<vmem>>, %arg2: memref<18x32xf32, #tpu.memory_space<vmem>>, %arg3: memref<18x18xf32, #tpu.memory_space<vmem>>, %arg4: memref<2x18xf32, #tpu.memory_space<vmem>>, %arg5: memref<2x32x96xf32, #tpu.memory_space<vmem>>, %arg6: memref<2x1x96xf32, #tpu.memory_space<vmem>>, %arg7: memref<2x32x32xf32, #tpu.memory_space<vmem>>, %arg8: memref<2x1x32xf32, #tpu.memory_space<vmem>>, %arg9: memref<2x1x32xf32, #tpu.memory_space<vmem>>, %arg10: memref<2x1x32xf32, #tpu.memory_space<vmem>>, %arg11: memref<2x32x64xf32, #tpu.memory_space<vmem>>, %arg12: memref<2x1x64xf32, #tpu.memory_space<vmem>>, %arg13: memref<2x64x32xf32, #tpu.memory_space<vmem>>, %arg14: memref<2x1x32xf32, #tpu.memory_space<vmem>>, %arg15: memref<2x1x32xf32, #tpu.memory_space<vmem>>, %arg16: memref<2x1x32xf32, #tpu.memory_space<vmem>>, %arg17: memref<1x32xf32, #tpu.memory_space<vmem>>, %arg18: memref<1x32xf32, #tpu.memory_space<vmem>>, %arg19: memref<32x1xf32, #tpu.memory_space<vmem>>, %arg20: memref<1x1xf32, #tpu.memory_space<vmem>>, %arg21: memref<2x1xf32, #tpu.memory_space<vmem>>) attributes {dimension_semantics = [], scalar_prefetch = 0 : i64, scratch_operands = 0 : i64, tpu.core_type = #tpu.core_type<tc>} {
    %c0 = arith.constant 0 : index
    %c0_0 = arith.constant 0 : index
    %0 = vector.load %arg0[%c0, %c0_0] : memref<18x128xf32, #tpu.memory_space<vmem>>, vector<18x128xf32>
    %c0_1 = arith.constant 0 : index
    %c0_2 = arith.constant 0 : index
    %1 = vector.load %arg1[%c0_1, %c0_2] : memref<128x32xf32, #tpu.memory_space<vmem>>, vector<128x32xf32>
    %cst = arith.constant dense<0.000000e+00> : vector<18x32xf32>
    %2 = tpu.matmul %0, %1, %cst {dimension_numbers = #tpu.dot_dimension_numbers<[1], [0], [0], [1], [0, 0, 1, 1], [], []>} : vector<18x128xf32>, vector<128x32xf32>, vector<18x32xf32> -> vector<18x32xf32>
    %c0_3 = arith.constant 0 : index
    %c0_4 = arith.constant 0 : index
    %3 = vector.load %arg2[%c0_3, %c0_4] : memref<18x32xf32, #tpu.memory_space<vmem>>, vector<18x32xf32>
    %4 = arith.addf %2, %3 : vector<18x32xf32>
    %c0_5 = arith.constant 0 : index
    %c0_6 = arith.constant 0 : index
    %5 = vector.load %arg3[%c0_5, %c0_6] : memref<18x18xf32, #tpu.memory_space<vmem>>, vector<18x18xf32>
    %c0_7 = arith.constant 0 : index
    %c0_8 = arith.constant 0 : index
    %c0_9 = arith.constant 0 : index
    %6 = vector.load %arg5[%c0_7, %c0_8, %c0_9] : memref<2x32x96xf32, #tpu.memory_space<vmem>>, vector<1x32x96xf32>
    %7 = vector.shape_cast %6 : vector<1x32x96xf32> to vector<32x96xf32>
    %cst_10 = arith.constant dense<0.000000e+00> : vector<18x96xf32>
    %8 = tpu.matmul %4, %7, %cst_10 {dimension_numbers = #tpu.dot_dimension_numbers<[1], [0], [0], [1], [0, 0, 1, 1], [], []>} : vector<18x32xf32>, vector<32x96xf32>, vector<18x96xf32> -> vector<18x96xf32>
    %c0_11 = arith.constant 0 : index
    %c0_12 = arith.constant 0 : index
    %c0_13 = arith.constant 0 : index
    %9 = vector.load %arg6[%c0_11, %c0_12, %c0_13] : memref<2x1x96xf32, #tpu.memory_space<vmem>>, vector<1x1x96xf32>
    %10 = vector.shape_cast %9 : vector<1x1x96xf32> to vector<1x96xf32>
    %11 = vector.broadcast %10 : vector<1x96xf32> to vector<18x96xf32>
    %12 = arith.addf %8, %11 : vector<18x96xf32>
    %c0_14 = arith.constant 0 : index
    %c0_15 = arith.constant 0 : index
    %c0_16 = arith.constant 0 : index
    %13 = vector.load %arg7[%c0_14, %c0_15, %c0_16] : memref<2x32x32xf32, #tpu.memory_space<vmem>>, vector<1x32x32xf32>
    %14 = vector.shape_cast %13 : vector<1x32x32xf32> to vector<32x32xf32>
    %cst_17 = arith.constant 0.000000e+00 : f32
    %15 = vector.broadcast %cst_17 : f32 to vector<18x32xf32>
    %16 = vector.extract_strided_slice %12 {offsets = [0, 0], sizes = [18, 8], strides = [1, 1]} : vector<18x96xf32> to vector<18x8xf32>
    %17 = vector.extract_strided_slice %12 {offsets = [0, 32], sizes = [18, 8], strides = [1, 1]} : vector<18x96xf32> to vector<18x8xf32>
    %18 = vector.extract_strided_slice %12 {offsets = [0, 64], sizes = [18, 8], strides = [1, 1]} : vector<18x96xf32> to vector<18x8xf32>
    %cst_18 = arith.constant dense<0.000000e+00> : vector<18x18xf32>
    %19 = tpu.matmul %16, %17, %cst_18 {dimension_numbers = #tpu.dot_dimension_numbers<[1], [1], [0], [0], [0, 0, 1, 0], [], []>} : vector<18x8xf32>, vector<18x8xf32>, vector<18x18xf32> -> vector<18x18xf32>
    %cst_19 = arith.constant 0.353553385 : f32
    %20 = vector.broadcast %cst_19 : f32 to vector<18x18xf32>
    %21 = arith.mulf %19, %20 : vector<18x18xf32>
    %22 = arith.addf %21, %5 : vector<18x18xf32>
    %cst_20 = arith.constant dense<0xFF800000> : vector<18xf32>
    %23 = vector.multi_reduction <maximumf>, %22, %cst_20 [1] : vector<18x18xf32> to vector<18xf32>
    %24 = vector.shape_cast %23 : vector<18xf32> to vector<18x1xf32>
    %25 = vector.broadcast %24 : vector<18x1xf32> to vector<18x18xf32>
    %26 = arith.subf %22, %25 : vector<18x18xf32>
    %27 = math.exp %26 : vector<18x18xf32>
    %cst_21 = arith.constant dense<0.000000e+00> : vector<18xf32>
    %28 = vector.multi_reduction <add>, %27, %cst_21 [1] : vector<18x18xf32> to vector<18xf32>
    %29 = vector.shape_cast %28 : vector<18xf32> to vector<18x1xf32>
    %30 = vector.broadcast %29 : vector<18x1xf32> to vector<18x18xf32>
    %31 = arith.divf %27, %30 : vector<18x18xf32>
    %cst_22 = arith.constant dense<0.000000e+00> : vector<18x8xf32>
    %32 = tpu.matmul %31, %18, %cst_22 {dimension_numbers = #tpu.dot_dimension_numbers<[1], [0], [0], [1], [0, 0, 1, 1], [], []>} : vector<18x18xf32>, vector<18x8xf32>, vector<18x8xf32> -> vector<18x8xf32>
    %33 = vector.extract_strided_slice %14 {offsets = [0, 0], sizes = [8, 32], strides = [1, 1]} : vector<32x32xf32> to vector<8x32xf32>
    %cst_23 = arith.constant dense<0.000000e+00> : vector<18x32xf32>
    %34 = tpu.matmul %32, %33, %cst_23 {dimension_numbers = #tpu.dot_dimension_numbers<[1], [0], [0], [1], [0, 0, 1, 1], [], []>} : vector<18x8xf32>, vector<8x32xf32>, vector<18x32xf32> -> vector<18x32xf32>
    %35 = arith.addf %15, %34 : vector<18x32xf32>
    %36 = vector.extract_strided_slice %12 {offsets = [0, 8], sizes = [18, 8], strides = [1, 1]} : vector<18x96xf32> to vector<18x8xf32>
    %37 = vector.extract_strided_slice %12 {offsets = [0, 40], sizes = [18, 8], strides = [1, 1]} : vector<18x96xf32> to vector<18x8xf32>
    %38 = vector.extract_strided_slice %12 {offsets = [0, 72], sizes = [18, 8], strides = [1, 1]} : vector<18x96xf32> to vector<18x8xf32>
    %cst_24 = arith.constant dense<0.000000e+00> : vector<18x18xf32>
    %39 = tpu.matmul %36, %37, %cst_24 {dimension_numbers = #tpu.dot_dimension_numbers<[1], [1], [0], [0], [0, 0, 1, 0], [], []>} : vector<18x8xf32>, vector<18x8xf32>, vector<18x18xf32> -> vector<18x18xf32>
    %cst_25 = arith.constant 0.353553385 : f32
    %40 = vector.broadcast %cst_25 : f32 to vector<18x18xf32>
    %41 = arith.mulf %39, %40 : vector<18x18xf32>
    %42 = arith.addf %41, %5 : vector<18x18xf32>
    %cst_26 = arith.constant dense<0xFF800000> : vector<18xf32>
    %43 = vector.multi_reduction <maximumf>, %42, %cst_26 [1] : vector<18x18xf32> to vector<18xf32>
    %44 = vector.shape_cast %43 : vector<18xf32> to vector<18x1xf32>
    %45 = vector.broadcast %44 : vector<18x1xf32> to vector<18x18xf32>
    %46 = arith.subf %42, %45 : vector<18x18xf32>
    %47 = math.exp %46 : vector<18x18xf32>
    %cst_27 = arith.constant dense<0.000000e+00> : vector<18xf32>
    %48 = vector.multi_reduction <add>, %47, %cst_27 [1] : vector<18x18xf32> to vector<18xf32>
    %49 = vector.shape_cast %48 : vector<18xf32> to vector<18x1xf32>
    %50 = vector.broadcast %49 : vector<18x1xf32> to vector<18x18xf32>
    %51 = arith.divf %47, %50 : vector<18x18xf32>
    %cst_28 = arith.constant dense<0.000000e+00> : vector<18x8xf32>
    %52 = tpu.matmul %51, %38, %cst_28 {dimension_numbers = #tpu.dot_dimension_numbers<[1], [0], [0], [1], [0, 0, 1, 1], [], []>} : vector<18x18xf32>, vector<18x8xf32>, vector<18x8xf32> -> vector<18x8xf32>
    %53 = vector.extract_strided_slice %14 {offsets = [8, 0], sizes = [8, 32], strides = [1, 1]} : vector<32x32xf32> to vector<8x32xf32>
    %cst_29 = arith.constant dense<0.000000e+00> : vector<18x32xf32>
    %54 = tpu.matmul %52, %53, %cst_29 {dimension_numbers = #tpu.dot_dimension_numbers<[1], [0], [0], [1], [0, 0, 1, 1], [], []>} : vector<18x8xf32>, vector<8x32xf32>, vector<18x32xf32> -> vector<18x32xf32>
    %55 = arith.addf %35, %54 : vector<18x32xf32>
    %56 = vector.extract_strided_slice %12 {offsets = [0, 16], sizes = [18, 8], strides = [1, 1]} : vector<18x96xf32> to vector<18x8xf32>
    %57 = vector.extract_strided_slice %12 {offsets = [0, 48], sizes = [18, 8], strides = [1, 1]} : vector<18x96xf32> to vector<18x8xf32>
    %58 = vector.extract_strided_slice %12 {offsets = [0, 80], sizes = [18, 8], strides = [1, 1]} : vector<18x96xf32> to vector<18x8xf32>
    %cst_30 = arith.constant dense<0.000000e+00> : vector<18x18xf32>
    %59 = tpu.matmul %56, %57, %cst_30 {dimension_numbers = #tpu.dot_dimension_numbers<[1], [1], [0], [0], [0, 0, 1, 0], [], []>} : vector<18x8xf32>, vector<18x8xf32>, vector<18x18xf32> -> vector<18x18xf32>
    %cst_31 = arith.constant 0.353553385 : f32
    %60 = vector.broadcast %cst_31 : f32 to vector<18x18xf32>
    %61 = arith.mulf %59, %60 : vector<18x18xf32>
    %62 = arith.addf %61, %5 : vector<18x18xf32>
    %cst_32 = arith.constant dense<0xFF800000> : vector<18xf32>
    %63 = vector.multi_reduction <maximumf>, %62, %cst_32 [1] : vector<18x18xf32> to vector<18xf32>
    %64 = vector.shape_cast %63 : vector<18xf32> to vector<18x1xf32>
    %65 = vector.broadcast %64 : vector<18x1xf32> to vector<18x18xf32>
    %66 = arith.subf %62, %65 : vector<18x18xf32>
    %67 = math.exp %66 : vector<18x18xf32>
    %cst_33 = arith.constant dense<0.000000e+00> : vector<18xf32>
    %68 = vector.multi_reduction <add>, %67, %cst_33 [1] : vector<18x18xf32> to vector<18xf32>
    %69 = vector.shape_cast %68 : vector<18xf32> to vector<18x1xf32>
    %70 = vector.broadcast %69 : vector<18x1xf32> to vector<18x18xf32>
    %71 = arith.divf %67, %70 : vector<18x18xf32>
    %cst_34 = arith.constant dense<0.000000e+00> : vector<18x8xf32>
    %72 = tpu.matmul %71, %58, %cst_34 {dimension_numbers = #tpu.dot_dimension_numbers<[1], [0], [0], [1], [0, 0, 1, 1], [], []>} : vector<18x18xf32>, vector<18x8xf32>, vector<18x8xf32> -> vector<18x8xf32>
    %73 = vector.extract_strided_slice %14 {offsets = [16, 0], sizes = [8, 32], strides = [1, 1]} : vector<32x32xf32> to vector<8x32xf32>
    %cst_35 = arith.constant dense<0.000000e+00> : vector<18x32xf32>
    %74 = tpu.matmul %72, %73, %cst_35 {dimension_numbers = #tpu.dot_dimension_numbers<[1], [0], [0], [1], [0, 0, 1, 1], [], []>} : vector<18x8xf32>, vector<8x32xf32>, vector<18x32xf32> -> vector<18x32xf32>
    %75 = arith.addf %55, %74 : vector<18x32xf32>
    %76 = vector.extract_strided_slice %12 {offsets = [0, 24], sizes = [18, 8], strides = [1, 1]} : vector<18x96xf32> to vector<18x8xf32>
    %77 = vector.extract_strided_slice %12 {offsets = [0, 56], sizes = [18, 8], strides = [1, 1]} : vector<18x96xf32> to vector<18x8xf32>
    %78 = vector.extract_strided_slice %12 {offsets = [0, 88], sizes = [18, 8], strides = [1, 1]} : vector<18x96xf32> to vector<18x8xf32>
    %cst_36 = arith.constant dense<0.000000e+00> : vector<18x18xf32>
    %79 = tpu.matmul %76, %77, %cst_36 {dimension_numbers = #tpu.dot_dimension_numbers<[1], [1], [0], [0], [0, 0, 1, 0], [], []>} : vector<18x8xf32>, vector<18x8xf32>, vector<18x18xf32> -> vector<18x18xf32>
    %cst_37 = arith.constant 0.353553385 : f32
    %80 = vector.broadcast %cst_37 : f32 to vector<18x18xf32>
    %81 = arith.mulf %79, %80 : vector<18x18xf32>
    %82 = arith.addf %81, %5 : vector<18x18xf32>
    %cst_38 = arith.constant dense<0xFF800000> : vector<18xf32>
    %83 = vector.multi_reduction <maximumf>, %82, %cst_38 [1] : vector<18x18xf32> to vector<18xf32>
    %84 = vector.shape_cast %83 : vector<18xf32> to vector<18x1xf32>
    %85 = vector.broadcast %84 : vector<18x1xf32> to vector<18x18xf32>
    %86 = arith.subf %82, %85 : vector<18x18xf32>
    %87 = math.exp %86 : vector<18x18xf32>
    %cst_39 = arith.constant dense<0.000000e+00> : vector<18xf32>
    %88 = vector.multi_reduction <add>, %87, %cst_39 [1] : vector<18x18xf32> to vector<18xf32>
    %89 = vector.shape_cast %88 : vector<18xf32> to vector<18x1xf32>
    %90 = vector.broadcast %89 : vector<18x1xf32> to vector<18x18xf32>
    %91 = arith.divf %87, %90 : vector<18x18xf32>
    %cst_40 = arith.constant dense<0.000000e+00> : vector<18x8xf32>
    %92 = tpu.matmul %91, %78, %cst_40 {dimension_numbers = #tpu.dot_dimension_numbers<[1], [0], [0], [1], [0, 0, 1, 1], [], []>} : vector<18x18xf32>, vector<18x8xf32>, vector<18x8xf32> -> vector<18x8xf32>
    %93 = vector.extract_strided_slice %14 {offsets = [24, 0], sizes = [8, 32], strides = [1, 1]} : vector<32x32xf32> to vector<8x32xf32>
    %cst_41 = arith.constant dense<0.000000e+00> : vector<18x32xf32>
    %94 = tpu.matmul %92, %93, %cst_41 {dimension_numbers = #tpu.dot_dimension_numbers<[1], [0], [0], [1], [0, 0, 1, 1], [], []>} : vector<18x8xf32>, vector<8x32xf32>, vector<18x32xf32> -> vector<18x32xf32>
    %95 = arith.addf %75, %94 : vector<18x32xf32>
    %c0_42 = arith.constant 0 : index
    %c0_43 = arith.constant 0 : index
    %c0_44 = arith.constant 0 : index
    %96 = vector.load %arg8[%c0_42, %c0_43, %c0_44] : memref<2x1x32xf32, #tpu.memory_space<vmem>>, vector<1x1x32xf32>
    %97 = vector.shape_cast %96 : vector<1x1x32xf32> to vector<1x32xf32>
    %98 = vector.broadcast %97 : vector<1x32xf32> to vector<18x32xf32>
    %99 = arith.addf %95, %98 : vector<18x32xf32>
    %100 = arith.addf %4, %99 : vector<18x32xf32>
    %c0_45 = arith.constant 0 : index
    %c0_46 = arith.constant 0 : index
    %c0_47 = arith.constant 0 : index
    %101 = vector.load %arg9[%c0_45, %c0_46, %c0_47] : memref<2x1x32xf32, #tpu.memory_space<vmem>>, vector<1x1x32xf32>
    %102 = vector.shape_cast %101 : vector<1x1x32xf32> to vector<1x32xf32>
    %c0_48 = arith.constant 0 : index
    %c0_49 = arith.constant 0 : index
    %c0_50 = arith.constant 0 : index
    %103 = vector.load %arg10[%c0_48, %c0_49, %c0_50] : memref<2x1x32xf32, #tpu.memory_space<vmem>>, vector<1x1x32xf32>
    %104 = vector.shape_cast %103 : vector<1x1x32xf32> to vector<1x32xf32>
    %cst_51 = arith.constant dense<0.000000e+00> : vector<18xf32>
    %105 = vector.multi_reduction <add>, %100, %cst_51 [1] : vector<18x32xf32> to vector<18xf32>
    %106 = vector.shape_cast %105 : vector<18xf32> to vector<18x1xf32>
    %cst_52 = arith.constant 3.200000e+01 : f32
    %107 = vector.broadcast %cst_52 : f32 to vector<18x1xf32>
    %108 = arith.divf %106, %107 : vector<18x1xf32>
    %109 = vector.broadcast %108 : vector<18x1xf32> to vector<18x32xf32>
    %110 = arith.subf %100, %109 : vector<18x32xf32>
    %111 = arith.mulf %110, %110 : vector<18x32xf32>
    %cst_53 = arith.constant dense<0.000000e+00> : vector<18xf32>
    %112 = vector.multi_reduction <add>, %111, %cst_53 [1] : vector<18x32xf32> to vector<18xf32>
    %113 = vector.shape_cast %112 : vector<18xf32> to vector<18x1xf32>
    %cst_54 = arith.constant 3.200000e+01 : f32
    %114 = vector.broadcast %cst_54 : f32 to vector<18x1xf32>
    %115 = arith.divf %113, %114 : vector<18x1xf32>
    %cst_55 = arith.constant 9.99999974E-6 : f32
    %116 = vector.broadcast %cst_55 : f32 to vector<18x1xf32>
    %117 = arith.addf %115, %116 : vector<18x1xf32>
    %118 = math.rsqrt %117 : vector<18x1xf32>
    %119 = vector.broadcast %118 : vector<18x1xf32> to vector<18x32xf32>
    %120 = arith.mulf %110, %119 : vector<18x32xf32>
    %121 = vector.broadcast %102 : vector<1x32xf32> to vector<18x32xf32>
    %122 = arith.mulf %120, %121 : vector<18x32xf32>
    %123 = vector.broadcast %104 : vector<1x32xf32> to vector<18x32xf32>
    %124 = arith.addf %122, %123 : vector<18x32xf32>
    %c0_56 = arith.constant 0 : index
    %c0_57 = arith.constant 0 : index
    %c0_58 = arith.constant 0 : index
    %125 = vector.load %arg11[%c0_56, %c0_57, %c0_58] : memref<2x32x64xf32, #tpu.memory_space<vmem>>, vector<1x32x64xf32>
    %126 = vector.shape_cast %125 : vector<1x32x64xf32> to vector<32x64xf32>
    %cst_59 = arith.constant dense<0.000000e+00> : vector<18x64xf32>
    %127 = tpu.matmul %124, %126, %cst_59 {dimension_numbers = #tpu.dot_dimension_numbers<[1], [0], [0], [1], [0, 0, 1, 1], [], []>} : vector<18x32xf32>, vector<32x64xf32>, vector<18x64xf32> -> vector<18x64xf32>
    %c0_60 = arith.constant 0 : index
    %c0_61 = arith.constant 0 : index
    %c0_62 = arith.constant 0 : index
    %128 = vector.load %arg12[%c0_60, %c0_61, %c0_62] : memref<2x1x64xf32, #tpu.memory_space<vmem>>, vector<1x1x64xf32>
    %129 = vector.shape_cast %128 : vector<1x1x64xf32> to vector<1x64xf32>
    %130 = vector.broadcast %129 : vector<1x64xf32> to vector<18x64xf32>
    %131 = arith.addf %127, %130 : vector<18x64xf32>
    %cst_63 = arith.constant 5.000000e-01 : f32
    %132 = vector.broadcast %cst_63 : f32 to vector<18x64xf32>
    %133 = arith.mulf %132, %131 : vector<18x64xf32>
    %cst_64 = arith.constant 0.707106769 : f32
    %134 = vector.broadcast %cst_64 : f32 to vector<18x64xf32>
    %135 = arith.mulf %131, %134 : vector<18x64xf32>
    %cst_65 = arith.constant 0.000000e+00 : f32
    %136 = vector.broadcast %cst_65 : f32 to vector<18x64xf32>
    %137 = arith.cmpf oge, %135, %136 : vector<18x64xf32>
    %cst_66 = arith.constant 1.000000e+00 : f32
    %cst_67 = arith.constant -1.000000e+00 : f32
    %138 = vector.broadcast %cst_66 : f32 to vector<18x64xf32>
    %139 = vector.broadcast %cst_67 : f32 to vector<18x64xf32>
    %140 = arith.select %137, %138, %139 : vector<18x64xi1>, vector<18x64xf32>
    %141 = math.absf %135 : vector<18x64xf32>
    %cst_68 = arith.constant 0.327591091 : f32
    %142 = vector.broadcast %cst_68 : f32 to vector<18x64xf32>
    %143 = arith.mulf %142, %141 : vector<18x64xf32>
    %cst_69 = arith.constant 1.000000e+00 : f32
    %144 = vector.broadcast %cst_69 : f32 to vector<18x64xf32>
    %145 = arith.addf %144, %143 : vector<18x64xf32>
    %cst_70 = arith.constant 1.000000e+00 : f32
    %146 = vector.broadcast %cst_70 : f32 to vector<18x64xf32>
    %147 = arith.divf %146, %145 : vector<18x64xf32>
    %cst_71 = arith.constant 1.06140542 : f32
    %148 = vector.broadcast %cst_71 : f32 to vector<18x64xf32>
    %149 = arith.mulf %148, %147 : vector<18x64xf32>
    %cst_72 = arith.constant -1.45315206 : f32
    %150 = vector.broadcast %cst_72 : f32 to vector<18x64xf32>
    %151 = arith.addf %149, %150 : vector<18x64xf32>
    %152 = arith.mulf %151, %147 : vector<18x64xf32>
    %cst_73 = arith.constant 1.42141378 : f32
    %153 = vector.broadcast %cst_73 : f32 to vector<18x64xf32>
    %154 = arith.addf %152, %153 : vector<18x64xf32>
    %155 = arith.mulf %154, %147 : vector<18x64xf32>
    %cst_74 = arith.constant -0.284496725 : f32
    %156 = vector.broadcast %cst_74 : f32 to vector<18x64xf32>
    %157 = arith.addf %155, %156 : vector<18x64xf32>
    %158 = arith.mulf %157, %147 : vector<18x64xf32>
    %cst_75 = arith.constant 0.254829586 : f32
    %159 = vector.broadcast %cst_75 : f32 to vector<18x64xf32>
    %160 = arith.addf %158, %159 : vector<18x64xf32>
    %161 = arith.mulf %160, %147 : vector<18x64xf32>
    %cst_76 = arith.constant 0.000000e+00 : f32
    %162 = vector.broadcast %cst_76 : f32 to vector<18x64xf32>
    %163 = arith.subf %162, %141 : vector<18x64xf32>
    %164 = arith.mulf %163, %141 : vector<18x64xf32>
    %165 = math.exp %164 : vector<18x64xf32>
    %166 = arith.mulf %161, %165 : vector<18x64xf32>
    %cst_77 = arith.constant 1.000000e+00 : f32
    %167 = vector.broadcast %cst_77 : f32 to vector<18x64xf32>
    %168 = arith.subf %167, %166 : vector<18x64xf32>
    %169 = arith.mulf %140, %168 : vector<18x64xf32>
    %cst_78 = arith.constant 1.000000e+00 : f32
    %170 = vector.broadcast %cst_78 : f32 to vector<18x64xf32>
    %171 = arith.addf %170, %169 : vector<18x64xf32>
    %172 = arith.mulf %133, %171 : vector<18x64xf32>
    %c0_79 = arith.constant 0 : index
    %c0_80 = arith.constant 0 : index
    %c0_81 = arith.constant 0 : index
    %173 = vector.load %arg13[%c0_79, %c0_80, %c0_81] : memref<2x64x32xf32, #tpu.memory_space<vmem>>, vector<1x64x32xf32>
    %174 = vector.shape_cast %173 : vector<1x64x32xf32> to vector<64x32xf32>
    %cst_82 = arith.constant dense<0.000000e+00> : vector<18x32xf32>
    %175 = tpu.matmul %172, %174, %cst_82 {dimension_numbers = #tpu.dot_dimension_numbers<[1], [0], [0], [1], [0, 0, 1, 1], [], []>} : vector<18x64xf32>, vector<64x32xf32>, vector<18x32xf32> -> vector<18x32xf32>
    %c0_83 = arith.constant 0 : index
    %c0_84 = arith.constant 0 : index
    %c0_85 = arith.constant 0 : index
    %176 = vector.load %arg14[%c0_83, %c0_84, %c0_85] : memref<2x1x32xf32, #tpu.memory_space<vmem>>, vector<1x1x32xf32>
    %177 = vector.shape_cast %176 : vector<1x1x32xf32> to vector<1x32xf32>
    %178 = vector.broadcast %177 : vector<1x32xf32> to vector<18x32xf32>
    %179 = arith.addf %175, %178 : vector<18x32xf32>
    %180 = arith.addf %124, %179 : vector<18x32xf32>
    %c0_86 = arith.constant 0 : index
    %c0_87 = arith.constant 0 : index
    %c0_88 = arith.constant 0 : index
    %181 = vector.load %arg15[%c0_86, %c0_87, %c0_88] : memref<2x1x32xf32, #tpu.memory_space<vmem>>, vector<1x1x32xf32>
    %182 = vector.shape_cast %181 : vector<1x1x32xf32> to vector<1x32xf32>
    %c0_89 = arith.constant 0 : index
    %c0_90 = arith.constant 0 : index
    %c0_91 = arith.constant 0 : index
    %183 = vector.load %arg16[%c0_89, %c0_90, %c0_91] : memref<2x1x32xf32, #tpu.memory_space<vmem>>, vector<1x1x32xf32>
    %184 = vector.shape_cast %183 : vector<1x1x32xf32> to vector<1x32xf32>
    %cst_92 = arith.constant dense<0.000000e+00> : vector<18xf32>
    %185 = vector.multi_reduction <add>, %180, %cst_92 [1] : vector<18x32xf32> to vector<18xf32>
    %186 = vector.shape_cast %185 : vector<18xf32> to vector<18x1xf32>
    %cst_93 = arith.constant 3.200000e+01 : f32
    %187 = vector.broadcast %cst_93 : f32 to vector<18x1xf32>
    %188 = arith.divf %186, %187 : vector<18x1xf32>
    %189 = vector.broadcast %188 : vector<18x1xf32> to vector<18x32xf32>
    %190 = arith.subf %180, %189 : vector<18x32xf32>
    %191 = arith.mulf %190, %190 : vector<18x32xf32>
    %cst_94 = arith.constant dense<0.000000e+00> : vector<18xf32>
    %192 = vector.multi_reduction <add>, %191, %cst_94 [1] : vector<18x32xf32> to vector<18xf32>
    %193 = vector.shape_cast %192 : vector<18xf32> to vector<18x1xf32>
    %cst_95 = arith.constant 3.200000e+01 : f32
    %194 = vector.broadcast %cst_95 : f32 to vector<18x1xf32>
    %195 = arith.divf %193, %194 : vector<18x1xf32>
    %cst_96 = arith.constant 9.99999974E-6 : f32
    %196 = vector.broadcast %cst_96 : f32 to vector<18x1xf32>
    %197 = arith.addf %195, %196 : vector<18x1xf32>
    %198 = math.rsqrt %197 : vector<18x1xf32>
    %199 = vector.broadcast %198 : vector<18x1xf32> to vector<18x32xf32>
    %200 = arith.mulf %190, %199 : vector<18x32xf32>
    %201 = vector.broadcast %182 : vector<1x32xf32> to vector<18x32xf32>
    %202 = arith.mulf %200, %201 : vector<18x32xf32>
    %203 = vector.broadcast %184 : vector<1x32xf32> to vector<18x32xf32>
    %204 = arith.addf %202, %203 : vector<18x32xf32>
    %c1 = arith.constant 1 : index
    %c0_97 = arith.constant 0 : index
    %c0_98 = arith.constant 0 : index
    %205 = vector.load %arg5[%c1, %c0_97, %c0_98] : memref<2x32x96xf32, #tpu.memory_space<vmem>>, vector<1x32x96xf32>
    %206 = vector.shape_cast %205 : vector<1x32x96xf32> to vector<32x96xf32>
    %cst_99 = arith.constant dense<0.000000e+00> : vector<18x96xf32>
    %207 = tpu.matmul %204, %206, %cst_99 {dimension_numbers = #tpu.dot_dimension_numbers<[1], [0], [0], [1], [0, 0, 1, 1], [], []>} : vector<18x32xf32>, vector<32x96xf32>, vector<18x96xf32> -> vector<18x96xf32>
    %c1_100 = arith.constant 1 : index
    %c0_101 = arith.constant 0 : index
    %c0_102 = arith.constant 0 : index
    %208 = vector.load %arg6[%c1_100, %c0_101, %c0_102] : memref<2x1x96xf32, #tpu.memory_space<vmem>>, vector<1x1x96xf32>
    %209 = vector.shape_cast %208 : vector<1x1x96xf32> to vector<1x96xf32>
    %210 = vector.broadcast %209 : vector<1x96xf32> to vector<18x96xf32>
    %211 = arith.addf %207, %210 : vector<18x96xf32>
    %c1_103 = arith.constant 1 : index
    %c0_104 = arith.constant 0 : index
    %c0_105 = arith.constant 0 : index
    %212 = vector.load %arg7[%c1_103, %c0_104, %c0_105] : memref<2x32x32xf32, #tpu.memory_space<vmem>>, vector<1x32x32xf32>
    %213 = vector.shape_cast %212 : vector<1x32x32xf32> to vector<32x32xf32>
    %cst_106 = arith.constant 0.000000e+00 : f32
    %214 = vector.broadcast %cst_106 : f32 to vector<18x32xf32>
    %215 = vector.extract_strided_slice %211 {offsets = [0, 0], sizes = [18, 8], strides = [1, 1]} : vector<18x96xf32> to vector<18x8xf32>
    %216 = vector.extract_strided_slice %211 {offsets = [0, 32], sizes = [18, 8], strides = [1, 1]} : vector<18x96xf32> to vector<18x8xf32>
    %217 = vector.extract_strided_slice %211 {offsets = [0, 64], sizes = [18, 8], strides = [1, 1]} : vector<18x96xf32> to vector<18x8xf32>
    %cst_107 = arith.constant dense<0.000000e+00> : vector<18x18xf32>
    %218 = tpu.matmul %215, %216, %cst_107 {dimension_numbers = #tpu.dot_dimension_numbers<[1], [1], [0], [0], [0, 0, 1, 0], [], []>} : vector<18x8xf32>, vector<18x8xf32>, vector<18x18xf32> -> vector<18x18xf32>
    %cst_108 = arith.constant 0.353553385 : f32
    %219 = vector.broadcast %cst_108 : f32 to vector<18x18xf32>
    %220 = arith.mulf %218, %219 : vector<18x18xf32>
    %221 = arith.addf %220, %5 : vector<18x18xf32>
    %cst_109 = arith.constant dense<0xFF800000> : vector<18xf32>
    %222 = vector.multi_reduction <maximumf>, %221, %cst_109 [1] : vector<18x18xf32> to vector<18xf32>
    %223 = vector.shape_cast %222 : vector<18xf32> to vector<18x1xf32>
    %224 = vector.broadcast %223 : vector<18x1xf32> to vector<18x18xf32>
    %225 = arith.subf %221, %224 : vector<18x18xf32>
    %226 = math.exp %225 : vector<18x18xf32>
    %cst_110 = arith.constant dense<0.000000e+00> : vector<18xf32>
    %227 = vector.multi_reduction <add>, %226, %cst_110 [1] : vector<18x18xf32> to vector<18xf32>
    %228 = vector.shape_cast %227 : vector<18xf32> to vector<18x1xf32>
    %229 = vector.broadcast %228 : vector<18x1xf32> to vector<18x18xf32>
    %230 = arith.divf %226, %229 : vector<18x18xf32>
    %cst_111 = arith.constant dense<0.000000e+00> : vector<18x8xf32>
    %231 = tpu.matmul %230, %217, %cst_111 {dimension_numbers = #tpu.dot_dimension_numbers<[1], [0], [0], [1], [0, 0, 1, 1], [], []>} : vector<18x18xf32>, vector<18x8xf32>, vector<18x8xf32> -> vector<18x8xf32>
    %232 = vector.extract_strided_slice %213 {offsets = [0, 0], sizes = [8, 32], strides = [1, 1]} : vector<32x32xf32> to vector<8x32xf32>
    %cst_112 = arith.constant dense<0.000000e+00> : vector<18x32xf32>
    %233 = tpu.matmul %231, %232, %cst_112 {dimension_numbers = #tpu.dot_dimension_numbers<[1], [0], [0], [1], [0, 0, 1, 1], [], []>} : vector<18x8xf32>, vector<8x32xf32>, vector<18x32xf32> -> vector<18x32xf32>
    %234 = arith.addf %214, %233 : vector<18x32xf32>
    %235 = vector.extract_strided_slice %211 {offsets = [0, 8], sizes = [18, 8], strides = [1, 1]} : vector<18x96xf32> to vector<18x8xf32>
    %236 = vector.extract_strided_slice %211 {offsets = [0, 40], sizes = [18, 8], strides = [1, 1]} : vector<18x96xf32> to vector<18x8xf32>
    %237 = vector.extract_strided_slice %211 {offsets = [0, 72], sizes = [18, 8], strides = [1, 1]} : vector<18x96xf32> to vector<18x8xf32>
    %cst_113 = arith.constant dense<0.000000e+00> : vector<18x18xf32>
    %238 = tpu.matmul %235, %236, %cst_113 {dimension_numbers = #tpu.dot_dimension_numbers<[1], [1], [0], [0], [0, 0, 1, 0], [], []>} : vector<18x8xf32>, vector<18x8xf32>, vector<18x18xf32> -> vector<18x18xf32>
    %cst_114 = arith.constant 0.353553385 : f32
    %239 = vector.broadcast %cst_114 : f32 to vector<18x18xf32>
    %240 = arith.mulf %238, %239 : vector<18x18xf32>
    %241 = arith.addf %240, %5 : vector<18x18xf32>
    %cst_115 = arith.constant dense<0xFF800000> : vector<18xf32>
    %242 = vector.multi_reduction <maximumf>, %241, %cst_115 [1] : vector<18x18xf32> to vector<18xf32>
    %243 = vector.shape_cast %242 : vector<18xf32> to vector<18x1xf32>
    %244 = vector.broadcast %243 : vector<18x1xf32> to vector<18x18xf32>
    %245 = arith.subf %241, %244 : vector<18x18xf32>
    %246 = math.exp %245 : vector<18x18xf32>
    %cst_116 = arith.constant dense<0.000000e+00> : vector<18xf32>
    %247 = vector.multi_reduction <add>, %246, %cst_116 [1] : vector<18x18xf32> to vector<18xf32>
    %248 = vector.shape_cast %247 : vector<18xf32> to vector<18x1xf32>
    %249 = vector.broadcast %248 : vector<18x1xf32> to vector<18x18xf32>
    %250 = arith.divf %246, %249 : vector<18x18xf32>
    %cst_117 = arith.constant dense<0.000000e+00> : vector<18x8xf32>
    %251 = tpu.matmul %250, %237, %cst_117 {dimension_numbers = #tpu.dot_dimension_numbers<[1], [0], [0], [1], [0, 0, 1, 1], [], []>} : vector<18x18xf32>, vector<18x8xf32>, vector<18x8xf32> -> vector<18x8xf32>
    %252 = vector.extract_strided_slice %213 {offsets = [8, 0], sizes = [8, 32], strides = [1, 1]} : vector<32x32xf32> to vector<8x32xf32>
    %cst_118 = arith.constant dense<0.000000e+00> : vector<18x32xf32>
    %253 = tpu.matmul %251, %252, %cst_118 {dimension_numbers = #tpu.dot_dimension_numbers<[1], [0], [0], [1], [0, 0, 1, 1], [], []>} : vector<18x8xf32>, vector<8x32xf32>, vector<18x32xf32> -> vector<18x32xf32>
    %254 = arith.addf %234, %253 : vector<18x32xf32>
    %255 = vector.extract_strided_slice %211 {offsets = [0, 16], sizes = [18, 8], strides = [1, 1]} : vector<18x96xf32> to vector<18x8xf32>
    %256 = vector.extract_strided_slice %211 {offsets = [0, 48], sizes = [18, 8], strides = [1, 1]} : vector<18x96xf32> to vector<18x8xf32>
    %257 = vector.extract_strided_slice %211 {offsets = [0, 80], sizes = [18, 8], strides = [1, 1]} : vector<18x96xf32> to vector<18x8xf32>
    %cst_119 = arith.constant dense<0.000000e+00> : vector<18x18xf32>
    %258 = tpu.matmul %255, %256, %cst_119 {dimension_numbers = #tpu.dot_dimension_numbers<[1], [1], [0], [0], [0, 0, 1, 0], [], []>} : vector<18x8xf32>, vector<18x8xf32>, vector<18x18xf32> -> vector<18x18xf32>
    %cst_120 = arith.constant 0.353553385 : f32
    %259 = vector.broadcast %cst_120 : f32 to vector<18x18xf32>
    %260 = arith.mulf %258, %259 : vector<18x18xf32>
    %261 = arith.addf %260, %5 : vector<18x18xf32>
    %cst_121 = arith.constant dense<0xFF800000> : vector<18xf32>
    %262 = vector.multi_reduction <maximumf>, %261, %cst_121 [1] : vector<18x18xf32> to vector<18xf32>
    %263 = vector.shape_cast %262 : vector<18xf32> to vector<18x1xf32>
    %264 = vector.broadcast %263 : vector<18x1xf32> to vector<18x18xf32>
    %265 = arith.subf %261, %264 : vector<18x18xf32>
    %266 = math.exp %265 : vector<18x18xf32>
    %cst_122 = arith.constant dense<0.000000e+00> : vector<18xf32>
    %267 = vector.multi_reduction <add>, %266, %cst_122 [1] : vector<18x18xf32> to vector<18xf32>
    %268 = vector.shape_cast %267 : vector<18xf32> to vector<18x1xf32>
    %269 = vector.broadcast %268 : vector<18x1xf32> to vector<18x18xf32>
    %270 = arith.divf %266, %269 : vector<18x18xf32>
    %cst_123 = arith.constant dense<0.000000e+00> : vector<18x8xf32>
    %271 = tpu.matmul %270, %257, %cst_123 {dimension_numbers = #tpu.dot_dimension_numbers<[1], [0], [0], [1], [0, 0, 1, 1], [], []>} : vector<18x18xf32>, vector<18x8xf32>, vector<18x8xf32> -> vector<18x8xf32>
    %272 = vector.extract_strided_slice %213 {offsets = [16, 0], sizes = [8, 32], strides = [1, 1]} : vector<32x32xf32> to vector<8x32xf32>
    %cst_124 = arith.constant dense<0.000000e+00> : vector<18x32xf32>
    %273 = tpu.matmul %271, %272, %cst_124 {dimension_numbers = #tpu.dot_dimension_numbers<[1], [0], [0], [1], [0, 0, 1, 1], [], []>} : vector<18x8xf32>, vector<8x32xf32>, vector<18x32xf32> -> vector<18x32xf32>
    %274 = arith.addf %254, %273 : vector<18x32xf32>
    %275 = vector.extract_strided_slice %211 {offsets = [0, 24], sizes = [18, 8], strides = [1, 1]} : vector<18x96xf32> to vector<18x8xf32>
    %276 = vector.extract_strided_slice %211 {offsets = [0, 56], sizes = [18, 8], strides = [1, 1]} : vector<18x96xf32> to vector<18x8xf32>
    %277 = vector.extract_strided_slice %211 {offsets = [0, 88], sizes = [18, 8], strides = [1, 1]} : vector<18x96xf32> to vector<18x8xf32>
    %cst_125 = arith.constant dense<0.000000e+00> : vector<18x18xf32>
    %278 = tpu.matmul %275, %276, %cst_125 {dimension_numbers = #tpu.dot_dimension_numbers<[1], [1], [0], [0], [0, 0, 1, 0], [], []>} : vector<18x8xf32>, vector<18x8xf32>, vector<18x18xf32> -> vector<18x18xf32>
    %cst_126 = arith.constant 0.353553385 : f32
    %279 = vector.broadcast %cst_126 : f32 to vector<18x18xf32>
    %280 = arith.mulf %278, %279 : vector<18x18xf32>
    %281 = arith.addf %280, %5 : vector<18x18xf32>
    %cst_127 = arith.constant dense<0xFF800000> : vector<18xf32>
    %282 = vector.multi_reduction <maximumf>, %281, %cst_127 [1] : vector<18x18xf32> to vector<18xf32>
    %283 = vector.shape_cast %282 : vector<18xf32> to vector<18x1xf32>
    %284 = vector.broadcast %283 : vector<18x1xf32> to vector<18x18xf32>
    %285 = arith.subf %281, %284 : vector<18x18xf32>
    %286 = math.exp %285 : vector<18x18xf32>
    %cst_128 = arith.constant dense<0.000000e+00> : vector<18xf32>
    %287 = vector.multi_reduction <add>, %286, %cst_128 [1] : vector<18x18xf32> to vector<18xf32>
    %288 = vector.shape_cast %287 : vector<18xf32> to vector<18x1xf32>
    %289 = vector.broadcast %288 : vector<18x1xf32> to vector<18x18xf32>
    %290 = arith.divf %286, %289 : vector<18x18xf32>
    %cst_129 = arith.constant dense<0.000000e+00> : vector<18x8xf32>
    %291 = tpu.matmul %290, %277, %cst_129 {dimension_numbers = #tpu.dot_dimension_numbers<[1], [0], [0], [1], [0, 0, 1, 1], [], []>} : vector<18x18xf32>, vector<18x8xf32>, vector<18x8xf32> -> vector<18x8xf32>
    %292 = vector.extract_strided_slice %213 {offsets = [24, 0], sizes = [8, 32], strides = [1, 1]} : vector<32x32xf32> to vector<8x32xf32>
    %cst_130 = arith.constant dense<0.000000e+00> : vector<18x32xf32>
    %293 = tpu.matmul %291, %292, %cst_130 {dimension_numbers = #tpu.dot_dimension_numbers<[1], [0], [0], [1], [0, 0, 1, 1], [], []>} : vector<18x8xf32>, vector<8x32xf32>, vector<18x32xf32> -> vector<18x32xf32>
    %294 = arith.addf %274, %293 : vector<18x32xf32>
    %c1_131 = arith.constant 1 : index
    %c0_132 = arith.constant 0 : index
    %c0_133 = arith.constant 0 : index
    %295 = vector.load %arg8[%c1_131, %c0_132, %c0_133] : memref<2x1x32xf32, #tpu.memory_space<vmem>>, vector<1x1x32xf32>
    %296 = vector.shape_cast %295 : vector<1x1x32xf32> to vector<1x32xf32>
    %297 = vector.broadcast %296 : vector<1x32xf32> to vector<18x32xf32>
    %298 = arith.addf %294, %297 : vector<18x32xf32>
    %299 = arith.addf %204, %298 : vector<18x32xf32>
    %c1_134 = arith.constant 1 : index
    %c0_135 = arith.constant 0 : index
    %c0_136 = arith.constant 0 : index
    %300 = vector.load %arg9[%c1_134, %c0_135, %c0_136] : memref<2x1x32xf32, #tpu.memory_space<vmem>>, vector<1x1x32xf32>
    %301 = vector.shape_cast %300 : vector<1x1x32xf32> to vector<1x32xf32>
    %c1_137 = arith.constant 1 : index
    %c0_138 = arith.constant 0 : index
    %c0_139 = arith.constant 0 : index
    %302 = vector.load %arg10[%c1_137, %c0_138, %c0_139] : memref<2x1x32xf32, #tpu.memory_space<vmem>>, vector<1x1x32xf32>
    %303 = vector.shape_cast %302 : vector<1x1x32xf32> to vector<1x32xf32>
    %cst_140 = arith.constant dense<0.000000e+00> : vector<18xf32>
    %304 = vector.multi_reduction <add>, %299, %cst_140 [1] : vector<18x32xf32> to vector<18xf32>
    %305 = vector.shape_cast %304 : vector<18xf32> to vector<18x1xf32>
    %cst_141 = arith.constant 3.200000e+01 : f32
    %306 = vector.broadcast %cst_141 : f32 to vector<18x1xf32>
    %307 = arith.divf %305, %306 : vector<18x1xf32>
    %308 = vector.broadcast %307 : vector<18x1xf32> to vector<18x32xf32>
    %309 = arith.subf %299, %308 : vector<18x32xf32>
    %310 = arith.mulf %309, %309 : vector<18x32xf32>
    %cst_142 = arith.constant dense<0.000000e+00> : vector<18xf32>
    %311 = vector.multi_reduction <add>, %310, %cst_142 [1] : vector<18x32xf32> to vector<18xf32>
    %312 = vector.shape_cast %311 : vector<18xf32> to vector<18x1xf32>
    %cst_143 = arith.constant 3.200000e+01 : f32
    %313 = vector.broadcast %cst_143 : f32 to vector<18x1xf32>
    %314 = arith.divf %312, %313 : vector<18x1xf32>
    %cst_144 = arith.constant 9.99999974E-6 : f32
    %315 = vector.broadcast %cst_144 : f32 to vector<18x1xf32>
    %316 = arith.addf %314, %315 : vector<18x1xf32>
    %317 = math.rsqrt %316 : vector<18x1xf32>
    %318 = vector.broadcast %317 : vector<18x1xf32> to vector<18x32xf32>
    %319 = arith.mulf %309, %318 : vector<18x32xf32>
    %320 = vector.broadcast %301 : vector<1x32xf32> to vector<18x32xf32>
    %321 = arith.mulf %319, %320 : vector<18x32xf32>
    %322 = vector.broadcast %303 : vector<1x32xf32> to vector<18x32xf32>
    %323 = arith.addf %321, %322 : vector<18x32xf32>
    %c1_145 = arith.constant 1 : index
    %c0_146 = arith.constant 0 : index
    %c0_147 = arith.constant 0 : index
    %324 = vector.load %arg11[%c1_145, %c0_146, %c0_147] : memref<2x32x64xf32, #tpu.memory_space<vmem>>, vector<1x32x64xf32>
    %325 = vector.shape_cast %324 : vector<1x32x64xf32> to vector<32x64xf32>
    %cst_148 = arith.constant dense<0.000000e+00> : vector<18x64xf32>
    %326 = tpu.matmul %323, %325, %cst_148 {dimension_numbers = #tpu.dot_dimension_numbers<[1], [0], [0], [1], [0, 0, 1, 1], [], []>} : vector<18x32xf32>, vector<32x64xf32>, vector<18x64xf32> -> vector<18x64xf32>
    %c1_149 = arith.constant 1 : index
    %c0_150 = arith.constant 0 : index
    %c0_151 = arith.constant 0 : index
    %327 = vector.load %arg12[%c1_149, %c0_150, %c0_151] : memref<2x1x64xf32, #tpu.memory_space<vmem>>, vector<1x1x64xf32>
    %328 = vector.shape_cast %327 : vector<1x1x64xf32> to vector<1x64xf32>
    %329 = vector.broadcast %328 : vector<1x64xf32> to vector<18x64xf32>
    %330 = arith.addf %326, %329 : vector<18x64xf32>
    %cst_152 = arith.constant 5.000000e-01 : f32
    %331 = vector.broadcast %cst_152 : f32 to vector<18x64xf32>
    %332 = arith.mulf %331, %330 : vector<18x64xf32>
    %cst_153 = arith.constant 0.707106769 : f32
    %333 = vector.broadcast %cst_153 : f32 to vector<18x64xf32>
    %334 = arith.mulf %330, %333 : vector<18x64xf32>
    %cst_154 = arith.constant 0.000000e+00 : f32
    %335 = vector.broadcast %cst_154 : f32 to vector<18x64xf32>
    %336 = arith.cmpf oge, %334, %335 : vector<18x64xf32>
    %cst_155 = arith.constant 1.000000e+00 : f32
    %cst_156 = arith.constant -1.000000e+00 : f32
    %337 = vector.broadcast %cst_155 : f32 to vector<18x64xf32>
    %338 = vector.broadcast %cst_156 : f32 to vector<18x64xf32>
    %339 = arith.select %336, %337, %338 : vector<18x64xi1>, vector<18x64xf32>
    %340 = math.absf %334 : vector<18x64xf32>
    %cst_157 = arith.constant 0.327591091 : f32
    %341 = vector.broadcast %cst_157 : f32 to vector<18x64xf32>
    %342 = arith.mulf %341, %340 : vector<18x64xf32>
    %cst_158 = arith.constant 1.000000e+00 : f32
    %343 = vector.broadcast %cst_158 : f32 to vector<18x64xf32>
    %344 = arith.addf %343, %342 : vector<18x64xf32>
    %cst_159 = arith.constant 1.000000e+00 : f32
    %345 = vector.broadcast %cst_159 : f32 to vector<18x64xf32>
    %346 = arith.divf %345, %344 : vector<18x64xf32>
    %cst_160 = arith.constant 1.06140542 : f32
    %347 = vector.broadcast %cst_160 : f32 to vector<18x64xf32>
    %348 = arith.mulf %347, %346 : vector<18x64xf32>
    %cst_161 = arith.constant -1.45315206 : f32
    %349 = vector.broadcast %cst_161 : f32 to vector<18x64xf32>
    %350 = arith.addf %348, %349 : vector<18x64xf32>
    %351 = arith.mulf %350, %346 : vector<18x64xf32>
    %cst_162 = arith.constant 1.42141378 : f32
    %352 = vector.broadcast %cst_162 : f32 to vector<18x64xf32>
    %353 = arith.addf %351, %352 : vector<18x64xf32>
    %354 = arith.mulf %353, %346 : vector<18x64xf32>
    %cst_163 = arith.constant -0.284496725 : f32
    %355 = vector.broadcast %cst_163 : f32 to vector<18x64xf32>
    %356 = arith.addf %354, %355 : vector<18x64xf32>
    %357 = arith.mulf %356, %346 : vector<18x64xf32>
    %cst_164 = arith.constant 0.254829586 : f32
    %358 = vector.broadcast %cst_164 : f32 to vector<18x64xf32>
    %359 = arith.addf %357, %358 : vector<18x64xf32>
    %360 = arith.mulf %359, %346 : vector<18x64xf32>
    %cst_165 = arith.constant 0.000000e+00 : f32
    %361 = vector.broadcast %cst_165 : f32 to vector<18x64xf32>
    %362 = arith.subf %361, %340 : vector<18x64xf32>
    %363 = arith.mulf %362, %340 : vector<18x64xf32>
    %364 = math.exp %363 : vector<18x64xf32>
    %365 = arith.mulf %360, %364 : vector<18x64xf32>
    %cst_166 = arith.constant 1.000000e+00 : f32
    %366 = vector.broadcast %cst_166 : f32 to vector<18x64xf32>
    %367 = arith.subf %366, %365 : vector<18x64xf32>
    %368 = arith.mulf %339, %367 : vector<18x64xf32>
    %cst_167 = arith.constant 1.000000e+00 : f32
    %369 = vector.broadcast %cst_167 : f32 to vector<18x64xf32>
    %370 = arith.addf %369, %368 : vector<18x64xf32>
    %371 = arith.mulf %332, %370 : vector<18x64xf32>
    %c1_168 = arith.constant 1 : index
    %c0_169 = arith.constant 0 : index
    %c0_170 = arith.constant 0 : index
    %372 = vector.load %arg13[%c1_168, %c0_169, %c0_170] : memref<2x64x32xf32, #tpu.memory_space<vmem>>, vector<1x64x32xf32>
    %373 = vector.shape_cast %372 : vector<1x64x32xf32> to vector<64x32xf32>
    %cst_171 = arith.constant dense<0.000000e+00> : vector<18x32xf32>
    %374 = tpu.matmul %371, %373, %cst_171 {dimension_numbers = #tpu.dot_dimension_numbers<[1], [0], [0], [1], [0, 0, 1, 1], [], []>} : vector<18x64xf32>, vector<64x32xf32>, vector<18x32xf32> -> vector<18x32xf32>
    %c1_172 = arith.constant 1 : index
    %c0_173 = arith.constant 0 : index
    %c0_174 = arith.constant 0 : index
    %375 = vector.load %arg14[%c1_172, %c0_173, %c0_174] : memref<2x1x32xf32, #tpu.memory_space<vmem>>, vector<1x1x32xf32>
    %376 = vector.shape_cast %375 : vector<1x1x32xf32> to vector<1x32xf32>
    %377 = vector.broadcast %376 : vector<1x32xf32> to vector<18x32xf32>
    %378 = arith.addf %374, %377 : vector<18x32xf32>
    %379 = arith.addf %323, %378 : vector<18x32xf32>
    %c1_175 = arith.constant 1 : index
    %c0_176 = arith.constant 0 : index
    %c0_177 = arith.constant 0 : index
    %380 = vector.load %arg15[%c1_175, %c0_176, %c0_177] : memref<2x1x32xf32, #tpu.memory_space<vmem>>, vector<1x1x32xf32>
    %381 = vector.shape_cast %380 : vector<1x1x32xf32> to vector<1x32xf32>
    %c1_178 = arith.constant 1 : index
    %c0_179 = arith.constant 0 : index
    %c0_180 = arith.constant 0 : index
    %382 = vector.load %arg16[%c1_178, %c0_179, %c0_180] : memref<2x1x32xf32, #tpu.memory_space<vmem>>, vector<1x1x32xf32>
    %383 = vector.shape_cast %382 : vector<1x1x32xf32> to vector<1x32xf32>
    %cst_181 = arith.constant dense<0.000000e+00> : vector<18xf32>
    %384 = vector.multi_reduction <add>, %379, %cst_181 [1] : vector<18x32xf32> to vector<18xf32>
    %385 = vector.shape_cast %384 : vector<18xf32> to vector<18x1xf32>
    %cst_182 = arith.constant 3.200000e+01 : f32
    %386 = vector.broadcast %cst_182 : f32 to vector<18x1xf32>
    %387 = arith.divf %385, %386 : vector<18x1xf32>
    %388 = vector.broadcast %387 : vector<18x1xf32> to vector<18x32xf32>
    %389 = arith.subf %379, %388 : vector<18x32xf32>
    %390 = arith.mulf %389, %389 : vector<18x32xf32>
    %cst_183 = arith.constant dense<0.000000e+00> : vector<18xf32>
    %391 = vector.multi_reduction <add>, %390, %cst_183 [1] : vector<18x32xf32> to vector<18xf32>
    %392 = vector.shape_cast %391 : vector<18xf32> to vector<18x1xf32>
    %cst_184 = arith.constant 3.200000e+01 : f32
    %393 = vector.broadcast %cst_184 : f32 to vector<18x1xf32>
    %394 = arith.divf %392, %393 : vector<18x1xf32>
    %cst_185 = arith.constant 9.99999974E-6 : f32
    %395 = vector.broadcast %cst_185 : f32 to vector<18x1xf32>
    %396 = arith.addf %394, %395 : vector<18x1xf32>
    %397 = math.rsqrt %396 : vector<18x1xf32>
    %398 = vector.broadcast %397 : vector<18x1xf32> to vector<18x32xf32>
    %399 = arith.mulf %389, %398 : vector<18x32xf32>
    %400 = vector.broadcast %381 : vector<1x32xf32> to vector<18x32xf32>
    %401 = arith.mulf %399, %400 : vector<18x32xf32>
    %402 = vector.broadcast %383 : vector<1x32xf32> to vector<18x32xf32>
    %403 = arith.addf %401, %402 : vector<18x32xf32>
    %c0_186 = arith.constant 0 : index
    %c0_187 = arith.constant 0 : index
    %404 = vector.load %arg4[%c0_186, %c0_187] : memref<2x18xf32, #tpu.memory_space<vmem>>, vector<2x18xf32>
    %cst_188 = arith.constant dense<0.000000e+00> : vector<2x32xf32>
    %405 = tpu.matmul %404, %403, %cst_188 {dimension_numbers = #tpu.dot_dimension_numbers<[1], [0], [0], [1], [0, 0, 1, 1], [], []>} : vector<2x18xf32>, vector<18x32xf32>, vector<2x32xf32> -> vector<2x32xf32>
    %c0_189 = arith.constant 0 : index
    %c0_190 = arith.constant 0 : index
    %406 = vector.load %arg17[%c0_189, %c0_190] : memref<1x32xf32, #tpu.memory_space<vmem>>, vector<1x32xf32>
    %c0_191 = arith.constant 0 : index
    %c0_192 = arith.constant 0 : index
    %407 = vector.load %arg18[%c0_191, %c0_192] : memref<1x32xf32, #tpu.memory_space<vmem>>, vector<1x32xf32>
    %cst_193 = arith.constant dense<0.000000e+00> : vector<2xf32>
    %408 = vector.multi_reduction <add>, %405, %cst_193 [1] : vector<2x32xf32> to vector<2xf32>
    %409 = vector.shape_cast %408 : vector<2xf32> to vector<2x1xf32>
    %cst_194 = arith.constant 3.200000e+01 : f32
    %410 = vector.broadcast %cst_194 : f32 to vector<2x1xf32>
    %411 = arith.divf %409, %410 : vector<2x1xf32>
    %412 = vector.broadcast %411 : vector<2x1xf32> to vector<2x32xf32>
    %413 = arith.subf %405, %412 : vector<2x32xf32>
    %414 = arith.mulf %413, %413 : vector<2x32xf32>
    %cst_195 = arith.constant dense<0.000000e+00> : vector<2xf32>
    %415 = vector.multi_reduction <add>, %414, %cst_195 [1] : vector<2x32xf32> to vector<2xf32>
    %416 = vector.shape_cast %415 : vector<2xf32> to vector<2x1xf32>
    %cst_196 = arith.constant 3.200000e+01 : f32
    %417 = vector.broadcast %cst_196 : f32 to vector<2x1xf32>
    %418 = arith.divf %416, %417 : vector<2x1xf32>
    %cst_197 = arith.constant 9.99999997E-7 : f32
    %419 = vector.broadcast %cst_197 : f32 to vector<2x1xf32>
    %420 = arith.addf %418, %419 : vector<2x1xf32>
    %421 = math.rsqrt %420 : vector<2x1xf32>
    %422 = vector.broadcast %421 : vector<2x1xf32> to vector<2x32xf32>
    %423 = arith.mulf %413, %422 : vector<2x32xf32>
    %424 = vector.broadcast %406 : vector<1x32xf32> to vector<2x32xf32>
    %425 = arith.mulf %423, %424 : vector<2x32xf32>
    %426 = vector.broadcast %407 : vector<1x32xf32> to vector<2x32xf32>
    %427 = arith.addf %425, %426 : vector<2x32xf32>
    %c0_198 = arith.constant 0 : index
    %c0_199 = arith.constant 0 : index
    %428 = vector.load %arg19[%c0_198, %c0_199] : memref<32x1xf32, #tpu.memory_space<vmem>>, vector<32x1xf32>
    %cst_200 = arith.constant dense<0.000000e+00> : vector<2x1xf32>
    %429 = tpu.matmul %427, %428, %cst_200 {dimension_numbers = #tpu.dot_dimension_numbers<[1], [0], [0], [1], [0, 0, 1, 1], [], []>} : vector<2x32xf32>, vector<32x1xf32>, vector<2x1xf32> -> vector<2x1xf32>
    %c0_201 = arith.constant 0 : index
    %c0_202 = arith.constant 0 : index
    %430 = vector.load %arg20[%c0_201, %c0_202] : memref<1x1xf32, #tpu.memory_space<vmem>>, vector<1x1xf32>
    %431 = vector.broadcast %430 : vector<1x1xf32> to vector<2x1xf32>
    %432 = arith.addf %429, %431 : vector<2x1xf32>
    %c0_203 = arith.constant 0 : index
    %c0_204 = arith.constant 0 : index
    %433 = vector.load %arg21[%c0_203, %c0_204] : memref<2x1xf32, #tpu.memory_space<vmem>>, vector<2x1xf32>
    tpu.vector_store %arg21[%c0_203, %c0_204], %432 {strides = array<i32>} : memref<2x1xf32, #tpu.memory_space<vmem>>, vector<2x1xf32>,
    return
  }
}

</mosaic_0001>

<bundles_post_ra>
// kernel: tile.9
= control target key start
LH: loop header
LB: loop body
LE: loop exit
PB: predicated region body
PF: predicated region fallthrough
CT: control target
= control target key end

     0   :  { %vm3_vm0 = vcmask 261120   ;;  %s6_s6 = smov 3  ;;  %s48_s0 = inlined_call_operand.vmem [shape: f32[2,9,32], index: 0, kind: input, shape index: {}]   ;;  %s49_s1 = inlined_call_operand.vmem [shape: f32[18,32], index: 1, kind: output, shape index: {}]  }
   0x1   :  { %v2_v0 = vld [vmem:[%s48_s0] sm:$0xff]   ;;  %v18_v2 = vld [vmem:[%s48_s0 + $0x11] sm:$0xff]  }
   0x2   :  { %v16_v1 = vld [vmem:[%s48_s0 + $0x8] ss:$8 sm:%s6_s6]   ;;  %4 = vst.msk [vmem:[%s49_s1] sm:$0xff] %vm3_vm0, %v2_v0  }
   0x3   :  { %17 = vst.msk [vmem:[%s49_s1 + $0x8] sm:$0x3] %vm3_vm0, %v16_v1  }
   0x4   :  { %19 = vst.msk [vmem:[%s49_s1 + $0xa] sm:$0xff] %vm3_vm0, %v18_v2  }

// kernel: vvt_forward.1
= control target key start
LH: loop header
LB: loop body
LE: loop exit
PB: predicated region body
PF: predicated region fallthrough
CT: control target
= control target key end

     0   :  { %vm129_vm0 = vcmask 261120   ;;  %vm178_vm1 = vcmask 64512   ;;  %vm223_vm2 = vcmask 146432   ;;  %vm230_vm3 = vcmask 140288   ;;  %s3150_s23 = smov 64   ;;  %s3152_s24 = smov 120   ;;  %s4284_s1 = inlined_call_operand.vmem [shape: f32[128,32], index: 1, kind: input, shape index: {}]   ;;  %s4285_s5 = inlined_call_operand.vmem [shape: f32[2,32,96], index: 5, kind: input, shape index: {}]   ;;  %s4286_s0 = inlined_call_operand.vmem [shape: f32[18,128], index: 0, kind: input, shape index: {}]   ;;  %s4287_s6 = inlined_call_operand.vmem [shape: f32[2,1,96], index: 6, kind: input, shape index: {}]   ;;  %s4288_s2 = inlined_call_operand.vmem [shape: f32[18,32], index: 2, kind: input, shape index: {}]   ;;  %s4289_s3 = inlined_call_operand.vmem [shape: f32[18,18], index: 3, kind: input, shape index: {}]   ;;  %s4290_s7 = inlined_call_operand.vmem [shape: f32[2,32,32], index: 7, kind: input, shape index: {}]   ;;  %s4291_s8 = inlined_call_operand.vmem [shape: f32[2,1,32], index: 8, kind: input, shape index: {}]   ;;  %s4292_s9 = inlined_call_operand.vmem [shape: f32[2,1,32], index: 9, kind: input, shape index: {}]   ;;  %s4293_s10 = inlined_call_operand.vmem [shape: f32[2,1,32], index: 10, kind: input, shape index: {}]   ;;  %s4294_s12 = inlined_call_operand.vmem [shape: f32[2,1,64], index: 12, kind: input, shape index: {}]   ;;  %s4295_s11 = inlined_call_operand.vmem [shape: f32[2,32,64], index: 11, kind: input, shape index: {}]   ;;  %s4296_s14 = inlined_call_operand.vmem [shape: f32[2,1,32], index: 14, kind: input, shape index: {}]   ;;  %s4297_s13 = inlined_call_operand.vmem [shape: f32[2,64,32], index: 13, kind: input, shape index: {}]   ;;  %s4298_s15 = inlined_call_operand.vmem [shape: f32[2,1,32], index: 15, kind: input, shape index: {}]   ;;  %s4299_s16 = inlined_call_operand.vmem [shape: f32[2,1,32], index: 16, kind: input, shape index: {}]   ;;  %s4300_s4 = inlined_call_operand.vmem [shape: f32[2,18], index: 4, kind: input, shape index: {}]   ;;  %s4301_s17 = inlined_call_operand.vmem [shape: f32[1,32], index: 17, kind: input, shape index: {}]   ;;  %s4302_s18 = inlined_call_operand.vmem [shape: f32[1,32], index: 18, kind: input, shape index: {}]   ;;  %s4303_s19 = inlined_call_operand.vmem [shape: f32[32,1], index: 19, kind: input, shape index: {}]   ;;  %s4304_s20 = inlined_call_operand.<no memory space> [shape: f32[1,1], index: 20, kind: input, shape index: {}]   ;;  %s4305_s21 = inlined_call_operand.vmem [shape: f32[2,1], index: 21, kind: output, shape index: {}]  }
   0x1   :  { %4326 = sst [smem:[#allocation3_spill]] %s4284_s1  ;;  %s4318_s25 = smov 104   ;;  %vm314_vm4 = vcmask 1041408  }
   0x2   :  { %4327 = sst [smem:[#allocation4_spill]] %s4285_s5  ;;  %s4324_s28 = smov 112  }
   0x3   :  { %4328 = sst [smem:[#allocation5_spill]] %s4286_s0  ;;  %s3153_s0 = smov 80  }
   0x4   :  { %4329 = sst [smem:[#allocation6_spill]] %s4287_s6  ;;  %s3149_s6 = smov 96  }
   0x5   :  { %4330 = sst [smem:[#allocation7_spill]] %s4288_s2  ;;  %s4316_s1 = smov 56  }
   0x6   :  { %4331 = sst [smem:[#allocation8_spill]] %s4289_s3  ;;  %s4312_s22 = smov 48  }
   0x7   :  { %s4332_s26 = sld [smem:[#allocation3_spill]]  ;;  %s4314_s2 = smov 40  }
   0x8   :  { %s4333_s30 = sld [smem:[#allocation4_spill]] }
   0x9   :  { %s4334_s5 = sld [smem:[#allocation5_spill]] }
   0xa   :  { %s4335_s3 = sld [smem:[#allocation7_spill]] }
   0xb   :  { %s4336_s27 = sld [smem:[#allocation6_spill]] }
   0xc   :  { %s4337_s29 = sld [smem:[#allocation8_spill]] }
   0xd   :  { %v88_v0 = vld [vmem:[%s4332_s26 + $0x78] sm:$0xff]  ;;  %v87_v1 = vld [vmem:[%s4332_s26 + $0x70] sm:$0xff]  ;;  %v86_v2 = vld [vmem:[%s4332_s26 + $0x68] sm:$0xff] }
   0xe   :  { %92 = vmatpush.msra.mxu0 %v88_v0  ;;  %v85_v3 = vld [vmem:[%s4332_s26 + $0x60] sm:$0xff]  ;;  %v84_v4 = vld [vmem:[%s4332_s26 + $0x58] sm:$0xff]  ;;  %v83_v5 = vld [vmem:[%s4332_s26 + $0x50] sm:$0xff] }
   0xf   :  { %v82_v6 = vld [vmem:[%s4332_s26 + $0x48] sm:$0xff]  ;;  %v81_v7 = vld [vmem:[%s4332_s26 + $0x40] sm:$0xff]  ;;  %v80_v8 = vld [vmem:[%s4332_s26 + $0x38] sm:$0xff] }
  0x10   :  { %93 = vmatpush.msra.mxu0 %v87_v1  ;;  %v79_v9 = vld [vmem:[%s4332_s26 + $0x30] sm:$0xff]  ;;  %v124_v10 = vld [vmem:[%s4333_s30 + $0x18] sm:$0xff]  ;;  %v78_v12 = vld [vmem:[%s4332_s26 + $0x28] sm:$0xff] }
  0x11   :  { %v123_v11 = vld [vmem:[%s4333_s30 + $0x10] sm:$0xff]  ;;  %151 = vmatpush.msra.mxu1 %v124_v10  ;;  %v77_v13 = vld [vmem:[%s4332_s26 + $0x20] sm:$0xff]  ;;  %v76_v14 = vld [vmem:[%s4332_s26 + $0x18] sm:$0xff] }
  0x12   :  { %94 = vmatpush.msra.mxu0 %v86_v2  ;;  %v75_v15 = vld [vmem:[%s4332_s26 + $0x10] sm:$0xff]  ;;  %v74_v16 = vld [vmem:[%s4332_s26 + $0x8] sm:$0xff]  ;;  %v73_v17 = vld [vmem:[%s4332_s26] sm:$0xff]  ;;  %s4320_s26 = smov 72  }
  0x13   :  { %152 = vmatpush.msra.mxu1 %v123_v11  ;;  %v70_v18 = vld [vmem:[%s4334_s5] sm:$0xff]  ;;  %v71_v19 = vld [vmem:[%s4334_s5 + $0x8] sm:$0xff]  ;;  %v72_v20 = vld [vmem:[%s4334_s5 + $0x10] sm:$0x3]  ;;  %s4322_s5 = smov 88  }
  0x14   :  { %95 = vmatpush.msra.mxu0 %v85_v3  ;;  %v122_v21 = vld [vmem:[%s4333_s30 + $0x8] sm:$0xff]  ;;  %v121_v22 = vld [vmem:[%s4333_s30] sm:$0xff]  ;;  %v91_v29 = vld [vmem:[%s4335_s3 + $0x10] sm:$0x3] }
  0x15   :  { %153 = vmatpush.msra.mxu1 %v122_v21  ;;  %v89_v23 = vld [vmem:[%s4335_s3] sm:$0xff]  ;;  %v90_v26 = vld [vmem:[%s4335_s3 + $0x8] sm:$0xff]  ;;  %v3403_v53 = vld [vmem:[%s4337_s29 + $0x10] sm:$0x3] }
  0x16   :  { %96 = vmatpush.msra.mxu0 %v84_v4  ;;  %v2979_v32 = vld [vmem:[%s4336_s27] ss:$0 sm:$0xff]  ;;  %v3396_v48 = vld [vmem:[%s4337_s29 + $0x8] sm:$0xff] }
  0x17   :  { %154 = vmatpush.msra.mxu1 %v121_v22  ;;  %v3389_v43 = vld [vmem:[%s4337_s29] sm:$0xff] }
  0x18   :  { %97 = vmatpush.msra.mxu0 %v83_v5 }
  0x1a   :  { %98 = vmatpush.msra.mxu0 %v82_v6 }
  0x1c   :  { %99 = vmatpush.msra.mxu0 %v81_v7 }
  0x1e   :  { %100 = vmatpush.msra.mxu0 %v80_v8 }
  0x20   :  { %101 = vmatpush.msra.mxu0 %v79_v9 }
  0x22   :  { %102 = vmatpush.msra.mxu0 %v78_v12 }
  0x24   :  { %103 = vmatpush.msra.mxu0 %v77_v13 }
  0x26   :  { %104 = vmatpush.msra.mxu0 %v76_v14 }
  0x28   :  { %105 = vmatpush.msra.mxu0 %v75_v15 }
  0x2a   :  { %106 = vmatpush.msra.mxu0 %v74_v16 }
  0x2c   :  { %107 = vmatpush.msra.mxu0 %v73_v17 }
  0x2d   :  { %108 = vmatmul.f32.vlgmr.msra.gmra.mxu0 %v70_v18 }
  0x35   :  { %111 = vmatmul.f32.gmra.mxu0 %v71_v19 }
  0x3d   :  { %114 = vmatmul.f32.gmra.mxu0 %v72_v20 }
  0xaa   :  { %v109_v24 = vpop.f32.mrf.mxu0 }
  0xab   :  { %v3344_v25 = vadd.f32 %v109_v24, %v89_v23 }
  0xad   :  { %2773 = vmatmul.msk.f32.vlgmr.msra.gmra.mxu1 %vm129_vm0, %v3344_v25 }
  0xb2   :  { %v112_v27 = vpop.f32.mrf.mxu0 }
  0xb3   :  { %v3351_v28 = vadd.f32 %v112_v27, %v90_v26 }
  0xb5   :  { %2774 = vmatmul.msk.f32.gmra.mxu1 %vm129_vm0, %v3351_v28 }
  0xba   :  { %v115_v30 = vpop.f32.mrf.mxu0 }
  0xbb   :  { %v3358_v31 = vadd.f32 %v115_v30, %v91_v29 }
  0xbd   :  { %2775 = vmatmul.msk.f32.gmra.mxu1 %vm129_vm0, %v3358_v31 }
 0x12a   :  { %v156_v33 = vpop.f32.mrf.mxu1 }
 0x12b   :  { %v3365_v34 = vadd.f32 %v2979_v32, %v156_v33 }
 0x12d   :  { %172 = vrot.lane.b32.xlu1 %v3365_v34, %s3149_s6 }
 0x132   :  { %v159_v35 = vpop.f32.mrf.mxu1 }
 0x133   :  { %v3373_v38 = vadd.f32 %v2979_v32, %v159_v35 }
 0x135   :  { %v3409_v57 = vpack.i.bf16 %v3365_v34, %v3373_v38 }
 0x13a   :  { %v162_v36 = vpop.f32.mrf.mxu1 }
 0x13b   :  { %v3369_v37 = vadd.f32 %v2979_v32, %v162_v36 }
 0x13d   :  { %176 = vrot.lane.b32.xlu0 %v3369_v37, %s3149_s6 }
 0x145   :  { %174 = vrot.lane.b32.xlu0 %v3373_v38, %s3149_s6 }
 0x19f   :  { %v173_v41 = vpop.permute.xlu1 %172 }
 0x1af   :  { %v177_v39 = vpop.permute.xlu0 %176 }
 0x1b0   :  { %2776 = vmatpush.xpose.msk.msra.mxu2 %vm178_vm1, %v177_v39 }
 0x1b7   :  { %v175_v40 = vpop.permute.xlu0 %174 }
 0x1b8   :  { %2777 = vmatpush.xpose.msk.msra.mxu2 %vm178_vm1, %v175_v40 }
 0x1bc   :  { %2778 = vmatpush.xpose.msk.msra.mxu2 %vm178_vm1, %v173_v41 }
 0x1bf   :  { %2779 = vmatmul.msk.f32.vlgmr.msra.gmra.mxu2 %vm178_vm1, %v3365_v34 }
 0x1c7   :  { %2780 = vmatmul.msk.f32.gmra.mxu2 %vm178_vm1, %v3373_v38 }
 0x1cf   :  { %2781 = vmatmul.msk.f32.gmra.mxu2 %vm178_vm1, %v3369_v37 }
 0x242   :  { %v208_v42 = vpop.f32.mrf.mxu2 }
 0x243   :  { %v217_v44 = vmul.f32 0.35355338, %v208_v42 }
 0x245   :  { %v220_v45 = vadd.f32 %v217_v44, %v3389_v43 }
 0x247   :  { %v224_v46 = vsel %vm223_vm2, %v220_v45, -inf }
 0x248   :  { %225 = vmax.xlane.f32.xlu1 %v224_v46 }
 0x24a   :  { %v211_v47 = vpop.f32.mrf.mxu2 }
 0x24b   :  { %v218_v49 = vmul.f32 0.35355338, %v211_v47 }
 0x24d   :  { %v221_v50 = vadd.f32 %v218_v49, %v3396_v48 }
 0x24f   :  { %v227_v51 = vsel %vm223_vm2, %v221_v50, -inf }
 0x250   :  { %228 = vmax.xlane.f32.xlu2 %v227_v51 }
 0x252   :  { %v214_v52 = vpop.f32.mrf.mxu2 }
 0x253   :  { %v219_v54 = vmul.f32 0.35355338, %v214_v52 }
 0x255   :  { %v222_v55 = vadd.f32 %v219_v54, %v3403_v53 }
 0x257   :  { %v231_v56 = vsel %vm230_vm3, %v222_v55, -inf }
 0x258   :  { %232 = vmax.xlane.f32.xlu2 %v231_v56 }
 0x261   :  { %2940 = vrot.lane.b32.xlu1 %v3409_v57, %s3150_s23 }
 0x269   :  { %351 = vrot.lane.b32.xlu1 %v3373_v38, %s4322_s5 }
 0x270   :  { %301 = vrot.lane.b32.xlu2 %v3369_v37, %s3150_s23 }
 0x271   :  { %343 = vrot.lane.b32.xlu1 %v3365_v34, %s3152_s24 }
 0x279   :  { %596 = vrot.lane.b32.xlu1 %v3369_v37, %s3153_s0 }
 0x281   :  { %594 = vrot.lane.b32.xlu1 %v3373_v38, %s3153_s0 }
 0x289   :  { %592 = vrot.lane.b32.xlu1 %v3365_v34, %s3153_s0 }
 0x291   :  { %797 = vrot.lane.b32.xlu1 %v3365_v34, %s4318_s25 }
 0x299   :  { %590 = vrot.lane.b32.xlu1 %v3369_v37, %s4324_s28 }
 0x2bb   :  { %v226_v58 = vpop.xlane.xlu1 %225 }
 0x2bc   :  { %v234_v59 = vsub.f32 %v220_v45, %v226_v58  ;;  %v165_v58 = vld [vmem:[%s4290_s7] sm:$0xff] }
 0x2be   :  { %v237_v60 = vmul.f32 1.442695, %v234_v59 }
 0x2c0   :  { %2998 = vpow2.f32 %v237_v60 }
 0x2c3   :  { %v229_v61 = vpop.xlane.xlu2 %228 }
 0x2c4   :  { %v235_v62 = vsub.f32 %v221_v50, %v229_v61 }
 0x2c6   :  { %v3429_v63 = vpop.eup %2998  ;;  %v239_v0 = vmul.f32 1.442695, %v235_v62 }
 0x2c7   :  { %v243_v1 = vsel %vm223_vm2, %v3429_v63, 0.0 }
 0x2c8   :  { %3000 = vpow2.f32 %v239_v0  ;;  %244 = vadd.xlane.f32.xlu0 %v243_v1 }
 0x2cb   :  { %v233_v2 = vpop.xlane.xlu2 %232 }
 0x2cc   :  { %v236_v3 = vsub.f32 %v222_v55, %v233_v2 }
 0x2ce   :  { %v3433_v4 = vpop.eup %3000  ;;  %v241_v5 = vmul.f32 1.442695, %v236_v3 }
 0x2cf   :  { %v246_v6 = vsel %vm223_vm2, %v3433_v4, 0.0 }
 0x2d0   :  { %3002 = vpow2.f32 %v241_v5  ;;  %247 = vadd.xlane.f32.xlu2 %v246_v6 }
 0x2d3   :  { %v2941_v7 = vpop.permute.xlu1 %2940  ;;  %v302_v8 = vpop.permute.xlu2 %301 }
 0x2d4   :  { %2782 = vmatpush.msk.msra.mxu3 %vm314_vm4, %v302_v8  ;;  %v2942_v9 = vunpack.i.l.bf16 %v2941_v7  ;;  %v2943_v11 = vunpack.i.h.bf16 %v2941_v7 }
 0x2d6   :  { %v3438_v10 = vpop.eup %3002  ;;  %331 = vmatpush.msra.mxu3 %v2942_v9 }
 0x2d7   :  { %v249_v12 = vsel %vm230_vm3, %v3438_v10, 0.0 }
 0x2d8   :  { %250 = vadd.xlane.f32.xlu2 %v249_v12  ;;  %332 = vmatpush.msra.mxu3 %v2943_v11 }
 0x2db   :  { %v3442_v13 = vpop.permute.xlu1 %351 }
 0x2dc   :  { %353 = vrot.lane.b32.xlu0 %v3369_v37, %s4322_s5 }
 0x2e3   :  { %v3446_v14 = vpop.permute.xlu1 %343 }
 0x2e4   :  { %349 = vrot.lane.b32.xlu0 %v3365_v34, %s4322_s5  ;;  %s4340_s5 = smov 72  }
 0x2eb   :  { %v597_v15 = vpop.permute.xlu1 %596 }
 0x2ec   :  { %345 = vrot.lane.b32.xlu0 %v3373_v38, %s3152_s24  ;;  %2802 = vmatpush.xpose.msk.msrb.mxu0 %vm178_vm1, %v597_v15 }
 0x2f0   :  { %347 = vrot.lane.b32.xlu2 %v3369_v37, %s3152_s24 }
 0x2f3   :  { %v595_v16 = vpop.permute.xlu1 %594 }
 0x2f4   :  { %807 = vrot.lane.b32.xlu0 %v3369_v37, %s4320_s26  ;;  %2803 = vmatpush.xpose.msk.msrb.mxu0 %vm178_vm1, %v595_v16 }
 0x2f8   :  { %586 = vrot.lane.b32.xlu2 %v3365_v34, %s4324_s28 }
 0x2fb   :  { %v593_v17 = vpop.permute.xlu1 %592 }
 0x2fc   :  { %805 = vrot.lane.b32.xlu0 %v3373_v38, %s4320_s26  ;;  %2804 = vmatpush.xpose.msk.msrb.mxu0 %vm178_vm1, %v593_v17 }
 0x300   :  { %799 = vrot.lane.b32.xlu2 %v3373_v38, %s4318_s25 }
 0x303   :  { %v798_v7 = vpop.permute.xlu1 %797 }
 0x304   :  { %803 = vrot.lane.b32.xlu0 %v3365_v34, %s4320_s26  ;;  %s4343_s26 = smov 40  }
 0x30b   :  { %v591_v9 = vpop.permute.xlu1 %590 }
 0x30c   :  { %588 = vrot.lane.b32.xlu0 %v3373_v38, %s4324_s28  ;;  %s4342_s28 = smov 56  }
 0x314   :  { %801 = vrot.lane.b32.xlu0 %v3369_v37, %s4318_s25 }
 0x31c   :  { %475 = vrot.lane.b32.xlu0 %v3369_v37, %s4316_s1 }
 0x33b   :  { %v245_v18 = vpop.xlane.xlu0 %244 }
 0x33c   :  { %3004 = vrcp.f32 %v245_v18  ;;  %v263_v23 = vand.u32 2147483648, %v245_v18  ;;  %v261_v26 = vand.u32 2147483647, %v245_v18  ;;  %vm257_vm6 = vweird.f32 %v245_v18 }
 0x33e   :  { %v264_v30 = vor.u32 1.1754944e-38, %v263_v23  ;;  %vm262_vm8 = vcmp.eq.f32.partialorder %v261_v26, 8.507059e+37 }
 0x342   :  { %v3005_v19 = vpop.eup %3004 }
 0x343   :  { %v253_v20 = vmul.f32 %v3005_v19, %v245_v18  ;;  %v248_v21 = vpop.xlane.xlu2 %247  ;;  %vm258_vm5 = vweird.f32 %v3005_v19 }
 0x344   :  { %3006 = vrcp.f32 %v248_v21  ;;  %vm259_vm7 = vmor %vm257_vm6, %vm258_vm5  ;;  %v278_v39 = vand.u32 2147483648, %v248_v21  ;;  %v276_v42 = vand.u32 2147483647, %v248_v21  ;;  %vm272_vm10 = vweird.f32 %v248_v21 }
 0x345   :  { %v254_v22 = vsub.f32 1.0, %v253_v20 }
 0x346   :  { %v279_v46 = vor.u32 1.1754944e-38, %v278_v39  ;;  %vm277_vm12 = vcmp.eq.f32.partialorder %v276_v42, 8.507059e+37 }
 0x347   :  { %v255_v24 = vmul.f32 %v3005_v19, %v254_v22 }
 0x349   :  { %v256_v27 = vadd.f32 %v3005_v19, %v255_v24 }
 0x34a   :  { %v3007_v29 = vpop.eup %3006 }
 0x34b   :  { %v268_v32 = vmul.f32 %v3007_v29, %v248_v21  ;;  %v251_v33 = vpop.xlane.xlu2 %250  ;;  %v260_v34 = vsel %vm259_vm7, %v3005_v19, %v256_v27  ;;  %vm273_vm9 = vweird.f32 %v3007_v29 }
 0x34c   :  { %3008 = vrcp.f32 %v251_v33  ;;  %v265_v35 = vsel %vm262_vm8, %v264_v30, %v260_v34  ;;  %vm274_vm11 = vmor %vm272_vm10, %vm273_vm9  ;;  %v293_v55 = vand.u32 2147483648, %v251_v33  ;;  %v291_v60 = vand.u32 2147483647, %v251_v33 }
 0x34d   :  { %v269_v36 = vsub.f32 1.0, %v268_v32  ;;  %v266_v38 = vmul.f32 %v3429_v63, %v265_v35  ;;  %vm287_vm14 = vweird.f32 %v251_v33 }
 0x34e   :  { %v354_v40 = vpop.permute.xlu0 %353  ;;  %v294_v62 = vor.u32 1.1754944e-38, %v293_v55  ;;  %vm292_vm5 = vcmp.eq.f32.partialorder %v291_v60, 8.507059e+37 }
 0x34f   :  { %v270_v41 = vmul.f32 %v3007_v29, %v269_v36  ;;  %2783 = vmatmul.msk.f32.vlgmr.msra.gmra.mxu3 %vm223_vm2, %v266_v38 }
 0x350   :  { %2786 = vmatpush.xpose.msk.msrb.mxu3 %vm178_vm1, %v354_v40 }
 0x351   :  { %v271_v44 = vadd.f32 %v3007_v29, %v270_v41 }
 0x352   :  { %v3009_v45 = vpop.eup %3008 }
 0x353   :  { %v283_v47 = vmul.f32 %v3009_v45, %v251_v33  ;;  %v348_v49 = vpop.permute.xlu2 %347  ;;  %v275_v50 = vsel %vm274_vm11, %v3007_v29, %v271_v44  ;;  %vm288_vm13 = vweird.f32 %v3009_v45 }
 0x354   :  { %2787 = vmatpush.xpose.msk.msrb.mxu3 %vm178_vm1, %v3442_v13  ;;  %v280_v51 = vsel %vm277_vm12, %v279_v46, %v275_v50  ;;  %vm289_vm15 = vmor %vm287_vm14, %vm288_vm13 }
 0x355   :  { %v284_v52 = vsub.f32 1.0, %v283_v47  ;;  %v281_v54 = vmul.f32 %v3433_v4, %v280_v51 }
 0x356   :  { %v350_v56 = vpop.permute.xlu0 %349 }
 0x357   :  { %v285_v59 = vmul.f32 %v3009_v45, %v284_v52  ;;  %2784 = vmatmul.msk.f32.gmra.mxu3 %vm223_vm2, %v281_v54 }
 0x358   :  { %2788 = vmatpush.xpose.msk.msrb.mxu3 %vm178_vm1, %v350_v56 }
 0x359   :  { %v286_v61 = vadd.f32 %v3009_v45, %v285_v59 }
 0x35b   :  { %v587_v63 = vpop.permute.xlu2 %586  ;;  %v290_v0 = vsel %vm289_vm15, %v3009_v45, %v286_v61 }
 0x35c   :  { %575 = vmatpush.msra.mxu3 %v165_v58  ;;  %2805 = vmatmul.msk.f32.vlgmr.msrb.gmra.mxu0 %vm178_vm1, %v587_v63  ;;  %v295_v1 = vsel %vm292_vm5, %v294_v62, %v290_v0 }
 0x35d   :  { %v296_v2 = vmul.f32 %v3438_v10, %v295_v1 }
 0x35e   :  { %v346_v3 = vpop.permute.xlu0 %345 }
 0x35f   :  { %2785 = vmatmul.msk.f32.gmra.mxu3 %vm223_vm2, %v296_v2 }
 0x363   :  { %v800_v20 = vpop.permute.xlu2 %799 }
 0x366   :  { %v808_v4 = vpop.permute.xlu0 %807 }
 0x367   :  { %2789 = vmatmul.msk.f32.vlgmr.msrb.gmra.mxu3 %vm178_vm1, %v3446_v14 }
 0x368   :  { %2815 = vmatpush.xpose.msk.msrb.mxu3 %vm178_vm1, %v808_v4 }
 0x36e   :  { %v806_v5 = vpop.permute.xlu0 %805 }
 0x36f   :  { %2790 = vmatmul.msk.f32.gmra.mxu3 %vm178_vm1, %v346_v3 }
 0x370   :  { %2816 = vmatpush.xpose.msk.msrb.mxu3 %vm178_vm1, %v806_v5 }
 0x376   :  { %v804_v6 = vpop.permute.xlu0 %803 }
 0x377   :  { %2791 = vmatmul.msk.f32.gmra.mxu3 %vm178_vm1, %v348_v49 }
 0x378   :  { %2817 = vmatpush.xpose.msk.msrb.mxu3 %vm178_vm1, %v804_v6 }
 0x37e   :  { %v589_v8 = vpop.permute.xlu0 %588 }
 0x37f   :  { %2806 = vmatmul.msk.f32.gmra.mxu0 %vm178_vm1, %v589_v8 }
 0x386   :  { %v802_v10 = vpop.permute.xlu0 %801 }
 0x387   :  { %2807 = vmatmul.msk.f32.gmra.mxu0 %vm178_vm1, %v591_v9 }
 0x38e   :  { %v476_v11 = vpop.permute.xlu0 %475 }
 0x38f   :  { %2792 = vmatpush.msk.msrb.mxu1 %vm314_vm4, %v476_v11 }
 0x3d2   :  { %v334_v12 = vpop.f32.mrf.mxu3 }
 0x3d3   :  { %2799 = vmatmul.msk.f32.vlgmr.msra.gmra.mxu3 %vm178_vm1, %v334_v12 }
 0x3d9   :  { %v627_v13 = vpop.f32.mrf.mxu0 }
 0x3da   :  { %v636_v14 = vmul.f32 0.35355338, %v627_v13  ;;  %v337_v15 = vpop.f32.mrf.mxu3 }
 0x3db   :  { %2800 = vmatmul.msk.f32.gmra.mxu3 %vm178_vm1, %v337_v15 }
 0x3dc   :  { %v3500_v16 = vadd.f32 %v636_v14, %v3389_v43 }
 0x3de   :  { %v642_v17 = vsel %vm223_vm2, %v3500_v16, -inf }
 0x3df   :  { %643 = vmax.xlane.f32.xlu2 %v642_v17 }
 0x3e2   :  { %v340_v18 = vpop.f32.mrf.mxu3 }
 0x3e3   :  { %2801 = vmatmul.msk.f32.gmra.mxu3 %vm178_vm1, %v340_v18 }
 0x3ea   :  { %v384_v19 = vpop.f32.mrf.mxu3 }
 0x3eb   :  { %2818 = vmatmul.msk.f32.vlgmr.msrb.gmra.mxu3 %vm178_vm1, %v798_v7  ;;  %v393_v39 = vmul.f32 0.35355338, %v384_v19 }
 0x3ed   :  { %v396_v42 = vadd.f32 %v393_v39, %v3389_v43 }
 0x3ef   :  { %v399_v44 = vsel %vm223_vm2, %v396_v42, -inf }
 0x3f2   :  { %v387_v21 = vpop.f32.mrf.mxu3 }
 0x3f3   :  { %2819 = vmatmul.msk.f32.gmra.mxu3 %vm178_vm1, %v800_v20  ;;  %v394_v32 = vmul.f32 0.35355338, %v387_v21 }
 0x3f5   :  { %v397_v36 = vadd.f32 %v394_v32, %v3396_v48 }
 0x3f7   :  { %v402_v40 = vsel %vm223_vm2, %v397_v36, -inf }
 0x3fa   :  { %v390_v22 = vpop.f32.mrf.mxu3 }
 0x3fb   :  { %v395_v23 = vmul.f32 0.35355338, %v390_v22  ;;  %2820 = vmatmul.msk.f32.gmra.mxu3 %vm178_vm1, %v802_v10 }
 0x3fc   :  { %v630_v24 = vpop.f32.mrf.mxu0 }
 0x3fd   :  { %v637_v26 = vmul.f32 0.35355338, %v630_v24  ;;  %v3509_v27 = vadd.f32 %v395_v23, %v3403_v53 }
 0x3ff   :  { %v405_v29 = vsel %vm230_vm3, %v3509_v27, -inf  ;;  %v640_v30 = vadd.f32 %v637_v26, %v3396_v48 }
 0x400   :  { %406 = vmax.xlane.f32.xlu0 %v405_v29 }
 0x401   :  { %v645_v33 = vsel %vm223_vm2, %v640_v30, -inf }
 0x402   :  { %646 = vmax.xlane.f32.xlu1 %v645_v33 }
 0x404   :  { %v633_v34 = vpop.f32.mrf.mxu0 }
 0x405   :  { %v638_v35 = vmul.f32 0.35355338, %v633_v34 }
 0x407   :  { %v641_v38 = vadd.f32 %v638_v35, %v3403_v53 }
 0x409   :  { %v648_v41 = vsel %vm230_vm3, %v641_v38, -inf }
 0x40a   :  { %403 = vmax.xlane.f32.xlu1 %v402_v40  ;;  %649 = vmax.xlane.f32.xlu2 %v648_v41 }
 0x412   :  { %400 = vmax.xlane.f32.xlu2 %v399_v44 }
 0x452   :  { %v644_v54 = vpop.xlane.xlu2 %643 }
 0x453   :  { %v651_v4 = vsub.f32 %v3500_v16, %v644_v54 }
 0x456   :  { %v3521_v45 = vpop.f32.mrf.mxu3 }
 0x45e   :  { %v3523_v46 = vpop.f32.mrf.mxu3 }
 0x466   :  { %v3525_v47 = vpop.f32.mrf.mxu3 }
 0x46e   :  { %v838_v49 = vpop.f32.mrf.mxu3 }
 0x46f   :  { %v847_v50 = vmul.f32 0.35355338, %v838_v49 }
 0x471   :  { %v850_v51 = vadd.f32 %v847_v50, %v3389_v43 }
 0x473   :  { %v853_v52 = vsel %vm223_vm2, %v850_v51, -inf  ;;  %v407_v19 = vpop.xlane.xlu0 %406 }
 0x474   :  { %854 = vmax.xlane.f32.xlu0 %v853_v52  ;;  %v410_v21 = vsub.f32 %v3509_v27, %v407_v19 }
 0x475   :  { %v647_v55 = vpop.xlane.xlu1 %646 }
 0x476   :  { %v841_v56 = vpop.f32.mrf.mxu3  ;;  %v652_v10 = vsub.f32 %v640_v30, %v647_v55  ;;  %v415_v23 = vmul.f32 1.442695, %v410_v21 }
 0x477   :  { %v848_v6 = vmul.f32 0.35355338, %v841_v56 }
 0x478   :  { %v656_v13 = vmul.f32 1.442695, %v652_v10 }
 0x479   :  { %v851_v8 = vadd.f32 %v848_v6, %v3396_v48 }
 0x47b   :  { %v856_v11 = vsel %vm223_vm2, %v851_v8, -inf }
 0x47d   :  { %v404_v58 = vpop.xlane.xlu1 %403  ;;  %v650_v59 = vpop.xlane.xlu2 %649 }
 0x47e   :  { %v409_v60 = vsub.f32 %v397_v36, %v404_v58  ;;  %v844_v61 = vpop.f32.mrf.mxu3  ;;  %v653_v17 = vsub.f32 %v641_v38, %v650_v59 }
 0x47f   :  { %v849_v62 = vmul.f32 0.35355338, %v844_v61 }
 0x480   :  { %v413_v63 = vmul.f32 1.442695, %v409_v60  ;;  %v658_v18 = vmul.f32 1.442695, %v653_v17 }
 0x481   :  { %v3530_v0 = vadd.f32 %v849_v62, %v3403_v53  ;;  %v654_v53 = vmul.f32 1.442695, %v651_v4 }
 0x482   :  { %3010 = vpow2.f32 %v413_v63 }
 0x483   :  { %v859_v1 = vsel %vm230_vm3, %v3530_v0, -inf }
 0x484   :  { %860 = vmax.xlane.f32.xlu0 %v859_v1 }
 0x485   :  { %v401_v43 = vpop.xlane.xlu2 %400 }
 0x486   :  { %v408_v2 = vsub.f32 %v396_v42, %v401_v43 }
 0x488   :  { %v3534_v3 = vpop.eup %3010  ;;  %v411_v5 = vmul.f32 1.442695, %v408_v2 }
 0x489   :  { %v420_v7 = vsel %vm223_vm2, %v3534_v3, 0.0 }
 0x48a   :  { %3012 = vpow2.f32 %v411_v5  ;;  %421 = vadd.xlane.f32.xlu1 %v420_v7 }
 0x48b   :  { %3014 = vpow2.f32 %v654_v53 }
 0x48c   :  { %3016 = vpow2.f32 %v656_v13 }
 0x48d   :  { %3018 = vpow2.f32 %v658_v18 }
 0x48e   :  { %3020 = vpow2.f32 %v415_v23 }
 0x490   :  { %v3540_v9 = vpop.eup %3012 }
 0x491   :  { %v417_v12 = vsel %vm223_vm2, %v3540_v9, 0.0  ;;  %v3545_v14 = vpop.eup %3014 }
 0x492   :  { %857 = vmax.xlane.f32.xlu1 %v856_v11  ;;  %418 = vadd.xlane.f32.xlu2 %v417_v12  ;;  %v660_v15 = vsel %vm223_vm2, %v3545_v14, 0.0  ;;  %v3549_v48 = vpop.eup %3016 }
 0x493   :  { %v663_v16 = vsel %vm223_vm2, %v3549_v48, 0.0  ;;  %v3557_v20 = vpop.eup %3018 }
 0x494   :  { %v666_v22 = vsel %vm230_vm3, %v3557_v20, 0.0  ;;  %v3562_v24 = vpop.eup %3020 }
 0x495   :  { %v423_v26 = vsel %vm230_vm3, %v3562_v24, 0.0 }
 0x49a   :  { %661 = vadd.xlane.f32.xlu2 %v660_v15 }
 0x4a2   :  { %664 = vadd.xlane.f32.xlu2 %v663_v16 }
 0x4ab   :  { %2945 = vrot.lane.b32.xlu1 %v3409_v57, %s4316_s1 }
 0x4ba   :  { %718 = vrot.lane.b32.xlu2 %v3369_v37, %s4312_s22 }
 0x4d5   :  { %667 = vadd.xlane.f32.xlu1 %v666_v22 }
 0x4e3   :  { %424 = vadd.xlane.f32.xlu2 %v423_v26 }
 0x4e7   :  { %v855_v29 = vpop.xlane.xlu0 %854 }
 0x4e8   :  { %v862_v30 = vsub.f32 %v850_v51, %v855_v29 }
 0x4ea   :  { %v865_v32 = vmul.f32 1.442695, %v862_v30 }
 0x4ec   :  { %3022 = vpow2.f32 %v865_v32 }
 0x4ee   :  { %929 = vrot.lane.b32.xlu1 %v3369_v37, %s4314_s2 }
 0x4f2   :  { %v3568_v27 = vpop.eup %3022 }
 0x4f3   :  { %v871_v33 = vsel %vm223_vm2, %v3568_v27, 0.0 }
 0x4f4   :  { %872 = vadd.xlane.f32.xlu0 %v871_v33 }
 0x4f7   :  { %v861_v63 = vpop.xlane.xlu0 %860 }
 0x4f8   :  { %v864_v5 = vsub.f32 %v3530_v0, %v861_v63 }
 0x4fa   :  { %v869_v12 = vmul.f32 1.442695, %v864_v5 }
 0x4fd   :  { %v422_v34 = vpop.xlane.xlu1 %421 }
 0x4fe   :  { %v452_v6 = vand.u32 2147483648, %v422_v34  ;;  %vm446_vm11 = vweird.f32 %v422_v34 }
 0x500   :  { %v453_v13 = vor.u32 1.1754944e-38, %v452_v6 }
 0x505   :  { %v858_v35 = vpop.xlane.xlu1 %857  ;;  %v419_v36 = vpop.xlane.xlu2 %418 }
 0x506   :  { %v863_v38 = vsub.f32 %v851_v8, %v858_v35  ;;  %3024 = vrcp.f32 %v419_v36  ;;  %v437_v56 = vand.u32 2147483648, %v419_v36  ;;  %vm431_vm7 = vweird.f32 %v419_v36 }
 0x507   :  { %3026 = vrcp.f32 %v422_v34  ;;  %v435_v58 = vand.u32 2147483647, %v419_v36  ;;  %v450_v8 = vand.u32 2147483647, %v422_v34 }
 0x508   :  { %v867_v39 = vmul.f32 1.442695, %v863_v38  ;;  %2950 = vrot.lane.b32.xlu0 %v3409_v57, %s4312_s22  ;;  %v438_v62 = vor.u32 1.1754944e-38, %v437_v56  ;;  %s4344_s22 = smov 48  }
 0x509   :  { %vm436_vm9 = vcmp.eq.f32.partialorder %v435_v58, 8.507059e+37  ;;  %vm451_vm13 = vcmp.eq.f32.partialorder %v450_v8, 8.507059e+37 }
 0x50a   :  { %3028 = vpow2.f32 %v867_v39 }
 0x50b   :  { %3030 = vpow2.f32 %v869_v12 }
 0x50c   :  { %v3025_v40 = vpop.eup %3024 }
 0x50d   :  { %v427_v41 = vmul.f32 %v3025_v40, %v419_v36  ;;  %v3027_v37 = vpop.eup %3026  ;;  %v3574_v44 = vpop.xlane.xlu2 %661  ;;  %vm432_vm6 = vweird.f32 %v3025_v40 }
 0x50e   :  { %v442_v51 = vmul.f32 %v3027_v37, %v422_v34  ;;  %vm433_vm8 = vmor %vm431_vm7, %vm432_vm6  ;;  %vm447_vm10 = vweird.f32 %v3027_v37 }
 0x50f   :  { %v428_v42 = vsub.f32 1.0, %v427_v41  ;;  %vm448_vm12 = vmor %vm446_vm11, %vm447_vm10 }
 0x510   :  { %v3576_v49 = vpop.eup %3028  ;;  %v443_v54 = vsub.f32 1.0, %v442_v51 }
 0x511   :  { %v874_v50 = vsel %vm223_vm2, %v3576_v49, 0.0  ;;  %v429_v52 = vmul.f32 %v3025_v40, %v428_v42 }
 0x512   :  { %875 = vadd.xlane.f32.xlu2 %v874_v50  ;;  %v444_v60 = vmul.f32 %v3027_v37, %v443_v54 }
 0x513   :  { %v430_v55 = vadd.f32 %v3025_v40, %v429_v52  ;;  %v680_v52 = vand.u32 2147483648, %v3574_v44 }
 0x514   :  { %v445_v4 = vadd.f32 %v3027_v37, %v444_v60 }
 0x515   :  { %v3580_v59 = vpop.xlane.xlu2 %664  ;;  %v434_v61 = vsel %vm433_vm8, %v3025_v40, %v430_v55  ;;  %vm674_vm8 = vweird.f32 %v3574_v44  ;;  %v681_v60 = vor.u32 1.1754944e-38, %v680_v52 }
 0x516   :  { %v439_v2 = vsel %vm436_vm9, %v438_v62, %v434_v61  ;;  %v449_v11 = vsel %vm448_vm12, %v3027_v37, %v445_v4  ;;  %v695_v4 = vand.u32 2147483648, %v3580_v59  ;;  %vm689_vm12 = vweird.f32 %v3580_v59 }
 0x517   :  { %v440_v53 = vmul.f32 %v3540_v9, %v439_v2  ;;  %v454_v15 = vsel %vm451_vm13, %v453_v13, %v449_v11  ;;  %v3590_v9 = vpop.eup %3030  ;;  %v693_v6 = vand.u32 2147483647, %v3580_v59 }
 0x518   :  { %v455_v0 = vmul.f32 %v3534_v3, %v454_v15  ;;  %v877_v16 = vsel %vm230_vm3, %v3590_v9, 0.0  ;;  %v696_v11 = vor.u32 1.1754944e-38, %v695_v4  ;;  %v168_v4 = vld [vmem:[%s4290_s7 + $0x18] sm:$0xff] }
 0x51d   :  { %v2946_v1 = vpop.permute.xlu1 %2945  ;;  %v719_v10 = vpop.permute.xlu2 %718 }
 0x51e   :  { %v2947_v43 = vunpack.i.l.bf16 %v2946_v1  ;;  %v2948_v7 = vunpack.i.h.bf16 %v2946_v1 }
 0x520   :  { %504 = vmatpush.msrb.mxu1 %v2947_v43 }
 0x522   :  { %505 = vmatpush.msrb.mxu1 %v2948_v7 }
 0x523   :  { %2793 = vmatmul.msk.f32.vlgmr.msrb.gmra.mxu1 %vm223_vm2, %v440_v53 }
 0x524   :  { %2808 = vmatpush.msk.msra.mxu1 %vm314_vm4, %v719_v10  ;;  %v166_v10 = vld [vmem:[%s4290_s7 + $0x8] sm:$0xff] }
 0x525   :  { %540 = vmatpush.msrb.mxu2 %v166_v10 }
 0x52a   :  { %2955 = vrot.lane.b32.xlu2 %v3409_v57, %s4314_s2 }
 0x52b   :  { %2794 = vmatmul.msk.f32.gmra.mxu1 %vm223_vm2, %v455_v0 }
 0x532   :  { %878 = vadd.xlane.f32.xlu0 %v877_v16 }
 0x548   :  { %v3594_v18 = vpop.xlane.xlu1 %667 }
 0x549   :  { %v708_v16 = vand.u32 2147483647, %v3594_v18 }
 0x556   :  { %v425_v17 = vpop.xlane.xlu2 %424 }
 0x557   :  { %3032 = vrcp.f32 %v425_v17  ;;  %v467_v23 = vand.u32 2147483648, %v425_v17  ;;  %v465_v26 = vand.u32 2147483647, %v425_v17  ;;  %vm461_vm15 = vweird.f32 %v425_v17 }
 0x558   :  { %3034 = vrcp.f32 %v3574_v44 }
 0x559   :  { %v468_v32 = vor.u32 1.1754944e-38, %v467_v23  ;;  %vm466_vm6 = vcmp.eq.f32.partialorder %v465_v26, 8.507059e+37  ;;  %3036 = vrcp.f32 %v3580_v59 }
 0x55a   :  { %3038 = vrcp.f32 %v3594_v18 }
 0x55d   :  { %v3033_v19 = vpop.eup %3032 }
 0x55e   :  { %v457_v21 = vmul.f32 %v3033_v19, %v425_v17  ;;  %vm462_vm14 = vweird.f32 %v3033_v19  ;;  %v3035_v30 = vpop.eup %3034 }
 0x55f   :  { %vm463_vm5 = vmor %vm461_vm15, %vm462_vm14  ;;  %v670_v35 = vmul.f32 %v3035_v30, %v3574_v44  ;;  %v3037_v39 = vpop.eup %3036  ;;  %vm675_vm7 = vweird.f32 %v3035_v30  ;;  %vm694_vm14 = vcmp.eq.f32.partialorder %v693_v6, 8.507059e+37 }
 0x560   :  { %v458_v3 = vsub.f32 1.0, %v457_v21  ;;  %v930_v22 = vpop.permute.xlu1 %929  ;;  %v685_v37 = vmul.f32 %v3037_v39, %v3580_v59  ;;  %v3039_v51 = vpop.eup %3038  ;;  %vm676_vm9 = vmor %vm674_vm8, %vm675_vm7  ;;  %vm690_vm11 = vweird.f32 %v3037_v39 }
 0x561   :  { %2821 = vmatpush.msk.msra.mxu0 %vm314_vm4, %v930_v22  ;;  %v671_v38 = vsub.f32 1.0, %v670_v35  ;;  %v700_v58 = vmul.f32 %v3039_v51, %v3594_v18  ;;  %vm691_vm13 = vmor %vm689_vm12, %vm690_vm11  ;;  %vm705_vm15 = vweird.f32 %v3039_v51 }
 0x562   :  { %v459_v57 = vmul.f32 %v3033_v19, %v458_v3  ;;  %v686_v50 = vsub.f32 1.0, %v685_v37 }
 0x563   :  { %v672_v41 = vmul.f32 %v3035_v30, %v671_v38  ;;  %v701_v43 = vsub.f32 1.0, %v700_v58 }
 0x564   :  { %v460_v29 = vadd.f32 %v3033_v19, %v459_v57  ;;  %v687_v56 = vmul.f32 %v3037_v39, %v686_v50 }
 0x565   :  { %v673_v42 = vadd.f32 %v3035_v30, %v672_v41  ;;  %v702_v53 = vmul.f32 %v3039_v51, %v701_v43  ;;  %v167_v43 = vld [vmem:[%s4290_s7 + $0x10] sm:$0xff] }
 0x566   :  { %v464_v33 = vsel %vm463_vm5, %v3033_v19, %v460_v29  ;;  %v688_v2 = vadd.f32 %v3037_v39, %v687_v56  ;;  %vm704_vm5 = vweird.f32 %v3594_v18  ;;  %783 = vmatpush.msra.mxu2 %v167_v43 }
 0x567   :  { %v469_v34 = vsel %vm466_vm6, %v468_v32, %v464_v33  ;;  %v3603_v40 = vpop.xlane.xlu0 %872  ;;  %v677_v55 = vsel %vm676_vm9, %v3035_v30, %v673_v42  ;;  %v703_v15 = vadd.f32 %v3039_v51, %v702_v53  ;;  %vm706_vm7 = vmor %vm704_vm5, %vm705_vm15 }
 0x568   :  { %v470_v36 = vmul.f32 %v3562_v24, %v469_v34  ;;  %3040 = vrcp.f32 %v3603_v40  ;;  %v678_v24 = vand.u32 2147483647, %v3574_v44  ;;  %v692_v8 = vsel %vm691_vm13, %v3037_v39, %v688_v2 }
 0x569   :  { %v697_v13 = vsel %vm694_vm14, %v696_v11, %v692_v8  ;;  %v891_v19 = vand.u32 2147483648, %v3603_v40  ;;  %v707_v21 = vsel %vm706_vm7, %v3039_v51, %v703_v15  ;;  %vm885_vm8 = vweird.f32 %v3603_v40 }
 0x56a   :  { %2795 = vmatmul.msk.f32.gmra.mxu1 %vm223_vm2, %v470_v36  ;;  %vm679_vm10 = vcmp.eq.f32.partialorder %v678_v24, 8.507059e+37  ;;  %v698_v0 = vmul.f32 %v3549_v48, %v697_v13  ;;  %v889_v22 = vand.u32 2147483647, %v3603_v40 }
 0x56b   :  { %v682_v62 = vsel %vm679_vm10, %v681_v60, %v677_v55  ;;  %vm709_vm10 = vcmp.eq.f32.partialorder %v708_v16, 8.507059e+37  ;;  %v892_v26 = vor.u32 1.1754944e-38, %v891_v19 }
 0x56c   :  { %v683_v44 = vmul.f32 %v3545_v14, %v682_v62  ;;  %v710_v14 = vand.u32 2147483648, %v3594_v18  ;;  %vm890_vm11 = vcmp.eq.f32.partialorder %v889_v22, 8.507059e+37 }
 0x56e   :  { %v3041_v54 = vpop.eup %3040  ;;  %v711_v3 = vor.u32 1.1754944e-38, %v710_v14  ;;  %v2980_v14 = vld [vmem:[%s4291_s8] ss:$0 sm:$0xff] }
 0x56f   :  { %v881_v63 = vmul.f32 %v3041_v54, %v3603_v40  ;;  %vm886_vm6 = vweird.f32 %v3041_v54 }
 0x570   :  { %vm887_vm9 = vmor %vm885_vm8, %vm886_vm6  ;;  %v712_v57 = vsel %vm709_vm10, %v711_v3, %v707_v21 }
 0x571   :  { %v882_v7 = vsub.f32 1.0, %v881_v63  ;;  %v713_v33 = vmul.f32 %v3557_v20, %v712_v57 }
 0x573   :  { %v883_v12 = vmul.f32 %v3041_v54, %v882_v7 }
 0x575   :  { %v884_v17 = vadd.f32 %v3041_v54, %v883_v12 }
 0x577   :  { %v888_v23 = vsel %vm887_vm9, %v3041_v54, %v884_v17  ;;  %vm1026_vm9 = vcmask 254976  }
 0x578   :  { %v893_v30 = vsel %vm890_vm11, %v892_v26, %v888_v23 }
 0x579   :  { %v894_v39 = vmul.f32 %v3568_v27, %v893_v30 }
 0x57a   :  { %v2951_v61 = vpop.permute.xlu0 %2950 }
 0x57b   :  { %v2952_v1 = vunpack.i.l.bf16 %v2951_v61  ;;  %v2953_v5 = vunpack.i.h.bf16 %v2951_v61 }
 0x57d   :  { %747 = vmatpush.msra.mxu1 %v2952_v1 }
 0x57f   :  { %748 = vmatpush.msra.mxu1 %v2953_v5 }
 0x580   :  { %2809 = vmatmul.msk.f32.vlgmr.msra.gmra.mxu1 %vm223_vm2, %v683_v44 }
 0x581   :  { %994 = vmatpush.msrb.mxu1 %v168_v4 }
 0x585   :  { %v876_v59 = vpop.xlane.xlu2 %875 }
 0x586   :  { %3042 = vrcp.f32 %v876_v59  ;;  %v906_v35 = vand.u32 2147483648, %v876_v59  ;;  %v904_v40 = vand.u32 2147483647, %v876_v59  ;;  %vm900_vm13 = vweird.f32 %v876_v59 }
 0x588   :  { %2810 = vmatmul.msk.f32.gmra.mxu1 %vm223_vm2, %v698_v0  ;;  %v907_v37 = vor.u32 1.1754944e-38, %v906_v35  ;;  %vm905_vm15 = vcmp.eq.f32.partialorder %v904_v40, 8.507059e+37  ;;  %v3160_v35 = vmov 32.0  }
 0x58c   :  { %v3043_v48 = vpop.eup %3042 }
 0x58d   :  { %v896_v18 = vmul.f32 %v3043_v48, %v876_v59  ;;  %v2956_v29 = vpop.permute.xlu2 %2955  ;;  %vm901_vm12 = vweird.f32 %v3043_v48 }
 0x58e   :  { %v2957_v32 = vunpack.i.l.bf16 %v2956_v29  ;;  %v2958_v36 = vunpack.i.h.bf16 %v2956_v29  ;;  %vm902_vm14 = vmor %vm900_vm13, %vm901_vm12 }
 0x58f   :  { %v897_v34 = vsub.f32 1.0, %v896_v18 }
 0x590   :  { %2811 = vmatmul.msk.f32.gmra.mxu1 %vm223_vm2, %v713_v33  ;;  %958 = vmatpush.msra.mxu0 %v2957_v32 }
 0x591   :  { %v898_v38 = vmul.f32 %v3043_v48, %v897_v34 }
 0x592   :  { %959 = vmatpush.msra.mxu0 %v2958_v36 }
 0x593   :  { %2822 = vmatmul.msk.f32.vlgmr.msra.gmra.mxu0 %vm223_vm2, %v894_v39  ;;  %v899_v41 = vadd.f32 %v3043_v48, %v898_v38 }
 0x595   :  { %v903_v42 = vsel %vm902_vm14, %v3043_v48, %v899_v41 }
 0x596   :  { %v908_v20 = vsel %vm905_vm15, %v907_v37, %v903_v42 }
 0x597   :  { %v909_v50 = vmul.f32 %v3576_v49, %v908_v20 }
 0x59b   :  { %2823 = vmatmul.msk.f32.gmra.mxu0 %vm223_vm2, %v909_v50 }
 0x5a0   :  { %v507_v51 = vpop.f32.mrf.mxu1 }
 0x5a1   :  { %2796 = vmatmul.msk.f32.vlgmr.msrb.gmra.mxu2 %vm178_vm1, %v507_v51 }
 0x5a5   :  { %v879_v27 = vpop.xlane.xlu0 %878 }
 0x5a6   :  { %3044 = vrcp.f32 %v879_v27  ;;  %v921_v56 = vand.u32 2147483648, %v879_v27  ;;  %v919_v60 = vand.u32 2147483647, %v879_v27  ;;  %vm915_vm6 = vweird.f32 %v879_v27 }
 0x5a7   :  { %3046 = vrcp.f32 %v3160_v35 }
 0x5a8   :  { %v510_v52 = vpop.f32.mrf.mxu1  ;;  %v922_v49 = vor.u32 1.1754944e-38, %v921_v56  ;;  %vm920_vm8 = vcmp.eq.f32.partialorder %v919_v60, 8.507059e+37 }
 0x5a9   :  { %2797 = vmatmul.msk.f32.gmra.mxu2 %vm178_vm1, %v510_v52 }
 0x5ac   :  { %v3045_v24 = vpop.eup %3044 }
 0x5ad   :  { %v911_v54 = vmul.f32 %v3045_v24, %v879_v27  ;;  %vm916_vm5 = vweird.f32 %v3045_v24  ;;  %v3047_v36 = vpop.eup %3046 }
 0x5ae   :  { %vm917_vm7 = vmor %vm915_vm6, %vm916_vm5  ;;  %vm1035_vm10 = vweird.f32 %v3047_v36 }
 0x5af   :  { %v912_v55 = vsub.f32 1.0, %v911_v54 }
 0x5b1   :  { %v913_v58 = vmul.f32 %v3045_v24, %v912_v55 }
 0x5b3   :  { %v914_v61 = vadd.f32 %v3045_v24, %v913_v58 }
 0x5b5   :  { %v918_v62 = vsel %vm917_vm7, %v3045_v24, %v914_v61  ;;  %v1109_v61 = vld [vmem:[%s4295_s11 + $0x18] sm:$0xff] }
 0x5b6   :  { %v923_v63 = vsel %vm920_vm8, %v922_v49, %v918_v62  ;;  %1135 = vmatpush.msrb.mxu2 %v1109_v61  ;;  %v1108_v49 = vld [vmem:[%s4295_s11 + $0x10] sm:$0xff]  ;;  %v1107_v62 = vld [vmem:[%s4295_s11 + $0x8] sm:$0xff] }
 0x5b7   :  { %v924_v1 = vmul.f32 %v3590_v9, %v923_v63  ;;  %v1106_v63 = vld [vmem:[%s4295_s11] sm:$0xff] }
 0x5b8   :  { %1136 = vmatpush.msrb.mxu2 %v1108_v49  ;;  %v1272_v49 = vld [vmem:[%s4297_s13 + $0x18] sm:$0xff] }
 0x5b9   :  { %2824 = vmatmul.msk.f32.gmra.mxu0 %vm223_vm2, %v924_v1 }
 0x5ba   :  { %1137 = vmatpush.msrb.mxu2 %v1107_v62 }
 0x5bc   :  { %1138 = vmatpush.msrb.mxu2 %v1106_v63  ;;  %v1271_v63 = vld [vmem:[%s4297_s13 + $0x10] sm:$0xff] }
 0x5e7   :  { %v513_v2 = vpop.f32.mrf.mxu1 }
 0x5e8   :  { %2798 = vmatmul.msk.f32.gmra.mxu2 %vm178_vm1, %v513_v2 }
 0x5fd   :  { %v750_v5 = vpop.f32.mrf.mxu1 }
 0x5fe   :  { %2812 = vmatmul.msk.f32.vlgmr.msra.gmra.mxu2 %vm178_vm1, %v750_v5 }
 0x605   :  { %v753_v44 = vpop.f32.mrf.mxu1 }
 0x606   :  { %2813 = vmatmul.msk.f32.gmra.mxu2 %vm178_vm1, %v753_v44 }
 0x60d   :  { %v756_v9 = vpop.f32.mrf.mxu1 }
 0x60e   :  { %2814 = vmatmul.msk.f32.gmra.mxu2 %vm178_vm1, %v756_v9 }
 0x610   :  { %v961_v6 = vpop.f32.mrf.mxu0 }
 0x611   :  { %2825 = vmatmul.msk.f32.vlgmr.msrb.gmra.mxu1 %vm178_vm1, %v961_v6 }
 0x618   :  { %v964_v7 = vpop.f32.mrf.mxu0 }
 0x619   :  { %2826 = vmatmul.msk.f32.gmra.mxu1 %vm178_vm1, %v964_v7 }
 0x624   :  { %v542_v8 = vpop.f32.mrf.mxu2 }
 0x625   :  { %v578_v13 = vadd.f32 %v3521_v45, %v542_v8 }
 0x62c   :  { %v545_v10 = vpop.f32.mrf.mxu2 }
 0x62d   :  { %v581_v19 = vadd.f32 %v3523_v46, %v545_v10 }
 0x636   :  { %v967_v53 = vpop.f32.mrf.mxu0 }
 0x637   :  { %2827 = vmatmul.msk.f32.gmra.mxu1 %vm178_vm1, %v967_v53 }
 0x66b   :  { %v548_v11 = vpop.f32.mrf.mxu2 }
 0x66c   :  { %v584_v29 = vadd.f32 %v3525_v47, %v548_v11 }
 0x681   :  { %v785_v12 = vpop.f32.mrf.mxu2 }
 0x682   :  { %v794_v15 = vadd.f32 %v785_v12, %v578_v13  ;;  %v2981_v13 = vld [vmem:[%s4292_s9] ss:$0 sm:$0xff] }
 0x689   :  { %v788_v17 = vpop.f32.mrf.mxu2 }
 0x68a   :  { %v795_v3 = vadd.f32 %v788_v17, %v581_v19 }
 0x68e   :  { %v996_v59 = vpop.f32.mrf.mxu1 }
 0x68f   :  { %v1005_v0 = vadd.f32 %v996_v59, %v794_v15 }
 0x691   :  { %v1012_v16 = vadd.f32 %v2980_v14, %v1005_v0  ;;  %v791_v18 = vpop.f32.mrf.mxu2  ;;  %v2982_v0 = vld [vmem:[%s4293_s10] ss:$0 sm:$0xff] }
 0x692   :  { %v796_v30 = vadd.f32 %v791_v18, %v584_v29 }
 0x693   :  { %v1015_v21 = vadd.f32 %v1012_v16, %v3344_v25 }
 0x695   :  { %v1020_v22 = vsel %vm129_vm0, %v1015_v21, 0.0 }
 0x696   :  { %1021 = vadd.xlane.f32.xlu1 %v1020_v22  ;;  %v999_v23 = vpop.f32.mrf.mxu1 }
 0x697   :  { %v1006_v57 = vadd.f32 %v999_v23, %v795_v3 }
 0x699   :  { %v1013_v45 = vadd.f32 %v2980_v14, %v1006_v57 }
 0x69b   :  { %v1016_v48 = vadd.f32 %v1013_v45, %v3351_v28  ;;  %v1031_v28 = vmul.f32 32.0, %v3047_v36 }
 0x69d   :  { %v1023_v26 = vsel %vm129_vm0, %v1016_v48, 0.0  ;;  %v1032_v38 = vsub.f32 1.0, %v1031_v28 }
 0x69e   :  { %1024 = vadd.xlane.f32.xlu2 %v1023_v26 }
 0x69f   :  { %v1033_v39 = vmul.f32 %v3047_v36, %v1032_v38  ;;  %v3712_v38 = vld [vmem:[%s4294_s12] ss:$0 sm:$0xff] }
 0x6a1   :  { %v1034_v40 = vadd.f32 %v3047_v36, %v1033_v39 }
 0x6a3   :  { %v3663_v41 = vsel %vm1035_vm10, %v3047_v36, %v1034_v40 }
 0x6b4   :  { %v1002_v32 = vpop.f32.mrf.mxu1 }
 0x6b5   :  { %v1007_v46 = vadd.f32 %v1002_v32, %v796_v30 }
 0x6b7   :  { %v1014_v33 = vadd.f32 %v2980_v14, %v1007_v46 }
 0x6b9   :  { %v1017_v25 = vadd.f32 %v1014_v33, %v3358_v31 }
 0x6bb   :  { %v1027_v34 = vsel %vm1026_vm9, %v1017_v25, 0.0 }
 0x6bc   :  { %1028 = vadd.xlane.f32.xlu0 %v1027_v34 }
 0x709   :  { %v1022_v47 = vpop.xlane.xlu1 %1021 }
 0x70a   :  { %v1037_v37 = vmul.f32 %v3663_v41, %v1022_v47 }
 0x70c   :  { %v1040_v42 = vsub.f32 %v1015_v21, %v1037_v37 }
 0x70e   :  { %v1043_v20 = vmul.f32 %v1040_v42, %v1040_v42 }
 0x710   :  { %v1046_v31 = vsel %vm129_vm0, %v1043_v20, 0.0 }
 0x711   :  { %v1025_v50 = vpop.xlane.xlu2 %1024  ;;  %1047 = vadd.xlane.f32.xlu0 %v1046_v31 }
 0x712   :  { %v1038_v51 = vmul.f32 %v3663_v41, %v1025_v50 }
 0x714   :  { %v1041_v27 = vsub.f32 %v1016_v48, %v1038_v51  ;;  %v1276_v51 = vld [vmem:[%s4297_s13 + $0x38] sm:$0xff] }
 0x715   :  { %1299 = vmatpush.msra.mxu3 %v1276_v51 }
 0x716   :  { %v1044_v52 = vmul.f32 %v1041_v27, %v1041_v27 }
 0x718   :  { %v1049_v24 = vsel %vm129_vm0, %v1044_v52, 0.0  ;;  %v1275_v52 = vld [vmem:[%s4297_s13 + $0x30] sm:$0xff] }
 0x719   :  { %1050 = vadd.xlane.f32.xlu1 %v1049_v24  ;;  %1300 = vmatpush.msra.mxu3 %v1275_v52 }
 0x72f   :  { %v1029_v54 = vpop.xlane.xlu0 %1028 }
 0x730   :  { %v1039_v55 = vmul.f32 %v3663_v41, %v1029_v54  ;;  %v1274_v54 = vld [vmem:[%s4297_s13 + $0x28] sm:$0xff] }
 0x731   :  { %1301 = vmatpush.msra.mxu3 %v1274_v54 }
 0x732   :  { %v3670_v56 = vsub.f32 %v1017_v25, %v1039_v55 }
 0x734   :  { %v1045_v58 = vmul.f32 %v3670_v56, %v3670_v56 }
 0x736   :  { %v1052_v60 = vsel %vm1026_vm9, %v1045_v58, 0.0 }
 0x737   :  { %1053 = vadd.xlane.f32.xlu0 %v1052_v60 }
 0x784   :  { %v1048_v1 = vpop.xlane.xlu0 %1047 }
 0x785   :  { %v1055_v43 = vmul.f32 %v1048_v1, %v3663_v41 }
 0x787   :  { %v1058_v2 = vadd.f32 1e-05, %v1055_v43 }
 0x789   :  { %3048 = vrsqrt.f32 %v1058_v2  ;;  %vm1067_vm12 = vweird.f32 %v1058_v2 }
 0x78c   :  { %v1051_v4 = vpop.xlane.xlu1 %1050 }
 0x78d   :  { %v1056_v5 = vmul.f32 %v1051_v4, %v3663_v41  ;;  %v1270_v4 = vld [vmem:[%s4297_s13 + $0x8] sm:$0xff] }
 0x78f   :  { %v3049_v44 = vpop.eup %3048  ;;  %v1059_v9 = vadd.f32 1e-05, %v1056_v5 }
 0x790   :  { %v1062_v6 = vmul.f32 %v3049_v44, %v1058_v2  ;;  %vm1068_vm11 = vweird.f32 %v3049_v44 }
 0x791   :  { %3050 = vrsqrt.f32 %v1059_v9  ;;  %vm1069_vm13 = vmor %vm1067_vm12, %vm1068_vm11  ;;  %vm1077_vm15 = vweird.f32 %v1059_v9 }
 0x792   :  { %v1063_v7 = vmul.f32 %v3049_v44, %v1062_v6 }
 0x794   :  { %v1064_v53 = vmul.f32 0.5, %v1063_v7 }
 0x796   :  { %v1065_v8 = vsub.f32 1.5, %v1064_v53 }
 0x797   :  { %v3051_v10 = vpop.eup %3050 }
 0x798   :  { %v1066_v11 = vmul.f32 %v3049_v44, %v1065_v8  ;;  %v1072_v12 = vmul.f32 %v3051_v10, %v1059_v9  ;;  %vm1078_vm14 = vweird.f32 %v3051_v10 }
 0x799   :  { %vm1079_vm5 = vmor %vm1077_vm15, %vm1078_vm14 }
 0x79a   :  { %v1070_v15 = vsel %vm1069_vm13, %v3049_v44, %v1066_v11  ;;  %v1073_v14 = vmul.f32 %v3051_v10, %v1072_v12  ;;  %v1269_v44 = vld [vmem:[%s4297_s13] sm:$0xff] }
 0x79b   :  { %v1091_v59 = vmul.f32 %v1070_v15, %v1040_v42 }
 0x79c   :  { %v1074_v16 = vmul.f32 0.5, %v1073_v14 }
 0x79d   :  { %v1097_v17 = vmul.f32 %v2981_v13, %v1091_v59 }
 0x79e   :  { %v1075_v19 = vsub.f32 1.5, %v1074_v16 }
 0x79f   :  { %v3695_v21 = vadd.f32 %v2982_v0, %v1097_v17 }
 0x7a0   :  { %v1076_v3 = vmul.f32 %v3051_v10, %v1075_v19 }
 0x7a1   :  { %2828 = vmatmul.msk.f32.vlgmr.msrb.gmra.mxu2 %vm129_vm0, %v3695_v21 }
 0x7a2   :  { %v1080_v22 = vsel %vm1079_vm5, %v3051_v10, %v1076_v3 }
 0x7a3   :  { %v1092_v23 = vmul.f32 %v1080_v22, %v1041_v27 }
 0x7a5   :  { %v1098_v57 = vmul.f32 %v2981_v13, %v1092_v23 }
 0x7a7   :  { %v3699_v45 = vadd.f32 %v2982_v0, %v1098_v57 }
 0x7a9   :  { %2829 = vmatmul.msk.f32.gmra.mxu2 %vm129_vm0, %v3699_v45 }
 0x7aa   :  { %v1054_v48 = vpop.xlane.xlu0 %1053 }
 0x7ab   :  { %v1057_v26 = vmul.f32 %v1054_v48, %v3663_v41 }
 0x7ad   :  { %v1060_v18 = vadd.f32 1e-05, %v1057_v26 }
 0x7af   :  { %3052 = vrsqrt.f32 %v1060_v18  ;;  %vm1087_vm7 = vweird.f32 %v1060_v18 }
 0x7b5   :  { %v3053_v29 = vpop.eup %3052 }
 0x7b6   :  { %v1082_v30 = vmul.f32 %v3053_v29, %v1060_v18  ;;  %vm1088_vm6 = vweird.f32 %v3053_v29 }
 0x7b7   :  { %vm1089_vm8 = vmor %vm1087_vm7, %vm1088_vm6 }
 0x7b8   :  { %v1083_v32 = vmul.f32 %v3053_v29, %v1082_v30 }
 0x7ba   :  { %v1084_v46 = vmul.f32 0.5, %v1083_v32 }
 0x7bc   :  { %v1085_v33 = vsub.f32 1.5, %v1084_v46 }
 0x7be   :  { %v1086_v25 = vmul.f32 %v3053_v29, %v1085_v33 }
 0x7c0   :  { %v1090_v34 = vsel %vm1089_vm8, %v3053_v29, %v1086_v25  ;;  %vm1281_vm8 = vcmask 523264  }
 0x7c1   :  { %v1093_v35 = vmul.f32 %v1090_v34, %v3670_v56  ;;  %v1273_v56 = vld [vmem:[%s4297_s13 + $0x20] sm:$0xff] }
 0x7c2   :  { %1302 = vmatpush.msra.mxu3 %v1273_v56 }
 0x7c3   :  { %v1099_v36 = vmul.f32 %v2981_v13, %v1093_v35 }
 0x7c4   :  { %1303 = vmatpush.msra.mxu3 %v1272_v49 }
 0x7c5   :  { %v3705_v28 = vadd.f32 %v2982_v0, %v1099_v36 }
 0x7c6   :  { %1304 = vmatpush.msra.mxu3 %v1271_v63 }
 0x7c7   :  { %2830 = vmatmul.msk.f32.gmra.mxu2 %vm129_vm0, %v3705_v28 }
 0x7c8   :  { %1305 = vmatpush.msra.mxu3 %v1270_v4 }
 0x7ca   :  { %1306 = vmatpush.msra.mxu3 %v1269_v44 }
 0x824   :  { %v1140_v39 = vpop.f32.mrf.mxu2 }
 0x825   :  { %v3715_v40 = vadd.f32 %v3712_v38, %v1140_v39 }
 0x827   :  { %v3718_v47 = vmul.f32 0.70710677, %v3715_v40  ;;  %v1149_v49 = vmul.f32 0.5, %v3715_v40 }
 0x829   :  { %v1161_v37 = vand.u32 2147483647, %v3718_v47  ;;  %vm1155_vm7 = vcmp.ge.f32.partialorder %v3718_v47, 0.0 }
 0x82b   :  { %v1164_v42 = vmul.f32 0.3275911, %v1161_v37  ;;  %v1242_v8 = vsub.f32 0.0, %v1161_v37 }
 0x82c   :  { %v1143_v20 = vpop.f32.mrf.mxu2 }
 0x82d   :  { %v1167_v31 = vadd.f32 1.0, %v1164_v42  ;;  %v3722_v50 = vadd.f32 %v3712_v38, %v1143_v20  ;;  %v1245_v14 = vmul.f32 %v1242_v8, %v1161_v37 }
 0x82f   :  { %3054 = vrcp.f32 %v1167_v31  ;;  %v3728_v27 = vmul.f32 0.70710677, %v3722_v50  ;;  %v1181_v1 = vand.u32 2147483648, %v1167_v31  ;;  %v1179_v2 = vand.u32 2147483647, %v1167_v31 }
 0x830   :  { %vm1175_vm11 = vweird.f32 %v1167_v31  ;;  %v1248_v22 = vmul.f32 1.442695, %v1245_v14 }
 0x831   :  { %v1162_v24 = vand.u32 2147483647, %v3728_v27  ;;  %v1182_v9 = vor.u32 1.1754944e-38, %v1181_v1  ;;  %vm1180_vm13 = vcmp.eq.f32.partialorder %v1179_v2, 8.507059e+37 }
 0x833   :  { %v1165_v55 = vmul.f32 0.3275911, %v1162_v24  ;;  %v1243_v48 = vsub.f32 0.0, %v1162_v24 }
 0x835   :  { %v3055_v58 = vpop.eup %3054  ;;  %v1168_v61 = vadd.f32 1.0, %v1165_v55  ;;  %v1246_v25 = vmul.f32 %v1243_v48, %v1162_v24  ;;  %v3161_v24 = vmov -1.0  }
 0x836   :  { %v1171_v60 = vmul.f32 %v3055_v58, %v1167_v31  ;;  %vm1176_vm10 = vweird.f32 %v3055_v58 }
 0x837   :  { %3056 = vrcp.f32 %v1168_v61  ;;  %vm1177_vm12 = vmor %vm1175_vm11, %vm1176_vm10  ;;  %v1196_v15 = vand.u32 2147483648, %v1168_v61  ;;  %v1194_v0 = vand.u32 2147483647, %v1168_v61  ;;  %vm1190_vm15 = vweird.f32 %v1168_v61 }
 0x838   :  { %v1172_v62 = vsub.f32 1.0, %v1171_v60  ;;  %3058 = vpow2.f32 %v1248_v22  ;;  %v1250_v20 = vmul.f32 1.442695, %v1246_v25  ;;  %vm1156_vm10 = vcmp.ge.f32.partialorder %v3728_v27, 0.0 }
 0x839   :  { %v1197_v3 = vor.u32 1.1754944e-38, %v1196_v15  ;;  %vm1195_vm6 = vcmp.eq.f32.partialorder %v1194_v0, 8.507059e+37 }
 0x83a   :  { %v1173_v43 = vmul.f32 %v3055_v58, %v1172_v62  ;;  %3060 = vpow2.f32 %v1250_v20 }
 0x83c   :  { %v1174_v5 = vadd.f32 %v3055_v58, %v1173_v43 }
 0x83d   :  { %v3057_v6 = vpop.eup %3056 }
 0x83e   :  { %v1178_v7 = vsel %vm1177_vm12, %v3055_v58, %v1174_v5  ;;  %v1186_v10 = vmul.f32 %v3057_v6, %v1168_v61  ;;  %vm1191_vm14 = vweird.f32 %v3057_v6  ;;  %v3059_v31 = vpop.eup %3058  ;;  %v1158_v58 = vsel %vm1155_vm7, 1.0, %v3161_v24 }
 0x83f   :  { %v1183_v53 = vsel %vm1180_vm13, %v1182_v9, %v1178_v7  ;;  %vm1192_vm5 = vmor %vm1190_vm15, %vm1191_vm14 }
 0x840   :  { %v1215_v11 = vmul.f32 1.0614054, %v1183_v53  ;;  %v1187_v12 = vsub.f32 1.0, %v1186_v10  ;;  %v3061_v1 = vpop.eup %3060  ;;  %v1150_v10 = vmul.f32 0.5, %v3722_v50 }
 0x842   :  { %v1218_v13 = vadd.f32 -1.4531521, %v1215_v11  ;;  %v1188_v59 = vmul.f32 %v3057_v6, %v1187_v12 }
 0x844   :  { %v1221_v16 = vmul.f32 %v1218_v13, %v1183_v53  ;;  %v1189_v17 = vadd.f32 %v3057_v6, %v1188_v59 }
 0x846   :  { %v1224_v19 = vadd.f32 1.4214138, %v1221_v16  ;;  %v1193_v23 = vsel %vm1192_vm5, %v3057_v6, %v1189_v17  ;;  %v1159_v6 = vsel %vm1156_vm10, 1.0, %v3161_v24 }
 0x847   :  { %v1198_v26 = vsel %vm1195_vm6, %v1197_v3, %v1193_v23 }
 0x848   :  { %v1227_v57 = vmul.f32 %v1224_v19, %v1183_v53  ;;  %v1216_v18 = vmul.f32 1.0614054, %v1198_v26 }
 0x84a   :  { %v1230_v29 = vadd.f32 -0.28449672, %v1227_v57  ;;  %v1146_v30 = vpop.f32.mrf.mxu2  ;;  %v1219_v46 = vadd.f32 -1.4531521, %v1216_v18 }
 0x84b   :  { %v3753_v32 = vadd.f32 %v3712_v38, %v1146_v30 }
 0x84c   :  { %v1233_v33 = vmul.f32 %v1230_v29, %v1183_v53  ;;  %v1222_v35 = vmul.f32 %v1219_v46, %v1198_v26 }
 0x84d   :  { %v3756_v34 = vmul.f32 0.70710677, %v3753_v32  ;;  %v1151_v25 = vmul.f32 0.5, %v3753_v32 }
 0x84e   :  { %v1236_v36 = vadd.f32 0.2548296, %v1233_v33  ;;  %v1225_v37 = vadd.f32 1.4214138, %v1222_v35 }
 0x84f   :  { %v1163_v39 = vand.u32 2147483647, %v3756_v34  ;;  %vm1157_vm15 = vcmp.ge.f32.partialorder %v3756_v34, 0.0 }
 0x850   :  { %v1239_v42 = vmul.f32 %v1236_v36, %v1183_v53  ;;  %v1228_v52 = vmul.f32 %v1225_v37, %v1198_v26  ;;  %v1160_v46 = vsel %vm1157_vm15, 1.0, %v3161_v24 }
 0x851   :  { %v1166_v51 = vmul.f32 0.3275911, %v1163_v39  ;;  %v1244_v14 = vsub.f32 0.0, %v1163_v39 }
 0x852   :  { %v1254_v38 = vmul.f32 %v3059_v31, %v1239_v42  ;;  %v1231_v55 = vadd.f32 -0.28449672, %v1228_v52 }
 0x853   :  { %v1169_v54 = vadd.f32 1.0, %v1166_v51  ;;  %v1247_v17 = vmul.f32 %v1244_v14, %v1163_v39  ;;  %v2984_v39 = vld [vmem:[%s4296_s14] ss:$0 sm:$0xff] }
 0x854   :  { %v1257_v56 = vsub.f32 1.0, %v1254_v38  ;;  %v1234_v61 = vmul.f32 %v1231_v55, %v1198_v26 }
 0x855   :  { %3062 = vrcp.f32 %v1169_v54  ;;  %v1211_v7 = vand.u32 2147483648, %v1169_v54  ;;  %v1209_v8 = vand.u32 2147483647, %v1169_v54  ;;  %vm1205_vm12 = vweird.f32 %v1169_v54 }
 0x856   :  { %v1260_v60 = vmul.f32 %v1257_v56, %v1158_v58  ;;  %v1237_v63 = vadd.f32 0.2548296, %v1234_v61  ;;  %v1252_v22 = vmul.f32 1.442695, %v1247_v17  ;;  %v2985_v17 = vld [vmem:[%s4298_s15] ss:$0 sm:$0xff] }
 0x857   :  { %v1212_v27 = vor.u32 1.1754944e-38, %v1211_v7  ;;  %vm1210_vm14 = vcmp.eq.f32.partialorder %v1209_v8, 8.507059e+37  ;;  %v2834_v7 = vld [vmem:[%s4333_s30 + $0x20] sm:$0xff] }
 0x858   :  { %v1263_v62 = vadd.f32 1.0, %v1260_v60  ;;  %v1240_v2 = vmul.f32 %v1237_v63, %v1198_v26  ;;  %3064 = vpow2.f32 %v1252_v22 }
 0x85a   :  { %v1266_v43 = vmul.f32 %v1263_v62, %v1149_v49  ;;  %v1255_v5 = vmul.f32 %v3061_v1, %v1240_v2 }
 0x85b   :  { %v3063_v47 = vpop.eup %3062 }
 0x85c   :  { %v1201_v4 = vmul.f32 %v3063_v47, %v1169_v54  ;;  %2831 = vmatmul.msk.f32.vlgmr.msra.gmra.mxu3 %vm1281_vm8, %v1266_v43  ;;  %v1258_v9 = vsub.f32 1.0, %v1255_v5  ;;  %vm1206_vm11 = vweird.f32 %v3063_v47 }
 0x85d   :  { %vm1207_vm13 = vmor %vm1205_vm12, %vm1206_vm11 }
 0x85e   :  { %v1202_v44 = vsub.f32 1.0, %v1201_v4  ;;  %v1261_v40 = vmul.f32 %v1258_v9, %v1159_v6  ;;  %v3065_v18 = vpop.eup %3064  ;;  %v2836_v9 = vld [vmem:[%s4333_s30 + $0x30] sm:$0xff]  ;;  %v2835_v6 = vld [vmem:[%s4333_s30 + $0x28] sm:$0xff] }
 0x860   :  { %v1203_v53 = vmul.f32 %v3063_v47, %v1202_v44  ;;  %v1264_v11 = vadd.f32 1.0, %v1261_v40  ;;  %v2837_v44 = vld [vmem:[%s4333_s30 + $0x38] sm:$0xff] }
 0x861   :  { %1431 = vmatpush.msrb.mxu0 %v2837_v44  ;;  %v3858_v44 = vld [vmem:[%s4337_s29 + $0x8] sm:$0xff] }
 0x862   :  { %v1204_v12 = vadd.f32 %v3063_v47, %v1203_v53  ;;  %v1267_v13 = vmul.f32 %v1264_v11, %v1150_v10 }
 0x863   :  { %1432 = vmatpush.msrb.mxu0 %v2836_v9 }
 0x864   :  { %v1208_v15 = vsel %vm1207_vm13, %v3063_v47, %v1204_v12  ;;  %2832 = vmatmul.msk.f32.gmra.mxu3 %vm1281_vm8, %v1267_v13 }
 0x865   :  { %v1213_v59 = vsel %vm1210_vm14, %v1212_v27, %v1208_v15  ;;  %1433 = vmatpush.msrb.mxu0 %v2835_v6 }
 0x866   :  { %v1217_v0 = vmul.f32 1.0614054, %v1213_v59 }
 0x867   :  { %1434 = vmatpush.msrb.mxu0 %v2834_v7 }
 0x868   :  { %v1220_v16 = vadd.f32 -1.4531521, %v1217_v0 }
 0x86a   :  { %v1223_v19 = vmul.f32 %v1220_v16, %v1213_v59 }
 0x86c   :  { %v1226_v3 = vadd.f32 1.4214138, %v1223_v19 }
 0x86e   :  { %v1229_v23 = vmul.f32 %v1226_v3, %v1213_v59 }
 0x870   :  { %v1232_v50 = vadd.f32 -0.28449672, %v1229_v23  ;;  %v2986_v23 = vld [vmem:[%s4299_s16] ss:$0 sm:$0xff] }
 0x872   :  { %v1235_v57 = vmul.f32 %v1232_v50, %v1213_v59 }
 0x874   :  { %v1238_v48 = vadd.f32 0.2548296, %v1235_v57 }
 0x876   :  { %v1241_v26 = vmul.f32 %v1238_v48, %v1213_v59 }
 0x878   :  { %v1256_v29 = vmul.f32 %v3065_v18, %v1241_v26 }
 0x87a   :  { %v1259_v30 = vsub.f32 1.0, %v1256_v29 }
 0x87c   :  { %v1262_v33 = vmul.f32 %v1259_v30, %v1160_v46 }
 0x87e   :  { %v1265_v35 = vadd.f32 1.0, %v1262_v33 }
 0x880   :  { %v1268_v36 = vmul.f32 %v1265_v35, %v1151_v25 }
 0x882   :  { %2833 = vmatmul.msk.f32.gmra.mxu3 %vm1281_vm8, %v1268_v36 }
 0x8df   :  { %v1308_v37 = vpop.f32.mrf.mxu3 }
 0x8e0   :  { %v1309_v42 = vadd.f32 %v2984_v39, %v1308_v37 }
 0x8e2   :  { %v1317_v20 = vadd.f32 %v1309_v42, %v3695_v21 }
 0x8e4   :  { %v1322_v34 = vsel %vm129_vm0, %v1317_v20, 0.0 }
 0x8e5   :  { %1323 = vadd.xlane.f32.xlu1 %v1322_v34 }
 0x8e7   :  { %v1311_v31 = vpop.f32.mrf.mxu3 }
 0x8e8   :  { %v1312_v51 = vadd.f32 %v2984_v39, %v1311_v31 }
 0x8ea   :  { %v1318_v52 = vadd.f32 %v1312_v51, %v3699_v45 }
 0x8ec   :  { %v1325_v32 = vsel %vm129_vm0, %v1318_v52, 0.0 }
 0x8ed   :  { %1326 = vadd.xlane.f32.xlu0 %v1325_v32 }
 0x905   :  { %v1314_v38 = vpop.f32.mrf.mxu3 }
 0x906   :  { %v1315_v54 = vadd.f32 %v2984_v39, %v1314_v38 }
 0x908   :  { %v1319_v55 = vadd.f32 %v1315_v54, %v3705_v28 }
 0x90a   :  { %v1328_v56 = vsel %vm1026_vm9, %v1319_v55, 0.0 }
 0x90b   :  { %1329 = vadd.xlane.f32.xlu1 %v1328_v56 }
 0x958   :  { %v1324_v58 = vpop.xlane.xlu1 %1323 }
 0x959   :  { %v1331_v21 = vmul.f32 %v1324_v58, %v3663_v41 }
 0x95b   :  { %v1334_v60 = vsub.f32 %v1317_v20, %v1331_v21 }
 0x95d   :  { %v1337_v61 = vmul.f32 %v1334_v60, %v1334_v60 }
 0x95f   :  { %v1340_v49 = vsel %vm129_vm0, %v1337_v61, 0.0 }
 0x960   :  { %1341 = vadd.xlane.f32.xlu0 %v1340_v49  ;;  %v1327_v62 = vpop.xlane.xlu0 %1326 }
 0x961   :  { %v1332_v45 = vmul.f32 %v1327_v62, %v3663_v41 }
 0x963   :  { %v1335_v63 = vsub.f32 %v1318_v52, %v1332_v45 }
 0x965   :  { %v1338_v1 = vmul.f32 %v1335_v63, %v1335_v63 }
 0x967   :  { %v1343_v43 = vsel %vm129_vm0, %v1338_v1, 0.0 }
 0x968   :  { %1344 = vadd.xlane.f32.xlu2 %v1343_v43 }
 0x97e   :  { %v1330_v28 = vpop.xlane.xlu1 %1329 }
 0x97f   :  { %v1333_v2 = vmul.f32 %v1330_v28, %v3663_v41  ;;  %v3851_v28 = vld [vmem:[%s4337_s29] sm:$0xff] }
 0x981   :  { %v3785_v47 = vsub.f32 %v1319_v55, %v1333_v2  ;;  %v2987_v55 = vld [vmem:[%s4336_s27 + $0x1] ss:$0 sm:$0xff] }
 0x983   :  { %v1339_v4 = vmul.f32 %v3785_v47, %v3785_v47 }
 0x985   :  { %v1346_v5 = vsel %vm1026_vm9, %v1339_v4, 0.0 }
 0x986   :  { %1347 = vadd.xlane.f32.xlu1 %v1346_v5 }
 0x9d3   :  { %v1342_v53 = vpop.xlane.xlu0 %1341 }
 0x9d4   :  { %v1349_v40 = vmul.f32 %v1342_v53, %v3663_v41 }
 0x9d6   :  { %v1352_v8 = vadd.f32 1e-05, %v1349_v40  ;;  %v3865_v40 = vld [vmem:[%s4337_s29 + $0x10] sm:$0x3]  ;;  %s4338_s29 = smov 112  }
 0x9d8   :  { %3066 = vrsqrt.f32 %v1352_v8  ;;  %vm1361_vm6 = vweird.f32 %v1352_v8 }
 0x9db   :  { %v1345_v10 = vpop.xlane.xlu2 %1344 }
 0x9dc   :  { %v1350_v12 = vmul.f32 %v1345_v10, %v3663_v41 }
 0x9de   :  { %v3067_v11 = vpop.eup %3066  ;;  %v1353_v13 = vadd.f32 1e-05, %v1350_v12 }
 0x9df   :  { %v1356_v27 = vmul.f32 %v3067_v11, %v1352_v8  ;;  %vm1362_vm5 = vweird.f32 %v3067_v11 }
 0x9e0   :  { %3068 = vrsqrt.f32 %v1353_v13  ;;  %vm1363_vm7 = vmor %vm1361_vm6, %vm1362_vm5  ;;  %vm1371_vm11 = vweird.f32 %v1353_v13 }
 0x9e1   :  { %v1357_v15 = vmul.f32 %v3067_v11, %v1356_v27 }
 0x9e3   :  { %v1358_v14 = vmul.f32 0.5, %v1357_v15 }
 0x9e5   :  { %v1359_v59 = vsub.f32 1.5, %v1358_v14 }
 0x9e6   :  { %v3069_v16 = vpop.eup %3068 }
 0x9e7   :  { %v1360_v0 = vmul.f32 %v3067_v11, %v1359_v59  ;;  %v1366_v3 = vmul.f32 %v3069_v16, %v1353_v13  ;;  %vm1372_vm10 = vweird.f32 %v3069_v16 }
 0x9e8   :  { %vm1373_vm12 = vmor %vm1371_vm11, %vm1372_vm10 }
 0x9e9   :  { %v1364_v19 = vsel %vm1363_vm7, %v3067_v11, %v1360_v0  ;;  %v1367_v50 = vmul.f32 %v3069_v16, %v1366_v3 }
 0x9ea   :  { %v1385_v22 = vmul.f32 %v1364_v19, %v1334_v60 }
 0x9eb   :  { %v1368_v48 = vmul.f32 0.5, %v1367_v50 }
 0x9ec   :  { %v1391_v57 = vmul.f32 %v2985_v17, %v1385_v22 }
 0x9ed   :  { %v1369_v18 = vsub.f32 1.5, %v1368_v48 }
 0x9ee   :  { %v3810_v26 = vadd.f32 %v2986_v23, %v1391_v57 }
 0x9ef   :  { %v1370_v29 = vmul.f32 %v3069_v16, %v1369_v18 }
 0x9f0   :  { %2839 = vmatmul.msk.f32.vlgmr.msrb.gmra.mxu0 %vm129_vm0, %v3810_v26 }
 0x9f1   :  { %v1374_v30 = vsel %vm1373_vm12, %v3069_v16, %v1370_v29 }
 0x9f2   :  { %v1386_v46 = vmul.f32 %v1374_v30, %v1335_v63 }
 0x9f4   :  { %v1392_v33 = vmul.f32 %v2985_v17, %v1386_v46 }
 0x9f6   :  { %v3814_v25 = vadd.f32 %v2986_v23, %v1392_v33 }
 0x9f8   :  { %2840 = vmatmul.msk.f32.gmra.mxu0 %vm129_vm0, %v3814_v25 }
 0x9f9   :  { %v1348_v35 = vpop.xlane.xlu1 %1347 }
 0x9fa   :  { %v1351_v36 = vmul.f32 %v1348_v35, %v3663_v41 }
 0x9fc   :  { %v1354_v39 = vadd.f32 1e-05, %v1351_v36 }
 0x9fe   :  { %3070 = vrsqrt.f32 %v1354_v39  ;;  %vm1381_vm14 = vweird.f32 %v1354_v39 }
 0xa04   :  { %v3071_v37 = vpop.eup %3070 }
 0xa05   :  { %v1376_v42 = vmul.f32 %v3071_v37, %v1354_v39  ;;  %vm1382_vm13 = vweird.f32 %v3071_v37 }
 0xa06   :  { %vm1383_vm15 = vmor %vm1381_vm14, %vm1382_vm13 }
 0xa07   :  { %v1377_v20 = vmul.f32 %v3071_v37, %v1376_v42 }
 0xa09   :  { %v1378_v34 = vmul.f32 0.5, %v1377_v20 }
 0xa0b   :  { %v1379_v31 = vsub.f32 1.5, %v1378_v34 }
 0xa0d   :  { %v1380_v51 = vmul.f32 %v3071_v37, %v1379_v31 }
 0xa0f   :  { %v1384_v52 = vsel %vm1383_vm15, %v3071_v37, %v1380_v51 }
 0xa10   :  { %v1387_v32 = vmul.f32 %v1384_v52, %v3785_v47 }
 0xa12   :  { %v1393_v38 = vmul.f32 %v2985_v17, %v1387_v32 }
 0xa14   :  { %v3820_v54 = vadd.f32 %v2986_v23, %v1393_v38 }
 0xa16   :  { %2841 = vmatmul.msk.f32.gmra.mxu0 %vm129_vm0, %v3820_v54 }
 0xa6d   :  { %v1436_v56 = vpop.f32.mrf.mxu0 }
 0xa6e   :  { %v3827_v58 = vadd.f32 %v2987_v55, %v1436_v56 }
 0xa70   :  { %1453 = vrot.lane.b32.xlu1 %v3827_v58, %s3149_s6 }
 0xa75   :  { %v1439_v21 = vpop.f32.mrf.mxu0 }
 0xa76   :  { %v3831_v60 = vadd.f32 %v2987_v55, %v1439_v21 }
 0xa78   :  { %1455 = vrot.lane.b32.xlu2 %v3831_v60, %s3149_s6  ;;  %v3871_v11 = vpack.i.bf16 %v3827_v58, %v3831_v60 }
 0xa93   :  { %v1442_v61 = vpop.f32.mrf.mxu0 }
 0xa94   :  { %v3835_v49 = vadd.f32 %v2987_v55, %v1442_v61 }
 0xa96   :  { %1457 = vrot.lane.b32.xlu0 %v3835_v49, %s3149_s6 }
 0xad2   :  { %v1456_v45 = vpop.permute.xlu2 %1455 }
 0xae2   :  { %v1454_v63 = vpop.permute.xlu1 %1453 }
 0xb08   :  { %v1458_v62 = vpop.permute.xlu0 %1457 }
 0xb09   :  { %2846 = vmatpush.xpose.msk.msra.mxu1 %vm178_vm1, %v1458_v62 }
 0xb0d   :  { %2847 = vmatpush.xpose.msk.msra.mxu1 %vm178_vm1, %v1456_v45 }
 0xb11   :  { %2848 = vmatpush.xpose.msk.msra.mxu1 %vm178_vm1, %v1454_v63 }
 0xb14   :  { %2849 = vmatmul.msk.f32.vlgmr.msra.gmra.mxu1 %vm178_vm1, %v3827_v58 }
 0xb1c   :  { %2850 = vmatmul.msk.f32.gmra.mxu1 %vm178_vm1, %v3831_v60 }
 0xb24   :  { %2851 = vmatmul.msk.f32.gmra.mxu1 %vm178_vm1, %v3835_v49 }
 0xb91   :  { %v1488_v1 = vpop.f32.mrf.mxu1 }
 0xb92   :  { %v1497_v43 = vmul.f32 0.35355338, %v1488_v1  ;;  %v2842_v1 = vld [vmem:[%s4290_s7 + $0x20] sm:$0xff] }
 0xb94   :  { %v1500_v2 = vadd.f32 %v3851_v28, %v1497_v43 }
 0xb96   :  { %v1503_v47 = vsel %vm223_vm2, %v1500_v2, -inf }
 0xb97   :  { %1504 = vmax.xlane.f32.xlu0 %v1503_v47 }
 0xb99   :  { %v1491_v4 = vpop.f32.mrf.mxu1 }
 0xb9a   :  { %v1498_v5 = vmul.f32 0.35355338, %v1491_v4 }
 0xb9c   :  { %v1501_v9 = vadd.f32 %v3858_v44, %v1498_v5 }
 0xb9e   :  { %v1506_v6 = vsel %vm223_vm2, %v1501_v9, -inf }
 0xb9f   :  { %1507 = vmax.xlane.f32.xlu2 %v1506_v6 }
 0xba1   :  { %v1494_v7 = vpop.f32.mrf.mxu1 }
 0xba2   :  { %v1499_v53 = vmul.f32 0.35355338, %v1494_v7 }
 0xba4   :  { %v1502_v8 = vadd.f32 %v3865_v40, %v1499_v53 }
 0xba6   :  { %v1509_v10 = vsel %vm230_vm3, %v1502_v8, -inf }
 0xba7   :  { %1510 = vmax.xlane.f32.xlu1 %v1509_v10 }
 0xbc0   :  { %2960 = vrot.lane.b32.xlu1 %v3871_v11, %s3150_s23 }
 0xbc8   :  { %1620 = vrot.lane.b32.xlu1 %v3827_v58, %s3152_s24 }
 0xbd0   :  { %1873 = vrot.lane.b32.xlu1 %v3835_v49, %s3153_s0 }
 0xbd8   :  { %1871 = vrot.lane.b32.xlu1 %v3831_v60, %s3153_s0 }
 0xbe0   :  { %1869 = vrot.lane.b32.xlu1 %v3827_v58, %s3153_s0  ;;  %s4339_s0 = smov 88  }
 0xbe8   :  { %1865 = vrot.lane.b32.xlu1 %v3831_v60, %s4338_s29 }
 0xc0a   :  { %v1505_v12 = vpop.xlane.xlu0 %1504 }
 0xc0b   :  { %v1512_v27 = vsub.f32 %v1500_v2, %v1505_v12 }
 0xc0d   :  { %v1515_v13 = vmul.f32 1.442695, %v1512_v27 }
 0xc0f   :  { %3072 = vpow2.f32 %v1515_v13 }
 0xc12   :  { %v1508_v15 = vpop.xlane.xlu2 %1507 }
 0xc13   :  { %v1513_v14 = vsub.f32 %v1501_v9, %v1508_v15 }
 0xc15   :  { %v3885_v59 = vpop.eup %3072  ;;  %v1517_v0 = vmul.f32 1.442695, %v1513_v14 }
 0xc16   :  { %v1521_v16 = vsel %vm223_vm2, %v3885_v59, 0.0 }
 0xc17   :  { %3074 = vpow2.f32 %v1517_v0  ;;  %1522 = vadd.xlane.f32.xlu0 %v1521_v16 }
 0xc1a   :  { %v1511_v17 = vpop.xlane.xlu1 %1510 }
 0xc1b   :  { %v1514_v19 = vsub.f32 %v1502_v8, %v1511_v17 }
 0xc1d   :  { %v3889_v3 = vpop.eup %3074  ;;  %v1519_v22 = vmul.f32 1.442695, %v1514_v19 }
 0xc1e   :  { %v1524_v23 = vsel %vm223_vm2, %v3889_v3, 0.0 }
 0xc1f   :  { %3076 = vpow2.f32 %v1519_v22  ;;  %1525 = vadd.xlane.f32.xlu2 %v1524_v23 }
 0xc25   :  { %v3893_v50 = vpop.eup %3076 }
 0xc26   :  { %v1527_v57 = vsel %vm230_vm3, %v3893_v50, 0.0 }
 0xc27   :  { %1528 = vadd.xlane.f32.xlu2 %v1527_v57 }
 0xc2b   :  { %1579 = vrot.lane.b32.xlu0 %v3835_v49, %s3150_s23  ;;  %s4341_s23 = smov 104  }
 0xc32   :  { %v2961_v18 = vpop.permute.xlu1 %2960 }
 0xc33   :  { %1628 = vrot.lane.b32.xlu0 %v3831_v60, %s4339_s0  ;;  %v2962_v55 = vunpack.i.l.bf16 %v2961_v18  ;;  %v2963_v21 = vunpack.i.h.bf16 %v2961_v18 }
 0xc3a   :  { %v1621_v36 = vpop.permute.xlu1 %1620 }
 0xc3b   :  { %1626 = vrot.lane.b32.xlu0 %v3827_v58, %s4339_s0 }
 0xc3f   :  { %1630 = vrot.lane.b32.xlu2 %v3835_v49, %s4339_s0 }
 0xc42   :  { %v1874_v43 = vpop.permute.xlu1 %1873 }
 0xc43   :  { %2084 = vrot.lane.b32.xlu0 %v3835_v49, %s4340_s5 }
 0xc47   :  { %1622 = vrot.lane.b32.xlu2 %v3831_v60, %s3152_s24 }
 0xc4a   :  { %v1872_v14 = vpop.permute.xlu1 %1871 }
 0xc4b   :  { %1624 = vrot.lane.b32.xlu0 %v3835_v49, %s3152_s24 }
 0xc4f   :  { %2082 = vrot.lane.b32.xlu2 %v3831_v60, %s4340_s5 }
 0xc52   :  { %v1870_v22 = vpop.permute.xlu1 %1869 }
 0xc53   :  { %2074 = vrot.lane.b32.xlu0 %v3827_v58, %s4341_s23 }
 0xc57   :  { %2080 = vrot.lane.b32.xlu2 %v3827_v58, %s4340_s5 }
 0xc5b   :  { %2076 = vrot.lane.b32.xlu0 %v3831_v60, %s4341_s23 }
 0xc5f   :  { %1863 = vrot.lane.b32.xlu2 %v3827_v58, %s4338_s29 }
 0xc63   :  { %1867 = vrot.lane.b32.xlu0 %v3835_v49, %s4338_s29 }
 0xc67   :  { %2078 = vrot.lane.b32.xlu2 %v3835_v49, %s4341_s23 }
 0xc8a   :  { %v1523_v48 = vpop.xlane.xlu0 %1522 }
 0xc8b   :  { %3078 = vrcp.f32 %v1523_v48  ;;  %v1541_v37 = vand.u32 2147483648, %v1523_v48  ;;  %vm1535_vm6 = vweird.f32 %v1523_v48  ;;  %v1539_v20 = vand.u32 2147483647, %v1523_v48 }
 0xc8d   :  { %v1542_v52 = vor.u32 1.1754944e-38, %v1541_v37  ;;  %vm1540_vm10 = vcmp.eq.f32.partialorder %v1539_v20, 8.507059e+37 }
 0xc91   :  { %v3079_v29 = vpop.eup %3078 }
 0xc92   :  { %v1531_v30 = vmul.f32 %v3079_v29, %v1523_v48  ;;  %v1526_v46 = vpop.xlane.xlu2 %1525  ;;  %vm1536_vm5 = vweird.f32 %v3079_v29 }
 0xc93   :  { %3080 = vrcp.f32 %v1526_v46  ;;  %vm1537_vm7 = vmor %vm1535_vm6, %vm1536_vm5  ;;  %v1556_v60 = vand.u32 2147483648, %v1526_v46  ;;  %vm1550_vm12 = vweird.f32 %v1526_v46  ;;  %v1554_v63 = vand.u32 2147483647, %v1526_v46 }
 0xc94   :  { %v1532_v33 = vsub.f32 1.0, %v1531_v30 }
 0xc95   :  { %v1557_v5 = vor.u32 1.1754944e-38, %v1556_v60  ;;  %vm1555_vm14 = vcmp.eq.f32.partialorder %v1554_v63, 8.507059e+37 }
 0xc96   :  { %v1533_v35 = vmul.f32 %v3079_v29, %v1532_v33 }
 0xc98   :  { %v1534_v39 = vadd.f32 %v3079_v29, %v1533_v35 }
 0xc99   :  { %v3081_v42 = vpop.eup %3080 }
 0xc9a   :  { %v1546_v34 = vmul.f32 %v3081_v42, %v1526_v46  ;;  %v1529_v31 = vpop.xlane.xlu2 %1528  ;;  %v1538_v51 = vsel %vm1537_vm7, %v3079_v29, %v1534_v39  ;;  %vm1551_vm11 = vweird.f32 %v3081_v42  ;;  %v1866_v29 = vpop.permute.xlu1 %1865 }
 0xc9b   :  { %3082 = vrcp.f32 %v1529_v31  ;;  %v1543_v56 = vsel %vm1540_vm10, %v1542_v52, %v1538_v51  ;;  %vm1552_vm13 = vmor %vm1550_vm12, %vm1551_vm11  ;;  %v1571_v8 = vand.u32 2147483648, %v1529_v31  ;;  %vm1565_vm5 = vweird.f32 %v1529_v31 }
 0xc9c   :  { %v1547_v32 = vsub.f32 1.0, %v1546_v34  ;;  %v1544_v45 = vmul.f32 %v3885_v59, %v1543_v56  ;;  %v1569_v27 = vand.u32 2147483647, %v1529_v31 }
 0xc9d   :  { %v1580_v38 = vpop.permute.xlu0 %1579  ;;  %v1572_v59 = vor.u32 1.1754944e-38, %v1571_v8 }
 0xc9e   :  { %v1548_v58 = vmul.f32 %v3081_v42, %v1547_v32  ;;  %2852 = vmatpush.msk.msra.mxu2 %vm314_vm4, %v1580_v38  ;;  %vm1570_vm7 = vcmp.eq.f32.partialorder %v1569_v27, 8.507059e+37 }
 0xca0   :  { %1608 = vmatpush.msra.mxu2 %v2962_v55  ;;  %v1549_v61 = vadd.f32 %v3081_v42, %v1548_v58 }
 0xca1   :  { %v3083_v62 = vpop.eup %3082 }
 0xca2   :  { %v1561_v2 = vmul.f32 %v3083_v62, %v1529_v31  ;;  %v1631_v47 = vpop.permute.xlu2 %1630  ;;  %1609 = vmatpush.msra.mxu2 %v2963_v21  ;;  %v1553_v4 = vsel %vm1552_vm13, %v3081_v42, %v1549_v61  ;;  %vm1566_vm15 = vweird.f32 %v3083_v62 }
 0xca3   :  { %2853 = vmatmul.msk.f32.vlgmr.msra.gmra.mxu2 %vm223_vm2, %v1544_v45  ;;  %2856 = vmatpush.xpose.msk.msrb.mxu3 %vm178_vm1, %v1631_v47  ;;  %v1558_v53 = vsel %vm1555_vm14, %v1557_v5, %v1553_v4  ;;  %vm1567_vm6 = vmor %vm1565_vm5, %vm1566_vm15 }
 0xca4   :  { %v1562_v9 = vsub.f32 1.0, %v1561_v2  ;;  %1852 = vmatpush.msrb.mxu2 %v2842_v1  ;;  %v1559_v12 = vmul.f32 %v3889_v3, %v1558_v53 }
 0xca5   :  { %v1629_v6 = vpop.permute.xlu0 %1628 }
 0xca6   :  { %v1563_v7 = vmul.f32 %v3083_v62, %v1562_v9 }
 0xca7   :  { %2857 = vmatpush.xpose.msk.msrb.mxu3 %vm178_vm1, %v1629_v6 }
 0xca8   :  { %v1564_v10 = vadd.f32 %v3083_v62, %v1563_v7 }
 0xcaa   :  { %v1623_v13 = vpop.permute.xlu2 %1622  ;;  %v1568_v15 = vsel %vm1567_vm6, %v3083_v62, %v1564_v10 }
 0xcab   :  { %2854 = vmatmul.msk.f32.gmra.mxu2 %vm223_vm2, %v1559_v12  ;;  %v1573_v16 = vsel %vm1570_vm7, %v1572_v59, %v1568_v15 }
 0xcac   :  { %v1574_v17 = vmul.f32 %v3893_v50, %v1573_v16 }
 0xcad   :  { %v1627_v0 = vpop.permute.xlu0 %1626 }
 0xcae   :  { %2858 = vmatpush.xpose.msk.msrb.mxu3 %vm178_vm1, %v1627_v0 }
 0xcb1   :  { %2859 = vmatmul.msk.f32.vlgmr.msrb.gmra.mxu3 %vm178_vm1, %v1621_v36 }
 0xcb2   :  { %2872 = vmatpush.xpose.msk.msra.mxu3 %vm178_vm1, %v1874_v43  ;;  %v2083_v19 = vpop.permute.xlu2 %2082 }
 0xcb3   :  { %2855 = vmatmul.msk.f32.gmra.mxu2 %vm223_vm2, %v1574_v17 }
 0xcb5   :  { %v2085_v3 = vpop.permute.xlu0 %2084 }
 0xcb6   :  { %2873 = vmatpush.xpose.msk.msra.mxu3 %vm178_vm1, %v1872_v14  ;;  %2885 = vmatpush.xpose.msk.msra.mxu2 %vm178_vm1, %v2085_v3 }
 0xcb9   :  { %2860 = vmatmul.msk.f32.gmra.mxu3 %vm178_vm1, %v1623_v13 }
 0xcba   :  { %2874 = vmatpush.xpose.msk.msra.mxu3 %vm178_vm1, %v1870_v22  ;;  %2886 = vmatpush.xpose.msk.msra.mxu2 %vm178_vm1, %v2083_v19  ;;  %v2081_v23 = vpop.permute.xlu2 %2080 }
 0xcbd   :  { %v1625_v57 = vpop.permute.xlu0 %1624 }
 0xcbe   :  { %2887 = vmatpush.xpose.msk.msra.mxu2 %vm178_vm1, %v2081_v23 }
 0xcc1   :  { %2861 = vmatmul.msk.f32.gmra.mxu3 %vm178_vm1, %v1625_v57 }
 0xcc2   :  { %v1864_v48 = vpop.permute.xlu2 %1863 }
 0xcc5   :  { %v2075_v50 = vpop.permute.xlu0 %2074 }
 0xcc9   :  { %2875 = vmatmul.msk.f32.vlgmr.msra.gmra.mxu3 %vm178_vm1, %v1864_v48 }
 0xcca   :  { %v2079_v21 = vpop.permute.xlu2 %2078 }
 0xccd   :  { %v2077_v18 = vpop.permute.xlu0 %2076 }
 0xcd1   :  { %2876 = vmatmul.msk.f32.gmra.mxu3 %vm178_vm1, %v1866_v29 }
 0xcd5   :  { %v1868_v30 = vpop.permute.xlu0 %1867 }
 0xcd9   :  { %2877 = vmatmul.msk.f32.gmra.mxu3 %vm178_vm1, %v1868_v30 }
 0xd26   :  { %v1611_v46 = vpop.f32.mrf.mxu2 }
 0xd27   :  { %2869 = vmatmul.msk.f32.vlgmr.msrb.gmra.mxu2 %vm178_vm1, %v1611_v46 }
 0xd2e   :  { %v1614_v33 = vpop.f32.mrf.mxu2 }
 0xd2f   :  { %2870 = vmatmul.msk.f32.gmra.mxu2 %vm178_vm1, %v1614_v33 }
 0xd34   :  { %v1661_v35 = vpop.f32.mrf.mxu3 }
 0xd35   :  { %v1670_v36 = vmul.f32 0.35355338, %v1661_v35 }
 0xd36   :  { %v1617_v39 = vpop.f32.mrf.mxu2 }
 0xd37   :  { %2871 = vmatmul.msk.f32.gmra.mxu2 %vm178_vm1, %v1617_v39  ;;  %v1673_v37 = vadd.f32 %v3851_v28, %v1670_v36 }
 0xd39   :  { %v1676_v42 = vsel %vm223_vm2, %v1673_v37, -inf }
 0xd3a   :  { %1677 = vmax.xlane.f32.xlu1 %v1676_v42 }
 0xd3c   :  { %v1664_v20 = vpop.f32.mrf.mxu3 }
 0xd3d   :  { %v1671_v34 = vmul.f32 0.35355338, %v1664_v20 }
 0xd3f   :  { %2888 = vmatmul.msk.f32.vlgmr.msra.gmra.mxu2 %vm178_vm1, %v2075_v50  ;;  %v1674_v31 = vadd.f32 %v3858_v44, %v1671_v34 }
 0xd41   :  { %v1679_v51 = vsel %vm223_vm2, %v1674_v31, -inf }
 0xd42   :  { %1680 = vmax.xlane.f32.xlu2 %v1679_v51 }
 0xd44   :  { %v1667_v52 = vpop.f32.mrf.mxu3 }
 0xd45   :  { %v1672_v32 = vmul.f32 0.35355338, %v1667_v52 }
 0xd47   :  { %2889 = vmatmul.msk.f32.gmra.mxu2 %vm178_vm1, %v2077_v18  ;;  %v1675_v38 = vadd.f32 %v3865_v40, %v1672_v32 }
 0xd49   :  { %v1682_v55 = vsel %vm230_vm3, %v1675_v38, -inf }
 0xd4a   :  { %1683 = vmax.xlane.f32.xlu0 %v1682_v55 }
 0xd4c   :  { %v1904_v56 = vpop.f32.mrf.mxu3 }
 0xd4d   :  { %v1913_v58 = vmul.f32 0.35355338, %v1904_v56 }
 0xd4f   :  { %2890 = vmatmul.msk.f32.gmra.mxu2 %vm178_vm1, %v2079_v21  ;;  %v1916_v60 = vadd.f32 %v3851_v28, %v1913_v58 }
 0xd51   :  { %v1919_v61 = vsel %vm223_vm2, %v1916_v60, -inf }
 0xd52   :  { %1920 = vmax.xlane.f32.xlu2 %v1919_v61 }
 0xd54   :  { %v1907_v62 = vpop.f32.mrf.mxu3 }
 0xd55   :  { %v1914_v45 = vmul.f32 0.35355338, %v1907_v62 }
 0xd57   :  { %v1917_v63 = vadd.f32 %v3858_v44, %v1914_v45 }
 0xd59   :  { %v1922_v1 = vsel %vm223_vm2, %v1917_v63, -inf }
 0xd5a   :  { %1923 = vmax.xlane.f32.xlu1 %v1922_v1 }
 0xd5c   :  { %v1910_v43 = vpop.f32.mrf.mxu3 }
 0xd5d   :  { %v1915_v2 = vmul.f32 0.35355338, %v1910_v43 }
 0xd5f   :  { %v3967_v47 = vadd.f32 %v3865_v40, %v1915_v2 }
 0xd61   :  { %v1925_v4 = vsel %vm230_vm3, %v3967_v47, -inf }
 0xd62   :  { %1926 = vmax.xlane.f32.xlu0 %v1925_v4 }
 0xdaa   :  { %v3971_v5 = vpop.f32.mrf.mxu2 }
 0xdad   :  { %v1678_v9 = vpop.xlane.xlu1 %1677 }
 0xdae   :  { %v1685_v6 = vsub.f32 %v1673_v37, %v1678_v9 }
 0xdb0   :  { %v1688_v7 = vmul.f32 1.442695, %v1685_v6 }
 0xdb2   :  { %3084 = vpow2.f32 %v1688_v7  ;;  %v3973_v53 = vpop.f32.mrf.mxu2 }
 0xdb5   :  { %v1681_v8 = vpop.xlane.xlu2 %1680 }
 0xdb6   :  { %v1686_v10 = vsub.f32 %v1674_v31, %v1681_v8 }
 0xdb8   :  { %v3975_v12 = vpop.eup %3084  ;;  %v1690_v27 = vmul.f32 1.442695, %v1686_v10 }
 0xdb9   :  { %v1694_v13 = vsel %vm223_vm2, %v3975_v12, 0.0 }
 0xdba   :  { %3086 = vpow2.f32 %v1690_v27  ;;  %1695 = vadd.xlane.f32.xlu1 %v1694_v13  ;;  %v3979_v15 = vpop.f32.mrf.mxu2 }
 0xdbd   :  { %v1684_v14 = vpop.xlane.xlu0 %1683 }
 0xdbe   :  { %v1687_v59 = vsub.f32 %v1675_v38, %v1684_v14 }
 0xdc0   :  { %v3981_v0 = vpop.eup %3086  ;;  %v1692_v17 = vmul.f32 1.442695, %v1687_v59 }
 0xdc1   :  { %v1697_v16 = vsel %vm223_vm2, %v3981_v0, 0.0 }
 0xdc2   :  { %1698 = vadd.xlane.f32.xlu2 %v1697_v16  ;;  %v2115_v19 = vpop.f32.mrf.mxu2  ;;  %3088 = vpow2.f32 %v1692_v17 }
 0xdc3   :  { %v2124_v3 = vmul.f32 0.35355338, %v2115_v19 }
 0xdc5   :  { %v1921_v22 = vpop.xlane.xlu2 %1920  ;;  %v2127_v23 = vadd.f32 %v3851_v28, %v2124_v3 }
 0xdc6   :  { %v1928_v57 = vsub.f32 %v1916_v60, %v1921_v22 }
 0xdc7   :  { %v2130_v50 = vsel %vm223_vm2, %v2127_v23, -inf }
 0xdc8   :  { %2131 = vmax.xlane.f32.xlu1 %v2130_v50  ;;  %v1931_v48 = vmul.f32 1.442695, %v1928_v57  ;;  %v3987_v30 = vpop.eup %3088 }
 0xdc9   :  { %v1700_v36 = vsel %vm230_vm3, %v3987_v30, 0.0 }
 0xdca   :  { %v2118_v18 = vpop.f32.mrf.mxu2  ;;  %3090 = vpow2.f32 %v1931_v48 }
 0xdcb   :  { %v2125_v29 = vmul.f32 0.35355338, %v2118_v18 }
 0xdcd   :  { %v1924_v46 = vpop.xlane.xlu1 %1923  ;;  %v2128_v33 = vadd.f32 %v3858_v44, %v2125_v29 }
 0xdce   :  { %v1929_v35 = vsub.f32 %v1917_v63, %v1924_v46 }
 0xdcf   :  { %v2133_v28 = vsel %vm223_vm2, %v2128_v33, -inf }
 0xdd0   :  { %1701 = vadd.xlane.f32.xlu1 %v1700_v36  ;;  %2134 = vmax.xlane.f32.xlu0 %v2133_v28  ;;  %v1933_v39 = vmul.f32 1.442695, %v1929_v35  ;;  %v3993_v37 = vpop.eup %3090 }
 0xdd1   :  { %v1937_v42 = vsel %vm223_vm2, %v3993_v37, 0.0 }
 0xdd2   :  { %3092 = vpow2.f32 %v1933_v39  ;;  %v2121_v34 = vpop.f32.mrf.mxu2 }
 0xdd3   :  { %v2126_v31 = vmul.f32 0.35355338, %v2121_v34 }
 0xdd5   :  { %v4008_v51 = vadd.f32 %v3865_v40, %v2126_v31  ;;  %v1927_v55 = vpop.xlane.xlu0 %1926 }
 0xdd6   :  { %v1930_v56 = vsub.f32 %v3967_v47, %v1927_v55 }
 0xdd7   :  { %v2136_v52 = vsel %vm230_vm3, %v4008_v51, -inf }
 0xdd8   :  { %1938 = vadd.xlane.f32.xlu1 %v1937_v42  ;;  %v3999_v44 = vpop.eup %3092  ;;  %v1935_v61 = vmul.f32 1.442695, %v1930_v56 }
 0xdd9   :  { %v1940_v20 = vsel %vm223_vm2, %v3999_v44, 0.0 }
 0xdda   :  { %2965 = vrot.lane.b32.xlu2 %v3871_v11, %s4342_s28 }
 0xde0   :  { %1941 = vadd.xlane.f32.xlu1 %v1940_v20 }
 0xde2   :  { %2206 = vrot.lane.b32.xlu2 %v3835_v49, %s4343_s26 }
 0xde4   :  { %1752 = vrot.lane.b32.xlu0 %v3835_v49, %s4342_s28 }
 0xe0b   :  { %2137 = vmax.xlane.f32.xlu2 %v2136_v52 }
 0xe23   :  { %2970 = vrot.lane.b32.xlu2 %v3871_v11, %s4343_s26 }
 0xe2d   :  { %v1696_v32 = vpop.xlane.xlu1 %1695 }
 0xe2e   :  { %3094 = vrcp.f32 %v1696_v32  ;;  %v1714_v3 = vand.u32 2147483648, %v1696_v32  ;;  %vm1708_vm11 = vweird.f32 %v1696_v32  ;;  %v1712_v22 = vand.u32 2147483647, %v1696_v32 }
 0xe30   :  { %v1715_v48 = vor.u32 1.1754944e-38, %v1714_v3  ;;  %vm1713_vm13 = vcmp.eq.f32.partialorder %v1712_v22, 8.507059e+37 }
 0xe34   :  { %v3095_v62 = vpop.eup %3094 }
 0xe35   :  { %v4014_v38 = vpop.xlane.xlu2 %1698  ;;  %v1704_v63 = vmul.f32 %v3095_v62, %v1696_v32  ;;  %vm1709_vm10 = vweird.f32 %v3095_v62 }
 0xe36   :  { %vm1710_vm12 = vmor %vm1708_vm11, %vm1709_vm10  ;;  %v1729_v36 = vand.u32 2147483648, %v4014_v38  ;;  %vm1723_vm15 = vweird.f32 %v4014_v38  ;;  %v1727_v42 = vand.u32 2147483647, %v4014_v38 }
 0xe37   :  { %v1705_v6 = vsub.f32 1.0, %v1704_v63 }
 0xe38   :  { %v1730_v31 = vor.u32 1.1754944e-38, %v1729_v36  ;;  %vm1728_vm6 = vcmp.eq.f32.partialorder %v1727_v42, 8.507059e+37 }
 0xe39   :  { %v1706_v27 = vmul.f32 %v3095_v62, %v1705_v6 }
 0xe3b   :  { %v2132_v58 = vpop.xlane.xlu1 %2131  ;;  %v1707_v16 = vadd.f32 %v3095_v62, %v1706_v27 }
 0xe3c   :  { %v2139_v21 = vsub.f32 %v2127_v23, %v2132_v58 }
 0xe3d   :  { %v2966_v60 = vpop.permute.xlu2 %2965  ;;  %v1711_v23 = vsel %vm1710_vm12, %v3095_v62, %v1707_v16 }
 0xe3e   :  { %v2142_v40 = vmul.f32 1.442695, %v2139_v21  ;;  %v1716_v29 = vsel %vm1713_vm13, %v1715_v48, %v1711_v23  ;;  %v2967_v46 = vunpack.i.l.bf16 %v2966_v60  ;;  %v2968_v28 = vunpack.i.h.bf16 %v2966_v60 }
 0xe3f   :  { %v1717_v39 = vmul.f32 %v3975_v12, %v1716_v29 }
 0xe40   :  { %3096 = vpow2.f32 %v2142_v40 }
 0xe41   :  { %3098 = vpow2.f32 %v1935_v61 }
 0xe42   :  { %3100 = vrcp.f32 %v4014_v38 }
 0xe43   :  { %v2135_v45 = vpop.xlane.xlu0 %2134  ;;  %v1702_v7 = vpop.xlane.xlu1 %1701 }
 0xe44   :  { %v2140_v1 = vsub.f32 %v2128_v33, %v2135_v45  ;;  %v1744_v55 = vand.u32 2147483648, %v1702_v7  ;;  %vm1738_vm10 = vweird.f32 %v1702_v7  ;;  %v1742_v58 = vand.u32 2147483647, %v1702_v7 }
 0xe45   :  { %v2207_v43 = vpop.permute.xlu2 %2206 }
 0xe46   :  { %v4018_v2 = vpop.eup %3096  ;;  %v2144_v4 = vmul.f32 1.442695, %v2140_v1  ;;  %2891 = vmatpush.msk.msrb.mxu3 %vm314_vm4, %v2207_v43  ;;  %vm1743_vm12 = vcmp.eq.f32.partialorder %v1742_v58, 8.507059e+37 }
 0xe47   :  { %v2148_v47 = vsel %vm223_vm2, %v4018_v2, 0.0  ;;  %v4023_v9 = vpop.eup %3098 }
 0xe48   :  { %3102 = vpow2.f32 %v2144_v4  ;;  %2149 = vadd.xlane.f32.xlu1 %v2148_v47  ;;  %v3101_v8 = vpop.eup %3100  ;;  %v1943_v10 = vsel %vm230_vm3, %v4023_v9, 0.0 }
 0xe49   :  { %3104 = vrcp.f32 %v1702_v7  ;;  %v1719_v13 = vmul.f32 %v3101_v8, %v4014_v38  ;;  %vm1724_vm14 = vweird.f32 %v3101_v8  ;;  %v1745_v38 = vor.u32 1.1754944e-38, %v1744_v55 }
 0xe4a   :  { %vm1725_vm5 = vmor %vm1723_vm15, %vm1724_vm14 }
 0xe4b   :  { %v1720_v17 = vsub.f32 1.0, %v1719_v13 }
 0xe4c   :  { %1944 = vadd.xlane.f32.xlu2 %v1943_v10 }
 0xe4d   :  { %v1721_v57 = vmul.f32 %v3101_v8, %v1720_v17 }
 0xe4e   :  { %v4028_v14 = vpop.eup %3102 }
 0xe4f   :  { %v2151_v59 = vsel %vm223_vm2, %v4028_v14, 0.0  ;;  %v3105_v19 = vpop.eup %3104  ;;  %v1722_v35 = vadd.f32 %v3101_v8, %v1721_v57 }
 0xe50   :  { %2152 = vadd.xlane.f32.xlu0 %v2151_v59  ;;  %v1734_v50 = vmul.f32 %v3105_v19, %v1702_v7  ;;  %vm1739_vm7 = vweird.f32 %v3105_v19 }
 0xe51   :  { %v1726_v34 = vsel %vm1725_vm5, %v3101_v8, %v1722_v35  ;;  %vm1740_vm11 = vmor %vm1738_vm10, %vm1739_vm7 }
 0xe52   :  { %v1735_v33 = vsub.f32 1.0, %v1734_v50  ;;  %v1731_v52 = vsel %vm1728_vm6, %v1730_v31, %v1726_v34 }
 0xe53   :  { %v1732_v56 = vmul.f32 %v3981_v0, %v1731_v52 }
 0xe54   :  { %v1736_v20 = vmul.f32 %v3105_v19, %v1735_v33 }
 0xe56   :  { %v1753_v18 = vpop.permute.xlu0 %1752  ;;  %v1737_v32 = vadd.f32 %v3105_v19, %v1736_v20 }
 0xe57   :  { %2862 = vmatpush.msk.msra.mxu0 %vm314_vm4, %v1753_v18 }
 0xe58   :  { %v1741_v12 = vsel %vm1740_vm11, %v3105_v19, %v1737_v32 }
 0xe59   :  { %1781 = vmatpush.msra.mxu0 %v2967_v46  ;;  %v1746_v21 = vsel %vm1743_vm12, %v1745_v38, %v1741_v12 }
 0xe5a   :  { %v1747_v60 = vmul.f32 %v3987_v30, %v1746_v21  ;;  %v4051_v30 = vpop.xlane.xlu1 %1938 }
 0xe5b   :  { %1782 = vmatpush.msra.mxu0 %v2968_v28 }
 0xe5c   :  { %2863 = vmatmul.msk.f32.vlgmr.msra.gmra.mxu0 %vm223_vm2, %v1717_v39 }
 0xe62   :  { %v4053_v43 = vpop.xlane.xlu1 %1941 }
 0xe64   :  { %2975 = vrot.lane.b32.xlu0 %v3871_v11, %s4344_s22  ;;  %2864 = vmatmul.msk.f32.gmra.mxu0 %vm223_vm2, %v1732_v56 }
 0xe6c   :  { %2865 = vmatmul.msk.f32.gmra.mxu0 %vm223_vm2, %v1747_v60 }
 0xe7e   :  { %v2138_v61 = vpop.xlane.xlu2 %2137 }
 0xe7f   :  { %v2141_v40 = vsub.f32 %v4008_v51, %v2138_v61  ;;  %v2843_v51 = vld [vmem:[%s4290_s7 + $0x28] sm:$0xff] }
 0xe80   :  { %1817 = vmatpush.msrb.mxu1 %v2843_v51  ;;  %v1957_v51 = vand.u32 2147483648, %v4051_v30 }
 0xe81   :  { %v2146_v62 = vmul.f32 1.442695, %v2141_v40 }
 0xe83   :  { %3106 = vpow2.f32 %v2146_v62 }
 0xe86   :  { %v2971_v0 = vpop.permute.xlu2 %2970 }
 0xe87   :  { %v2972_v45 = vunpack.i.l.bf16 %v2971_v0  ;;  %v2973_v11 = vunpack.i.h.bf16 %v2971_v0 }
 0xe89   :  { %v4045_v63 = vpop.eup %3106  ;;  %2235 = vmatpush.msrb.mxu3 %v2972_v45 }
 0xe8a   :  { %v2154_v1 = vsel %vm230_vm3, %v4045_v63, 0.0 }
 0xe8b   :  { %2155 = vadd.xlane.f32.xlu1 %v2154_v1  ;;  %2236 = vmatpush.msrb.mxu3 %v2973_v11 }
 0xea4   :  { %1995 = vrot.lane.b32.xlu1 %v3835_v49, %s4344_s22 }
 0xebb   :  { %v2150_v4 = vpop.xlane.xlu1 %2149 }
 0xebc   :  { %3108 = vrcp.f32 %v2150_v4  ;;  %v2168_v10 = vand.u32 2147483648, %v2150_v4  ;;  %v2166_v49 = vand.u32 2147483647, %v2150_v4  ;;  %vm2162_vm13 = vweird.f32 %v2150_v4 }
 0xebe   :  { %v2169_v16 = vor.u32 1.1754944e-38, %v2168_v10  ;;  %vm2167_vm15 = vcmp.eq.f32.partialorder %v2166_v49, 8.507059e+37  ;;  %v1958_v10 = vor.u32 1.1754944e-38, %v1957_v51 }
 0xebf   :  { %v4068_v52 = vpop.xlane.xlu2 %1944 }
 0xec2   :  { %v3109_v47 = vpop.eup %3108 }
 0xec3   :  { %v2158_v6 = vmul.f32 %v3109_v47, %v2150_v4  ;;  %v2153_v7 = vpop.xlane.xlu0 %2152  ;;  %vm2163_vm3 = vweird.f32 %v3109_v47  ;;  %v1955_v4 = vand.u32 2147483647, %v4051_v30 }
 0xec4   :  { %3110 = vrcp.f32 %v2153_v7  ;;  %vm2164_vm14 = vmor %vm2162_vm13, %vm2163_vm3  ;;  %v2183_v57 = vand.u32 2147483648, %v2153_v7  ;;  %v2181_v48 = vand.u32 2147483647, %v2153_v7  ;;  %vm2177_vm6 = vweird.f32 %v2153_v7 }
 0xec5   :  { %v2159_v8 = vsub.f32 1.0, %v2158_v6  ;;  %3112 = vrcp.f32 %v4051_v30 }
 0xec6   :  { %v2184_v29 = vor.u32 1.1754944e-38, %v2183_v57  ;;  %vm2182_vm10 = vcmp.eq.f32.partialorder %v2181_v48, 8.507059e+37  ;;  %v1987_v48 = vand.u32 2147483648, %v4068_v52 }
 0xec7   :  { %v2160_v27 = vmul.f32 %v3109_v47, %v2159_v8 }
 0xec9   :  { %v2161_v13 = vadd.f32 %v3109_v47, %v2160_v27 }
 0xeca   :  { %v3111_v59 = vpop.eup %3110 }
 0xecb   :  { %v2165_v17 = vsel %vm2164_vm14, %v3109_v47, %v2161_v13  ;;  %v2173_v19 = vmul.f32 %v3111_v59, %v2153_v7  ;;  %vm2178_vm5 = vweird.f32 %v3111_v59  ;;  %v3113_v42 = vpop.eup %3112 }
 0xecc   :  { %v2170_v3 = vsel %vm2167_vm15, %v2169_v16, %v2165_v17  ;;  %vm2179_vm7 = vmor %vm2177_vm6, %vm2178_vm5  ;;  %vm1952_vm14 = vweird.f32 %v3113_v42  ;;  %vm1951_vm15 = vweird.f32 %v4051_v30  ;;  %vm1956_vm6 = vcmp.eq.f32.partialorder %v1955_v4, 8.507059e+37 }
 0xecd   :  { %v2174_v22 = vsub.f32 1.0, %v2173_v19  ;;  %v2171_v23 = vmul.f32 %v4018_v2, %v2170_v3  ;;  %vm1953_vm5 = vmor %vm1951_vm15, %vm1952_vm14  ;;  %v1970_v19 = vand.u32 2147483647, %v4053_v43 }
 0xecf   :  { %v2175_v50 = vmul.f32 %v3111_v59, %v2174_v22  ;;  %2892 = vmatmul.msk.f32.vlgmr.msrb.gmra.mxu3 %vm223_vm2, %v2171_v23 }
 0xed1   :  { %v2176_v18 = vadd.f32 %v3111_v59, %v2175_v50 }
 0xed3   :  { %v2180_v46 = vsel %vm2179_vm7, %v3111_v59, %v2176_v18 }
 0xed4   :  { %v2185_v33 = vsel %vm2182_vm10, %v2184_v29, %v2180_v46  ;;  %vm1966_vm10 = vweird.f32 %v4053_v43  ;;  %v1988_v29 = vor.u32 1.1754944e-38, %v1987_v48 }
 0xed5   :  { %v2186_v35 = vmul.f32 %v4028_v14, %v2185_v33  ;;  %v1947_v14 = vmul.f32 %v3113_v42, %v4051_v30  ;;  %v1972_v30 = vand.u32 2147483648, %v4053_v43 }
 0xed6   :  { %v2976_v8 = vpop.permute.xlu0 %2975 }
 0xed7   :  { %2893 = vmatmul.msk.f32.gmra.mxu3 %vm223_vm2, %v2186_v35  ;;  %v1948_v31 = vsub.f32 1.0, %v1947_v14  ;;  %v2978_v16 = vunpack.i.h.bf16 %v2976_v8  ;;  %v1973_v23 = vor.u32 1.1754944e-38, %v1972_v30  ;;  %v2845_v35 = vld [vmem:[%s4290_s7 + $0x38] sm:$0xff] }
 0xed9   :  { %v1784_v36 = vpop.f32.mrf.mxu0  ;;  %v1949_v38 = vmul.f32 %v3113_v42, %v1948_v31 }
 0xeda   :  { %2866 = vmatmul.msk.f32.vlgmr.msrb.gmra.mxu1 %vm178_vm1, %v1784_v36 }
 0xedb   :  { %v1950_v0 = vadd.f32 %v3113_v42, %v1949_v38 }
 0xedd   :  { %v1954_v47 = vsel %vm1953_vm5, %v3113_v42, %v1950_v0 }
 0xede   :  { %v1959_v49 = vsel %vm1956_vm6, %v1958_v10, %v1954_v47 }
 0xedf   :  { %v1960_v17 = vmul.f32 %v3993_v37, %v1959_v49  ;;  %v1985_v37 = vand.u32 2147483647, %v4068_v52 }
 0xee1   :  { %v1787_v2 = vpop.f32.mrf.mxu0  ;;  %vm1986_vm15 = vcmp.eq.f32.partialorder %v1985_v37, 8.507059e+37 }
 0xee2   :  { %2867 = vmatmul.msk.f32.gmra.mxu1 %vm178_vm1, %v1787_v2 }
 0xee9   :  { %v1790_v28 = vpop.f32.mrf.mxu0 }
 0xeea   :  { %2868 = vmatmul.msk.f32.gmra.mxu1 %vm178_vm1, %v1790_v28 }
 0xefe   :  { %v2156_v39 = vpop.xlane.xlu1 %2155 }
 0xeff   :  { %3114 = vrcp.f32 %v2156_v39  ;;  %v2198_v56 = vand.u32 2147483648, %v2156_v39  ;;  %v2196_v12 = vand.u32 2147483647, %v2156_v39  ;;  %vm2192_vm12 = vweird.f32 %v2156_v39 }
 0xf00   :  { %3116 = vrcp.f32 %v4053_v43 }
 0xf01   :  { %3118 = vrcp.f32 %v4068_v52  ;;  %v2199_v61 = vor.u32 1.1754944e-38, %v2198_v56  ;;  %vm2197_vm13 = vcmp.eq.f32.partialorder %v2196_v12, 8.507059e+37  ;;  %v2988_v56 = vld [vmem:[%s4291_s8 + $0x1] ss:$0 sm:$0xff] }
 0xf05   :  { %v3115_v20 = vpop.eup %3114 }
 0xf06   :  { %v2188_v34 = vmul.f32 %v3115_v20, %v2156_v39  ;;  %v3117_v55 = vpop.eup %3116  ;;  %vm2193_vm11 = vweird.f32 %v3115_v20 }
 0xf07   :  { %v1962_v21 = vmul.f32 %v3117_v55, %v4053_v43  ;;  %vm2194_vm3 = vmor %vm2192_vm12, %vm2193_vm11  ;;  %v3119_v1 = vpop.eup %3118  ;;  %vm1967_vm7 = vweird.f32 %v3117_v55  ;;  %vm1971_vm12 = vcmp.eq.f32.partialorder %v1970_v19, 8.507059e+37 }
 0xf08   :  { %v2189_v32 = vsub.f32 1.0, %v2188_v34  ;;  %v1977_v7 = vmul.f32 %v3119_v1, %v4068_v52  ;;  %vm1968_vm11 = vmor %vm1966_vm10, %vm1967_vm7 }
 0xf09   :  { %v1963_v45 = vsub.f32 1.0, %v1962_v21 }
 0xf0a   :  { %v2190_v58 = vmul.f32 %v3115_v20, %v2189_v32  ;;  %v1978_v13 = vsub.f32 1.0, %v1977_v7 }
 0xf0b   :  { %v1964_v6 = vmul.f32 %v3117_v55, %v1963_v45 }
 0xf0c   :  { %v2191_v60 = vadd.f32 %v3115_v20, %v2190_v58  ;;  %v1979_v3 = vmul.f32 %v3119_v1, %v1978_v13 }
 0xf0d   :  { %v1965_v59 = vadd.f32 %v3117_v55, %v1964_v6 }
 0xf0e   :  { %v2195_v40 = vsel %vm2194_vm3, %v3115_v20, %v2191_v60  ;;  %v1980_v50 = vadd.f32 %v3119_v1, %v1979_v3  ;;  %vm1982_vm3 = vweird.f32 %v3119_v1 }
 0xf0f   :  { %v2200_v62 = vsel %vm2197_vm13, %v2199_v61, %v2195_v40  ;;  %v1969_v22 = vsel %vm1968_vm11, %v3117_v55, %v1965_v59  ;;  %vm1981_vm13 = vweird.f32 %v4068_v52 }
 0xf10   :  { %v2201_v11 = vmul.f32 %v4045_v63, %v2200_v62  ;;  %v2977_v63 = vunpack.i.l.bf16 %v2976_v8  ;;  %v1974_v57 = vsel %vm1971_vm12, %v1973_v23, %v1969_v22  ;;  %vm1983_vm14 = vmor %vm1981_vm13, %vm1982_vm3  ;;  %v2904_v22 = vld [vmem:[%s4295_s11 + $0x38] sm:$0xff]  ;;  %v2903_v23 = vld [vmem:[%s4295_s11 + $0x30] sm:$0xff] }
 0xf11   :  { %v1975_v18 = vmul.f32 %v3999_v44, %v1974_v57  ;;  %v1984_v43 = vsel %vm1983_vm14, %v3119_v1, %v1980_v50  ;;  %v2844_v44 = vld [vmem:[%s4290_s7 + $0x30] sm:$0xff]  ;;  %v2902_v57 = vld [vmem:[%s4295_s11 + $0x28] sm:$0xff]  ;;  %v2901_v50 = vld [vmem:[%s4295_s11 + $0x20] sm:$0xff] }
 0xf12   :  { %2894 = vmatmul.msk.f32.gmra.mxu3 %vm223_vm2, %v2201_v11  ;;  %v1989_v46 = vsel %vm1986_vm15, %v1988_v29, %v1984_v43  ;;  %2060 = vmatpush.msra.mxu1 %v2844_v44 }
 0xf13   :  { %v1990_v33 = vmul.f32 %v4023_v9, %v1989_v46 }
 0xf14   :  { %2409 = vmatpush.msrb.mxu1 %v2904_v22 }
 0xf16   :  { %v1996_v27 = vpop.permute.xlu1 %1995  ;;  %2410 = vmatpush.msrb.mxu1 %v2903_v23 }
 0xf17   :  { %2878 = vmatpush.msk.msrb.mxu0 %vm314_vm4, %v1996_v27 }
 0xf18   :  { %2411 = vmatpush.msrb.mxu1 %v2902_v57 }
 0xf19   :  { %2024 = vmatpush.msrb.mxu0 %v2977_v63 }
 0xf1a   :  { %2412 = vmatpush.msrb.mxu1 %v2901_v50 }
 0xf1b   :  { %2025 = vmatpush.msrb.mxu0 %v2978_v16 }
 0xf1c   :  { %2879 = vmatmul.msk.f32.vlgmr.msrb.gmra.mxu0 %vm223_vm2, %v1960_v17 }
 0xf1d   :  { %2271 = vmatpush.msra.mxu0 %v2845_v35 }
 0xf24   :  { %2880 = vmatmul.msk.f32.gmra.mxu0 %vm223_vm2, %v1975_v18 }
 0xf2c   :  { %2881 = vmatmul.msk.f32.gmra.mxu0 %vm223_vm2, %v1990_v33 }
 0xf52   :  { %v2238_v36 = vpop.f32.mrf.mxu3 }
 0xf53   :  { %2895 = vmatmul.msk.f32.vlgmr.msra.gmra.mxu0 %vm178_vm1, %v2238_v36 }
 0xf57   :  { %v1819_v14 = vpop.f32.mrf.mxu1 }
 0xf58   :  { %v1855_v31 = vadd.f32 %v3971_v5, %v1819_v14 }
 0xf5a   :  { %v2241_v2 = vpop.f32.mrf.mxu3 }
 0xf5b   :  { %2896 = vmatmul.msk.f32.gmra.mxu0 %vm178_vm1, %v2241_v2 }
 0xf5f   :  { %v1822_v20 = vpop.f32.mrf.mxu1 }
 0xf60   :  { %v1858_v38 = vadd.f32 %v3973_v53, %v1822_v20 }
 0xf67   :  { %v1825_v34 = vpop.f32.mrf.mxu1 }
 0xf68   :  { %v1861_v45 = vadd.f32 %v3979_v15, %v1825_v34  ;;  %v2989_v34 = vld [vmem:[%s4292_s9 + $0x1] ss:$0 sm:$0xff] }
 0xf95   :  { %v2244_v28 = vpop.f32.mrf.mxu3 }
 0xf96   :  { %2897 = vmatmul.msk.f32.gmra.mxu0 %vm178_vm1, %v2244_v28 }
 0xf99   :  { %v2027_v9 = vpop.f32.mrf.mxu0 }
 0xf9a   :  { %2882 = vmatmul.msk.f32.vlgmr.msra.gmra.mxu1 %vm178_vm1, %v2027_v9 }
 0xfa1   :  { %v2030_v39 = vpop.f32.mrf.mxu0 }
 0xfa2   :  { %2883 = vmatmul.msk.f32.gmra.mxu1 %vm178_vm1, %v2030_v39 }
 0xfa9   :  { %v2033_v42 = vpop.f32.mrf.mxu0 }
 0xfaa   :  { %2884 = vmatmul.msk.f32.gmra.mxu1 %vm178_vm1, %v2033_v42 }
 0xfd0   :  { %v2273_v52 = vpop.f32.mrf.mxu0 }
 0xfd8   :  { %v2276_v62 = vpop.f32.mrf.mxu0 }
0x1013   :  { %v2279_v47 = vpop.f32.mrf.mxu0 }
0x1017   :  { %v2062_v32 = vpop.f32.mrf.mxu1 }
0x1018   :  { %v2071_v55 = vadd.f32 %v2062_v32, %v1855_v31 }
0x101a   :  { %v2282_v58 = vadd.f32 %v2273_v52, %v2071_v55  ;;  %v2990_v55 = vld [vmem:[%s4293_s10 + $0x1] ss:$0 sm:$0xff] }
0x101c   :  { %v2290_v12 = vadd.f32 %v2988_v56, %v2282_v58 }
0x101e   :  { %v2293_v21 = vadd.f32 %v2290_v12, %v3810_v26 }
0x101f   :  { %v2065_v60 = vpop.f32.mrf.mxu1 }
0x1020   :  { %v2072_v61 = vadd.f32 %v2065_v60, %v1858_v38  ;;  %v2300_v40 = vsel %vm129_vm0, %v2293_v21, 0.0 }
0x1021   :  { %2301 = vadd.xlane.f32.xlu1 %v2300_v40 }
0x1022   :  { %v2283_v5 = vadd.f32 %v2276_v62, %v2072_v61 }
0x1024   :  { %v2291_v0 = vadd.f32 %v2988_v56, %v2283_v5 }
0x1026   :  { %v2294_v11 = vadd.f32 %v2291_v0, %v3814_v25 }
0x1027   :  { %v2068_v1 = vpop.f32.mrf.mxu1 }
0x1028   :  { %v2073_v51 = vadd.f32 %v2068_v1, %v1861_v45  ;;  %v2303_v4 = vsel %vm129_vm0, %v2294_v11, 0.0 }
0x1029   :  { %2304 = vadd.xlane.f32.xlu0 %v2303_v4 }
0x102a   :  { %v2284_v53 = vadd.f32 %v2279_v47, %v2073_v51 }
0x102c   :  { %v2292_v26 = vadd.f32 %v2988_v56, %v2284_v53 }
0x102e   :  { %v2295_v6 = vadd.f32 %v2292_v26, %v3820_v54 }
0x1030   :  { %v2306_v7 = vsel %vm1026_vm9, %v2295_v6, 0.0 }
0x1031   :  { %2307 = vadd.xlane.f32.xlu2 %v2306_v7 }
0x1094   :  { %v2302_v8 = vpop.xlane.xlu1 %2301 }
0x1095   :  { %v2309_v10 = vmul.f32 %v2302_v8, %v3663_v41 }
0x1097   :  { %v2312_v27 = vsub.f32 %v2293_v21, %v2309_v10 }
0x1099   :  { %v2315_v15 = vmul.f32 %v2312_v27, %v2312_v27 }
0x109b   :  { %v2318_v25 = vsel %vm129_vm0, %v2315_v15, 0.0 }
0x109c   :  { %v2305_v49 = vpop.xlane.xlu0 %2304  ;;  %2319 = vadd.xlane.f32.xlu2 %v2318_v25 }
0x109d   :  { %v2310_v63 = vmul.f32 %v2305_v49, %v3663_v41 }
0x109f   :  { %v2313_v13 = vsub.f32 %v2294_v11, %v2310_v63 }
0x10a1   :  { %v2316_v59 = vmul.f32 %v2313_v13, %v2313_v13 }
0x10a3   :  { %v2321_v30 = vsel %vm129_vm0, %v2316_v59, 0.0 }
0x10a4   :  { %2322 = vadd.xlane.f32.xlu2 %v2321_v30  ;;  %v2308_v54 = vpop.xlane.xlu2 %2307  ;;  %v2915_v30 = vld [vmem:[%s4297_s13 + $0x70] sm:$0xff] }
0x10a5   :  { %v2311_v16 = vmul.f32 %v2308_v54, %v3663_v41 }
0x10a7   :  { %v4120_v17 = vsub.f32 %v2295_v6, %v2311_v16  ;;  %v2991_v6 = vld [vmem:[%s4294_s12 + $0x1] ss:$0 sm:$0xff]  ;;  %v2914_v16 = vld [vmem:[%s4297_s13 + $0x68] sm:$0xff] }
0x10a9   :  { %v2317_v19 = vmul.f32 %v4120_v17, %v4120_v17 }
0x10ab   :  { %v2324_v3 = vsel %vm1026_vm9, %v2317_v19, 0.0 }
0x10ac   :  { %2325 = vadd.xlane.f32.xlu1 %v2324_v3  ;;  %v2913_v3 = vld [vmem:[%s4297_s13 + $0x60] sm:$0xff] }
0x110f   :  { %v2320_v48 = vpop.xlane.xlu2 %2319 }
0x1110   :  { %v2327_v18 = vmul.f32 %v2320_v48, %v3663_v41  ;;  %v2912_v48 = vld [vmem:[%s4297_s13 + $0x58] sm:$0xff] }
0x1112   :  { %v2330_v37 = vadd.f32 1e-05, %v2327_v18 }
0x1114   :  { %3120 = vrsqrt.f32 %v2330_v37  ;;  %vm2339_vm5 = vweird.f32 %v2330_v37 }
0x1117   :  { %v2323_v43 = vpop.xlane.xlu2 %2322 }
0x1118   :  { %v2328_v29 = vmul.f32 %v2323_v43, %v3663_v41  ;;  %v2911_v43 = vld [vmem:[%s4297_s13 + $0x50] sm:$0xff] }
0x111a   :  { %v3121_v46 = vpop.eup %3120  ;;  %v2331_v33 = vadd.f32 1e-05, %v2328_v29 }
0x111b   :  { %v2334_v35 = vmul.f32 %v3121_v46, %v2330_v37  ;;  %vm2340_vm1 = vweird.f32 %v3121_v46 }
0x111c   :  { %3122 = vrsqrt.f32 %v2331_v33  ;;  %vm2341_vm6 = vmor %vm2339_vm5, %vm2340_vm1  ;;  %vm2349_vm10 = vweird.f32 %v2331_v33 }
0x111d   :  { %v2335_v44 = vmul.f32 %v3121_v46, %v2334_v35 }
0x111f   :  { %v2336_v36 = vmul.f32 0.5, %v2335_v44  ;;  %v2326_v2 = vpop.xlane.xlu1 %2325  ;;  %v2910_v44 = vld [vmem:[%s4297_s13 + $0x48] sm:$0xff] }
0x1120   :  { %v2329_v28 = vmul.f32 %v2326_v2, %v3663_v41 }
0x1121   :  { %v2337_v9 = vsub.f32 1.5, %v2336_v36  ;;  %v2909_v36 = vld [vmem:[%s4297_s13 + $0x40] sm:$0xff] }
0x1122   :  { %v3123_v39 = vpop.eup %3122  ;;  %v2332_v42 = vadd.f32 1e-05, %v2329_v28 }
0x1123   :  { %v2338_v14 = vmul.f32 %v3121_v46, %v2337_v9  ;;  %v2344_v20 = vmul.f32 %v3123_v39, %v2331_v33  ;;  %vm2350_vm7 = vweird.f32 %v3123_v39 }
0x1124   :  { %3124 = vrsqrt.f32 %v2332_v42  ;;  %vm2351_vm11 = vmor %vm2349_vm10, %vm2350_vm7  ;;  %vm2359_vm3 = vweird.f32 %v2332_v42 }
0x1125   :  { %v2342_v31 = vsel %vm2341_vm6, %v3121_v46, %v2338_v14  ;;  %v2345_v52 = vmul.f32 %v3123_v39, %v2344_v20 }
0x1126   :  { %v2363_v32 = vmul.f32 %v2342_v31, %v2312_v27 }
0x1127   :  { %v2346_v56 = vmul.f32 0.5, %v2345_v52 }
0x1128   :  { %v2369_v58 = vmul.f32 %v2989_v34, %v2363_v32 }
0x1129   :  { %v2347_v12 = vsub.f32 1.5, %v2346_v56 }
0x112a   :  { %v3125_v38 = vpop.eup %3124  ;;  %v4146_v21 = vadd.f32 %v2990_v55, %v2369_v58 }
0x112b   :  { %v2348_v60 = vmul.f32 %v3123_v39, %v2347_v12  ;;  %v2354_v61 = vmul.f32 %v3125_v38, %v2332_v42  ;;  %vm2360_vm12 = vweird.f32 %v3125_v38 }
0x112c   :  { %2906 = vmatmul.msk.f32.vlgmr.msrb.gmra.mxu1 %vm129_vm0, %v4146_v21  ;;  %vm2361_vm13 = vmor %vm2359_vm3, %vm2360_vm12 }
0x112d   :  { %v2352_v40 = vsel %vm2351_vm11, %v3123_v39, %v2348_v60  ;;  %v2355_v62 = vmul.f32 %v3125_v38, %v2354_v61 }
0x112e   :  { %v2364_v5 = vmul.f32 %v2352_v40, %v2313_v13  ;;  %v2916_v13 = vld [vmem:[%s4297_s13 + $0x78] sm:$0xff] }
0x112f   :  { %v2356_v0 = vmul.f32 0.5, %v2355_v62  ;;  %2574 = vmatpush.msrb.mxu2 %v2916_v13 }
0x1130   :  { %v2370_v45 = vmul.f32 %v2989_v34, %v2364_v5 }
0x1131   :  { %v2357_v11 = vsub.f32 1.5, %v2356_v0  ;;  %2575 = vmatpush.msrb.mxu2 %v2915_v30 }
0x1132   :  { %v4150_v1 = vadd.f32 %v2990_v55, %v2370_v45 }
0x1133   :  { %v2358_v51 = vmul.f32 %v3125_v38, %v2357_v11  ;;  %2576 = vmatpush.msrb.mxu2 %v2914_v16 }
0x1134   :  { %2907 = vmatmul.msk.f32.gmra.mxu1 %vm129_vm0, %v4150_v1 }
0x1135   :  { %v2362_v4 = vsel %vm2361_vm13, %v3125_v38, %v2358_v51  ;;  %2577 = vmatpush.msrb.mxu2 %v2913_v3 }
0x1136   :  { %v2365_v47 = vmul.f32 %v2362_v4, %v4120_v17 }
0x1137   :  { %2578 = vmatpush.msrb.mxu2 %v2912_v48 }
0x1138   :  { %v2371_v53 = vmul.f32 %v2989_v34, %v2365_v47 }
0x1139   :  { %2579 = vmatpush.msrb.mxu2 %v2911_v43 }
0x113a   :  { %v4155_v26 = vadd.f32 %v2990_v55, %v2371_v53 }
0x113b   :  { %2580 = vmatpush.msrb.mxu2 %v2910_v44 }
0x113c   :  { %2908 = vmatmul.msk.f32.gmra.mxu1 %vm129_vm0, %v4155_v26 }
0x113d   :  { %2581 = vmatpush.msrb.mxu2 %v2909_v36 }
0x11a9   :  { %v2414_v7 = vpop.f32.mrf.mxu1 }
0x11aa   :  { %v4162_v8 = vadd.f32 %v2991_v6, %v2414_v7 }
0x11ac   :  { %v4165_v10 = vmul.f32 0.70710677, %v4162_v8 }
0x11ae   :  { %v2435_v27 = vand.u32 2147483647, %v4165_v10 }
0x11b0   :  { %v2438_v15 = vmul.f32 0.3275911, %v2435_v27  ;;  %v2516_v34 = vsub.f32 0.0, %v2435_v27 }
0x11b1   :  { %v2417_v25 = vpop.f32.mrf.mxu1 }
0x11b2   :  { %v2441_v49 = vadd.f32 1.0, %v2438_v15  ;;  %v4168_v63 = vadd.f32 %v2991_v6, %v2417_v25  ;;  %v2519_v58 = vmul.f32 %v2516_v34, %v2435_v27 }
0x11b4   :  { %3126 = vrcp.f32 %v2441_v49  ;;  %v4174_v59 = vmul.f32 0.70710677, %v4168_v63  ;;  %v2455_v29 = vand.u32 2147483648, %v2441_v49  ;;  %v2453_v35 = vand.u32 2147483647, %v2441_v49 }
0x11b5   :  { %vm2449_vm15 = vweird.f32 %v2441_v49  ;;  %v2522_v45 = vmul.f32 1.442695, %v2519_v58 }
0x11b6   :  { %v4180_v54 = vand.u32 2147483647, %v4174_v59  ;;  %v2456_v9 = vor.u32 1.1754944e-38, %v2455_v29  ;;  %vm2454_vm5 = vcmp.eq.f32.partialorder %v2453_v35, 8.507059e+37 }
0x11b8   :  { %v2439_v17 = vmul.f32 0.3275911, %v4180_v54  ;;  %v2517_v4 = vsub.f32 0.0, %v4180_v54 }
0x11b9   :  { %v2420_v19 = vpop.f32.mrf.mxu1 }
0x11ba   :  { %v3127_v22 = vpop.eup %3126  ;;  %v4189_v23 = vadd.f32 %v2991_v6, %v2420_v19  ;;  %v2442_v50 = vadd.f32 1.0, %v2439_v17  ;;  %v2520_v30 = vmul.f32 %v2517_v4, %v4180_v54 }
0x11bb   :  { %v2445_v57 = vmul.f32 %v3127_v22, %v2441_v49  ;;  %vm2450_vm14 = vweird.f32 %v3127_v22 }
0x11bc   :  { %v4195_v18 = vmul.f32 0.70710677, %v4189_v23  ;;  %3128 = vrcp.f32 %v2442_v50  ;;  %vm2451_vm1 = vmor %vm2449_vm15, %vm2450_vm14  ;;  %v2470_v56 = vand.u32 2147483648, %v2442_v50  ;;  %v2468_v38 = vand.u32 2147483647, %v2442_v50 }
0x11bd   :  { %v2446_v37 = vsub.f32 1.0, %v2445_v57  ;;  %vm2464_vm7 = vweird.f32 %v2442_v50  ;;  %v2524_v43 = vmul.f32 1.442695, %v2520_v30  ;;  %vm2429_vm15 = vcmp.ge.f32.partialorder %v4165_v10, 0.0 }
0x11be   :  { %v4201_v46 = vand.u32 2147483647, %v4195_v18  ;;  %v2471_v0 = vor.u32 1.1754944e-38, %v2470_v56  ;;  %vm2469_vm11 = vcmp.eq.f32.partialorder %v2468_v38, 8.507059e+37 }
0x11bf   :  { %v2447_v33 = vmul.f32 %v3127_v22, %v2446_v37 }
0x11c0   :  { %v2440_v2 = vmul.f32 0.3275911, %v4201_v46  ;;  %v2518_v57 = vsub.f32 0.0, %v4201_v46 }
0x11c1   :  { %v2448_v28 = vadd.f32 %v3127_v22, %v2447_v33 }
0x11c2   :  { %v2443_v39 = vadd.f32 1.0, %v2440_v2  ;;  %v3129_v42 = vpop.eup %3128  ;;  %v2521_v36 = vmul.f32 %v2518_v57, %v4201_v46 }
0x11c3   :  { %v2452_v14 = vsel %vm2451_vm1, %v3127_v22, %v2448_v28  ;;  %v2460_v31 = vmul.f32 %v3129_v42, %v2442_v50  ;;  %vm2465_vm6 = vweird.f32 %v3129_v42  ;;  %vm2430_vm1 = vcmp.ge.f32.partialorder %v4174_v59, 0.0 }
0x11c4   :  { %v2457_v20 = vsel %vm2454_vm5, %v2456_v9, %v2452_v14  ;;  %3130 = vrcp.f32 %v2443_v39  ;;  %vm2466_vm10 = vmor %vm2464_vm7, %vm2465_vm6  ;;  %v2485_v6 = vand.u32 2147483648, %v2443_v39  ;;  %v2483_v25 = vand.u32 2147483647, %v2443_v39 }
0x11c5   :  { %v2489_v52 = vmul.f32 1.0614054, %v2457_v20  ;;  %v2461_v32 = vsub.f32 1.0, %v2460_v31  ;;  %3132 = vpow2.f32 %v2522_v45  ;;  %vm2479_vm3 = vweird.f32 %v2443_v39 }
0x11c6   :  { %v2486_v19 = vor.u32 1.1754944e-38, %v2485_v6  ;;  %vm2484_vm14 = vcmp.eq.f32.partialorder %v2483_v25, 8.507059e+37  ;;  %3134 = vpow2.f32 %v2524_v43  ;;  %vm2431_vm5 = vcmp.ge.f32.partialorder %v4195_v18, 0.0 }
0x11c7   :  { %v2492_v55 = vadd.f32 -1.4531521, %v2489_v52  ;;  %v2462_v12 = vmul.f32 %v3129_v42, %v2461_v32  ;;  %v2423_v52 = vmul.f32 0.5, %v4162_v8  ;;  %v2434_v4 = vsel %vm2431_vm5, 1.0, %v3161_v24 }
0x11c9   :  { %v2495_v60 = vmul.f32 %v2492_v55, %v2457_v20  ;;  %v2463_v40 = vadd.f32 %v3129_v42, %v2462_v12 }
0x11ca   :  { %v3131_v61 = vpop.eup %3130 }
0x11cb   :  { %v2498_v62 = vadd.f32 1.4214138, %v2495_v60  ;;  %v2475_v5 = vmul.f32 %v3131_v61, %v2443_v39  ;;  %v2467_v11 = vsel %vm2466_vm10, %v3129_v42, %v2463_v40  ;;  %vm2480_vm12 = vweird.f32 %v3131_v61  ;;  %v3133_v33 = vpop.eup %3132 }
0x11cc   :  { %v2472_v53 = vsel %vm2469_vm11, %v2471_v0, %v2467_v11  ;;  %vm2481_vm13 = vmor %vm2479_vm3, %vm2480_vm12  ;;  %v2432_v39 = vsel %vm2429_vm15, 1.0, %v3161_v24  ;;  %v3135_v56 = vpop.eup %3134  ;;  %v2424_v0 = vmul.f32 0.5, %v4168_v63  ;;  %v2992_v63 = vld [vmem:[%s4296_s14 + $0x1] ss:$0 sm:$0xff]  ;;  %vm2767_vm15 = vcmask 1024  }
0x11cd   :  { %v2501_v51 = vmul.f32 %v2498_v62, %v2457_v20  ;;  %v2476_v47 = vsub.f32 1.0, %v2475_v5  ;;  %v2490_v7 = vmul.f32 1.0614054, %v2472_v53 }
0x11cf   :  { %v2504_v27 = vadd.f32 -0.28449672, %v2501_v51  ;;  %v2477_v15 = vmul.f32 %v3131_v61, %v2476_v47  ;;  %v2493_v49 = vadd.f32 -1.4531521, %v2490_v7 }
0x11d1   :  { %v2507_v13 = vmul.f32 %v2504_v27, %v2457_v20  ;;  %v2478_v16 = vadd.f32 %v3131_v61, %v2477_v15  ;;  %v2496_v17 = vmul.f32 %v2493_v49, %v2472_v53 }
0x11d3   :  { %v2510_v3 = vadd.f32 0.2548296, %v2507_v13  ;;  %v2482_v22 = vsel %vm2481_vm13, %v3131_v61, %v2478_v16  ;;  %v2499_v50 = vadd.f32 1.4214138, %v2496_v17  ;;  %v2433_v61 = vsel %vm2430_vm1, 1.0, %v3161_v24 }
0x11d4   :  { %v2487_v48 = vsel %vm2484_vm14, %v2486_v19, %v2482_v22 }
0x11d5   :  { %v2513_v37 = vmul.f32 %v2510_v3, %v2457_v20  ;;  %v2491_v29 = vmul.f32 1.0614054, %v2487_v48  ;;  %v2502_v35 = vmul.f32 %v2499_v50, %v2472_v53  ;;  %v2526_v20 = vmul.f32 1.442695, %v2521_v36 }
0x11d7   :  { %v2528_v54 = vmul.f32 %v3133_v33, %v2513_v37  ;;  %v2494_v44 = vadd.f32 -1.4531521, %v2491_v29  ;;  %v2505_v2 = vadd.f32 -0.28449672, %v2502_v35  ;;  %3136 = vpow2.f32 %v2526_v20 }
0x11d9   :  { %v2531_v28 = vsub.f32 1.0, %v2528_v54  ;;  %v2497_v9 = vmul.f32 %v2494_v44, %v2487_v48  ;;  %v2508_v42 = vmul.f32 %v2505_v2, %v2472_v53 }
0x11db   :  { %v2534_v14 = vmul.f32 %v2531_v28, %v2432_v39  ;;  %v2500_v34 = vadd.f32 1.4214138, %v2497_v9  ;;  %v2511_v31 = vadd.f32 0.2548296, %v2508_v42 }
0x11dd   :  { %v2537_v32 = vadd.f32 1.0, %v2534_v14  ;;  %v2503_v55 = vmul.f32 %v2500_v34, %v2487_v48  ;;  %v2514_v10 = vmul.f32 %v2511_v31, %v2472_v53  ;;  %v3137_v8 = vpop.eup %3136  ;;  %v2425_v53 = vmul.f32 0.5, %v4189_v23 }
0x11df   :  { %v2540_v58 = vmul.f32 %v2537_v32, %v2423_v52  ;;  %v2506_v12 = vadd.f32 -0.28449672, %v2503_v55  ;;  %v2529_v46 = vmul.f32 %v3135_v56, %v2514_v10 }
0x11e1   :  { %2918 = vmatmul.msk.f32.vlgmr.msrb.gmra.mxu2 %vm1281_vm8, %v2540_v58  ;;  %v2509_v38 = vmul.f32 %v2506_v12, %v2487_v48  ;;  %v2532_v60 = vsub.f32 1.0, %v2529_v46 }
0x11e3   :  { %v2512_v40 = vadd.f32 0.2548296, %v2509_v38  ;;  %v2535_v62 = vmul.f32 %v2532_v60, %v2433_v61 }
0x11e5   :  { %v2515_v5 = vmul.f32 %v2512_v40, %v2487_v48  ;;  %v2538_v45 = vadd.f32 1.0, %v2535_v62 }
0x11e7   :  { %v2530_v11 = vmul.f32 %v3137_v8, %v2515_v5  ;;  %v2541_v51 = vmul.f32 %v2538_v45, %v2424_v0  ;;  %v2993_v8 = vld [vmem:[%s4298_s15 + $0x1] ss:$0 sm:$0xff] }
0x11e9   :  { %v2533_v59 = vsub.f32 1.0, %v2530_v11  ;;  %2919 = vmatmul.msk.f32.gmra.mxu2 %vm1281_vm8, %v2541_v51 }
0x11eb   :  { %v2536_v47 = vmul.f32 %v2533_v59, %v2434_v4 }
0x11ed   :  { %v2539_v6 = vadd.f32 1.0, %v2536_v47  ;;  %v2994_v47 = vld [vmem:[%s4299_s16 + $0x1] ss:$0 sm:$0xff] }
0x11ef   :  { %v2542_v7 = vmul.f32 %v2539_v6, %v2425_v53 }
0x11f1   :  { %2920 = vmatmul.msk.f32.gmra.mxu2 %vm1281_vm8, %v2542_v7 }
0x1264   :  { %v2583_v27 = vpop.f32.mrf.mxu2 }
0x1265   :  { %v2584_v30 = vadd.f32 %v2992_v63, %v2583_v27 }
0x1267   :  { %v2592_v17 = vadd.f32 %v2584_v30, %v4146_v21 }
0x1269   :  { %v2599_v19 = vsel %vm129_vm0, %v2592_v17, 0.0 }
0x126c   :  { %v2586_v18 = vpop.f32.mrf.mxu2 }
0x126d   :  { %v2587_v15 = vadd.f32 %v2992_v63, %v2586_v18 }
0x126f   :  { %v2593_v25 = vadd.f32 %v2587_v15, %v4150_v1 }
0x1271   :  { %v2602_v24 = vsel %vm129_vm0, %v2593_v25, 0.0 }
0x1272   :  { %2603 = vadd.xlane.f32.xlu1 %v2602_v24 }
0x1274   :  { %v2589_v49 = vpop.f32.mrf.mxu2 }
0x1275   :  { %v2590_v13 = vadd.f32 %v2992_v63, %v2589_v49  ;;  %v2677_v49 = vld [vmem:[%s4300_s4] sm:$0x3] }
0x1277   :  { %v2594_v23 = vadd.f32 %v2590_v13, %v4155_v26 }
0x1279   :  { %v2605_v16 = vsel %vm1026_vm9, %v2594_v23, 0.0 }
0x127a   :  { %2606 = vadd.xlane.f32.xlu2 %v2605_v16 }
0x1282   :  { %2600 = vadd.xlane.f32.xlu2 %v2599_v19 }
0x12e5   :  { %v2604_v3 = vpop.xlane.xlu1 %2603 }
0x12e6   :  { %v2609_v22 = vmul.f32 %v2604_v3, %v3663_v41 }
0x12e8   :  { %v2612_v1 = vsub.f32 %v2593_v25, %v2609_v22  ;;  %v2739_v22 = vld [vmem:[%s4303_s19 + $0x18] sm:$0xff] }
0x12e9   :  { %2759 = vmatpush.msrb.mxu0 %v2739_v22 }
0x12ea   :  { %v2615_v57 = vmul.f32 %v2612_v1, %v2612_v1 }
0x12ec   :  { %v2620_v50 = vsel %vm129_vm0, %v2615_v57, 0.0  ;;  %v2737_v57 = vld [vmem:[%s4303_s19 + $0x8] sm:$0xff] }
0x12ed   :  { %v2607_v48 = vpop.xlane.xlu2 %2606  ;;  %2621 = vadd.xlane.f32.xlu1 %v2620_v50  ;;  %v2736_v50 = vld [vmem:[%s4303_s19] sm:$0xff] }
0x12ee   :  { %v2610_v26 = vmul.f32 %v2607_v48, %v3663_v41  ;;  %v26_v48 = vstv %s4304_s20 }
0x12ef   :  { %27 = vst [vmem:[#allocation2] sm:$0x1] %v26_v48 }
0x12f0   :  { %v2613_v37 = vsub.f32 %v2594_v23, %v2610_v26 }
0x12f2   :  { %v2616_v43 = vmul.f32 %v2613_v37, %v2613_v37 }
0x12f4   :  { %v2623_v29 = vsel %vm1026_vm9, %v2616_v43, 0.0 }
0x12f5   :  { %2624 = vadd.xlane.f32.xlu0 %v2623_v29  ;;  %v2601_v21 = vpop.xlane.xlu2 %2600 }
0x12f6   :  { %v2608_v33 = vmul.f32 %v2601_v21, %v3663_v41 }
0x12f8   :  { %v2611_v35 = vsub.f32 %v2592_v17, %v2608_v33 }
0x12fa   :  { %v2614_v54 = vmul.f32 %v2611_v35, %v2611_v35 }
0x12fc   :  { %v2617_v44 = vsel %vm129_vm0, %v2614_v54, 0.0 }
0x12fd   :  { %2618 = vadd.xlane.f32.xlu2 %v2617_v44 }
0x1360   :  { %v2622_v36 = vpop.xlane.xlu1 %2621 }
0x1361   :  { %v2627_v2 = vmul.f32 %v2622_v36, %v3663_v41  ;;  %v2995_v36 = vld [vmem:[%s4301_s17] ss:$0 sm:$0xff] }
0x1363   :  { %v2630_v28 = vadd.f32 1e-05, %v2627_v2 }
0x1365   :  { %3138 = vrsqrt.f32 %v2630_v28  ;;  %vm2648_vm6 = vweird.f32 %v2630_v28 }
0x1368   :  { %v2625_v9 = vpop.xlane.xlu0 %2624 }
0x1369   :  { %v2628_v39 = vmul.f32 %v2625_v9, %v3663_v41 }
0x136b   :  { %v3139_v42 = vpop.eup %3138  ;;  %v2631_v14 = vadd.f32 1e-05, %v2628_v39 }
0x136c   :  { %v2643_v34 = vmul.f32 %v3139_v42, %v2630_v28  ;;  %vm2649_vm8 = vweird.f32 %v3139_v42 }
0x136d   :  { %3140 = vrsqrt.f32 %v2631_v14  ;;  %vm2650_vm7 = vmor %vm2648_vm6, %vm2649_vm8  ;;  %vm2658_vm11 = vweird.f32 %v2631_v14 }
0x136e   :  { %v2644_v20 = vmul.f32 %v3139_v42, %v2643_v34 }
0x1370   :  { %v2645_v31 = vmul.f32 0.5, %v2644_v20  ;;  %v2619_v52 = vpop.xlane.xlu2 %2618 }
0x1371   :  { %v2626_v32 = vmul.f32 %v2619_v52, %v3663_v41 }
0x1372   :  { %v2646_v55 = vsub.f32 1.5, %v2645_v31 }
0x1373   :  { %v3141_v10 = vpop.eup %3140  ;;  %v2629_v56 = vadd.f32 1e-05, %v2626_v32 }
0x1374   :  { %v2653_v58 = vmul.f32 %v3141_v10, %v2631_v14  ;;  %v2647_v12 = vmul.f32 %v3139_v42, %v2646_v55  ;;  %vm2659_vm10 = vweird.f32 %v3141_v10 }
0x1375   :  { %3142 = vrsqrt.f32 %v2629_v56  ;;  %vm2660_vm12 = vmor %vm2658_vm11, %vm2659_vm10  ;;  %vm2638_vm13 = vweird.f32 %v2629_v56 }
0x1376   :  { %v2654_v46 = vmul.f32 %v3141_v10, %v2653_v58  ;;  %v2651_v60 = vsel %vm2650_vm7, %v3139_v42, %v2647_v12  ;;  %v2997_v42 = vld [vmem:[#allocation2] ss:$0 sm:$0xff] }
0x1377   :  { %v2663_v0 = vmul.f32 %v2651_v60, %v2612_v1  ;;  %v2738_v1 = vld [vmem:[%s4303_s19 + $0x10] sm:$0xff] }
0x1378   :  { %v2655_v38 = vmul.f32 0.5, %v2654_v46  ;;  %2760 = vmatpush.msrb.mxu0 %v2738_v1 }
0x1379   :  { %v2669_v53 = vmul.f32 %v2993_v8, %v2663_v0 }
0x137a   :  { %v2656_v61 = vsub.f32 1.5, %v2655_v38  ;;  %2761 = vmatpush.msrb.mxu0 %v2737_v57 }
0x137b   :  { %v3143_v40 = vpop.eup %3142  ;;  %v2675_v63 = vadd.f32 %v2994_v47, %v2669_v53 }
0x137c   :  { %v2657_v62 = vmul.f32 %v3141_v10, %v2656_v61  ;;  %v2633_v5 = vmul.f32 %v3143_v40, %v2629_v56  ;;  %vm2639_vm3 = vweird.f32 %v3143_v40  ;;  %2762 = vmatpush.msrb.mxu0 %v2736_v50 }
0x137d   :  { %vm2640_vm14 = vmor %vm2638_vm13, %vm2639_vm3 }
0x137e   :  { %v2661_v45 = vsel %vm2660_vm12, %v3141_v10, %v2657_v62  ;;  %v2634_v11 = vmul.f32 %v3143_v40, %v2633_v5 }
0x137f   :  { %v2664_v51 = vmul.f32 %v2661_v45, %v2613_v37 }
0x1380   :  { %v2635_v59 = vmul.f32 0.5, %v2634_v11 }
0x1381   :  { %v2670_v4 = vmul.f32 %v2993_v8, %v2664_v51 }
0x1382   :  { %v2636_v6 = vsub.f32 1.5, %v2635_v59 }
0x1383   :  { %v2676_v7 = vadd.f32 %v2994_v47, %v2670_v4 }
0x1384   :  { %v2637_v27 = vmul.f32 %v3143_v40, %v2636_v6 }
0x1385   :  { %2923 = vmatpush.msk.msra.mxu3 %vm314_vm4, %v2676_v7 }
0x1386   :  { %v2641_v18 = vsel %vm2640_vm14, %v3143_v40, %v2637_v27 }
0x1387   :  { %2698 = vmatpush.msra.mxu3 %v2675_v63  ;;  %v2662_v15 = vmul.f32 %v2641_v18, %v2611_v35 }
0x1389   :  { %v2668_v25 = vmul.f32 %v2993_v8, %v2662_v15 }
0x138b   :  { %v2674_v24 = vadd.f32 %v2994_v47, %v2668_v25 }
0x138d   :  { %2699 = vmatpush.msra.mxu3 %v2674_v24 }
0x138e   :  { %2924 = vmatmul.msk.f32.vlgmr.msra.gmra.mxu3 %vm223_vm2, %v2677_v49 }
0x1411   :  { %v2701_v13 = vpop.f32.mrf.mxu3 }
0x1412   :  { %v2706_v23 = vsel %vm1026_vm9, %v2701_v13, 0.0 }
0x1413   :  { %2707 = vadd.xlane.f32.xlu0 %v2706_v23 }
0x1486   :  { %v2708_v30 = vpop.xlane.xlu0 %2707 }
0x1487   :  { %v2709_v16 = vmul.f32 %v2708_v30, %v3663_v41 }
0x1489   :  { %v2710_v17 = vsub.f32 %v2701_v13, %v2709_v16 }
0x148b   :  { %v2711_v19 = vmul.f32 %v2710_v17, %v2710_v17 }
0x148d   :  { %v2712_v3 = vsel %vm1026_vm9, %v2711_v19, 0.0 }
0x148e   :  { %2713 = vadd.xlane.f32.xlu1 %v2712_v3 }
0x1501   :  { %v2714_v26 = vpop.xlane.xlu1 %2713 }
0x1502   :  { %v2715_v37 = vmul.f32 %v2714_v26, %v3663_v41  ;;  %v2996_v41 = vld [vmem:[%s4302_s18] ss:$0 sm:$0xff] }
0x1504   :  { %v2716_v43 = vadd.f32 1e-06, %v2715_v37 }
0x1506   :  { %3144 = vrsqrt.f32 %v2716_v43  ;;  %vm2723_vm4 = vweird.f32 %v2716_v43 }
0x150c   :  { %v3145_v29 = vpop.eup %3144 }
0x150d   :  { %v2718_v21 = vmul.f32 %v3145_v29, %v2716_v43  ;;  %vm2724_vm2 = vweird.f32 %v3145_v29 }
0x150e   :  { %vm2725_vm9 = vmor %vm2723_vm4, %vm2724_vm2 }
0x150f   :  { %v2719_v33 = vmul.f32 %v3145_v29, %v2718_v21 }
0x1511   :  { %v2720_v35 = vmul.f32 0.5, %v2719_v33 }
0x1513   :  { %v2721_v54 = vsub.f32 1.5, %v2720_v35 }
0x1515   :  { %v2722_v44 = vmul.f32 %v3145_v29, %v2721_v54 }
0x1517   :  { %v2726_v2 = vsel %vm2725_vm9, %v3145_v29, %v2722_v44 }
0x1518   :  { %v2727_v28 = vmul.f32 %v2726_v2, %v2710_v17 }
0x151a   :  { %v2731_v9 = vmul.f32 %v2995_v36, %v2727_v28 }
0x151c   :  { %v2735_v39 = vadd.f32 %v2996_v41, %v2731_v9 }
0x151e   :  { %2925 = vmatmul.msk.f32.vlgmr.msrb.gmra.mxu0 %vm129_vm0, %v2735_v39 }
0x159b   :  { %v2764_v14 = vpop.f32.mrf.mxu0 }
0x159c   :  { %v2765_v34 = vadd.f32 %v2997_v42, %v2764_v14 }
0x159e   :  { %2768 = vst.msk [vmem:[%s4305_s21] sm:$0x3] %vm2767_vm15, %v2765_v34 }

</bundles_post_ra>
